<compile_context>
chip_gen: v7x
topology: tpu7x:2x2x1
jax: 0.10.0
libtpu: 0.0.40
codegen_flags: <defaults>
</compile_context>

<pallas_src>
import functools

import jax
import jax.numpy as jnp
from jax.experimental import pallas as pl
from jax.experimental.pallas import tpu as pltpu


def _round_up(x: int, m: int) -> int:
    return (x + m - 1) // m * m


# -----------------------------------------------------------------------------
# Fused GEMM + bias + activation kernel (the only Pallas kernel; reused for
# convs-as-GEMM, linear1 and all MDN linears).
# -----------------------------------------------------------------------------
def _gemm_bias_act_kernel(x_ref, w_ref, b_ref, o_ref, acc_ref, *,
                          act, n_valid, temperature, softplus_threshold):
    k = pl.program_id(2)

    @pl.when(k == 0)
    def _init():
        acc_ref[...] = jnp.zeros_like(acc_ref)

    acc_ref[...] += jnp.dot(x_ref[...], w_ref[...],
                            preferred_element_type=jnp.float32)

    @pl.when(k == pl.num_programs(2) - 1)
    def _epilogue():
        y = acc_ref[...] + b_ref[...]                     # (tm, tn) + (1, tn)
        if act == "relu":
            y = jnp.maximum(y, 0.0)
        elif act == "leaky_relu":
            y = jnp.where(y >= 0.0, y, 0.1 * y)
        elif act == "softplus":
            t = jnp.float32(softplus_threshold)
            y = jnp.where(y > t, y, jnp.log(1.0 + jnp.exp(jnp.minimum(y, t))))
        elif act == "softmax":
            col = jax.lax.broadcasted_iota(jnp.int32, y.shape, 1)
            logits = jnp.where(col < n_valid, y / temperature,
                               jnp.float32(-1e30))
            m = jnp.max(logits, axis=-1, keepdims=True)
            e = jnp.exp(logits - m)
            denom = jnp.sum(e, axis=-1, keepdims=True)
            y = e * pl.reciprocal(denom, approx=True)
        # act == "none": identity
        o_ref[...] = y.astype(o_ref.dtype)


def fused_linear(x, w, b, act="none", *, n_valid=None, temperature=1.0,
                 softplus_threshold=20.0, tm_max=256, tn_max=256, tk_max=512):
    """act(x @ w + b) via a tiled Pallas MXU kernel. x:(M,K), w:(K,N), b:(N,)."""
    M, K = x.shape
    Kw, N = w.shape
    assert K == Kw and b.shape == (N,)

    tm = min(tm_max, _round_up(M, 8))
    tn = min(tn_max, _round_up(N, 128))
    tk = min(tk_max, _round_up(K, 128))
    Mp, Kp, Np = _round_up(M, tm), _round_up(K, tk), _round_up(N, tn)

    if act == "softmax":
        # The softmax epilogue reduces over N in-tile: need a single N block.
        assert Np == tn, "softmax epilogue requires the full N in one tile"

    xp = jnp.pad(x, ((0, Mp - M), (0, Kp - K)))
    wp = jnp.pad(w, ((0, Kp - K), (0, Np - N)))
    bp = jnp.pad(b, (0, Np - N)).reshape(1, Np)

    grid = (Mp // tm, Np // tn, Kp // tk)
    kernel = functools.partial(
        _gemm_bias_act_kernel, act=act, n_valid=n_valid,
        temperature=temperature, softplus_threshold=softplus_threshold)

    out = pl.pallas_call(
        kernel,
        out_shape=jax.ShapeDtypeStruct((Mp, Np), jnp.float32),
        grid_spec=pltpu.PrefetchScalarGridSpec(
            num_scalar_prefetch=0,
            grid=grid,
            in_specs=[
                pl.BlockSpec((tm, tk), lambda i, j, k: (i, k)),
                pl.BlockSpec((tk, tn), lambda i, j, k: (k, j)),
                pl.BlockSpec((1, tn), lambda i, j, k: (0, j)),
            ],
            out_specs=pl.BlockSpec((tm, tn), lambda i, j, k: (i, j)),
            scratch_shapes=[pltpu.VMEM((tm, tn), jnp.float32)],
        ),
        compiler_params=pltpu.CompilerParams(
            dimension_semantics=("parallel", "parallel", "arbitrary")),
    )(xp, wp, bp)
    return out[:M, :N]


# -----------------------------------------------------------------------------
# Model pieces (layout plumbing in the wrapper, MACs in the Pallas GEMM).
# -----------------------------------------------------------------------------
def conv2d_leaky(x, w, b):
    """PyTorch-style Conv2d (stride 1, 'same' padding) + leaky_relu(0.1),
    implemented as im2col (XLA layout op) + fused Pallas GEMM."""
    B, Cin, H, W = x.shape
    Cout, _, kh, kw = w.shape
    ph, pw = kh // 2, kw // 2
    xp = jnp.pad(x, ((0, 0), (0, 0), (ph, ph), (pw, pw)))
    cols = []
    for ci in range(Cin):
        for i in range(kh):
            for j in range(kw):
                cols.append(xp[:, ci, i:i + H, j:j + W])       # (B, H, W)
    patches = jnp.stack(cols, axis=0)                           # (K, B, H, W)
    patches = patches.transpose(1, 2, 3, 0).reshape(B * H * W, Cin * kh * kw)
    w2 = w.reshape(Cout, Cin * kh * kw).T                       # (K, Cout)
    y = fused_linear(patches, w2, b, act="leaky_relu")          # (B*H*W, Cout)
    return y.reshape(B, H, W, Cout).transpose(0, 3, 1, 2)       # NCHW


def max_pool_2x2(x):
    B, C, H, W = x.shape
    return x.reshape(B, C, H // 2, 2, W // 2, 2).max(axis=(3, 5))


def slosh_forward(x, p, *, num_gaussians, out_features=1, temperature=1.0):
    # unsqueeze(1): free view
    h = x[:, None, :, :]
    h = max_pool_2x2(conv2d_leaky(h, p["conv1_w"], p["conv1_b"]))
    h = max_pool_2x2(conv2d_leaky(h, p["conv2_w"], p["conv2_b"]))
    h = max_pool_2x2(conv2d_leaky(h, p["conv3_w"], p["conv3_b"]))
    # flatten: free metadata view (NCHW row-major == torch .view(B, -1))
    f = h.reshape(h.shape[0], -1)
    lin1 = fused_linear(f, p["lin1_w"], p["lin1_b"], act="relu")

    def head(w1, b1, w2, b2, act, **kw):
        hid = fused_linear(lin1, w1, b1, act="relu")
        return fused_linear(hid, w2, b2, act=act, **kw)

    pi = head(p["pi1_w"], p["pi1_b"], p["pi2_w"], p["pi2_b"],
              act="softmax", n_valid=num_gaussians, temperature=temperature)
    sigma = head(p["sig1_w"], p["sig1_b"], p["sig2_w"], p["sig2_b"],
                 act="softplus", softplus_threshold=20.0)
    mu = head(p["mu1_w"], p["mu1_b"], p["mu2_w"], p["mu2_b"],
              act="softplus", softplus_threshold=5.0)
    G, O = num_gaussians, out_features
    return pi, sigma.reshape(-1, G, O), mu.reshape(-1, G, O)


# -----------------------------------------------------------------------------
# Pure-JAX reference (mirrors the PyTorch forward) for correctness checking.
# -----------------------------------------------------------------------------
def reference_forward(x, p, *, num_gaussians, out_features=1, temperature=1.0):
    hp = jax.lax.Precision.HIGHEST

    def conv(h, w, b, pad):
        y = jax.lax.conv_general_dilated(
            h, w, window_strides=(1, 1), padding=((pad, pad), (pad, pad)),
            dimension_numbers=("NCHW", "OIHW", "NCHW"), precision=hp)
        return y + b[None, :, None, None]

    def leaky(v):
        return jnp.where(v >= 0, v, 0.1 * v)

    def pool(v):
        B, C, H, W = v.shape
        return v.reshape(B, C, H // 2, 2, W // 2, 2).max(axis=(3, 5))

    def softplus(v, thr):
        return jnp.where(v > thr, v, jnp.log(1.0 + jnp.exp(jnp.minimum(v, thr))))

    def dense(v, w, b):
        return jnp.dot(v, w, precision=hp) + b

    h = x[:, None, :, :]
    h = pool(leaky(conv(h, p["conv1_w"], p["conv1_b"], 2)))
    h = pool(leaky(conv(h, p["conv2_w"], p["conv2_b"], 1)))
    h = pool(leaky(conv(h, p["conv3_w"], p["conv3_b"], 1)))
    f = h.reshape(h.shape[0], -1)
    lin1 = jnp.maximum(dense(f, p["lin1_w"], p["lin1_b"]), 0.0)

    def head(w1, b1, w2, b2):
        hid = jnp.maximum(dense(lin1, w1, b1), 0.0)
        return dense(hid, w2, b2)

    pi = jax.nn.softmax(
        head(p["pi1_w"], p["pi1_b"], p["pi2_w"], p["pi2_b"]) / temperature, axis=1)
    sigma = softplus(head(p["sig1_w"], p["sig1_b"], p["sig2_w"], p["sig2_b"]), 20.0)
    mu = softplus(head(p["mu1_w"], p["mu1_b"], p["mu2_w"], p["mu2_b"]), 5.0)
    G, O = num_gaussians, out_features
    return pi, sigma.reshape(-1, G, O), mu.reshape(-1, G, O)


if __name__ == "__main__":
    B, H, W = 2, 128, 128       # Linear(16*16*16, 128) implies a 128x128 input
    NG, OUT = 4, 1              # num_gaussians, MDN out_features

    root = jax.random.PRNGKey(0)
    ks = jax.random.split(root, 22)

    def w_init(k, shape, fan_in):
        return jax.random.normal(k, shape, jnp.float32) * (1.0 / (fan_in ** 0.5))

    def b_init(k, n):
        return 0.05 * jax.random.normal(k, (n,), jnp.float32)

    params = {
        "conv1_w": w_init(ks[0], (4, 1, 5, 5), 1 * 5 * 5),
        "conv1_b": b_init(ks[1], 4),
        "conv2_w": w_init(ks[2], (8, 4, 3, 3), 4 * 3 * 3),
        "conv2_b": b_init(ks[3], 8),
        "conv3_w": w_init(ks[4], (16, 8, 3, 3), 8 * 3 * 3),
        "conv3_b": b_init(ks[5], 16),
        "lin1_w": w_init(ks[6], (16 * 16 * 16, 128), 16 * 16 * 16),
        "lin1_b": b_init(ks[7], 128),
        "pi1_w": w_init(ks[8], (128, 256), 128),
        "pi1_b": b_init(ks[9], 256),
        "pi2_w": w_init(ks[10], (256, NG), 256),
        "pi2_b": b_init(ks[11], NG),
        "sig1_w": w_init(ks[12], (128, 256), 128),
        "sig1_b": b_init(ks[13], 256),
        "sig2_w": w_init(ks[14], (256, NG * OUT), 256),
        "sig2_b": b_init(ks[15], NG * OUT),
        "mu1_w": w_init(ks[16], (128, 256), 128),
        "mu1_b": b_init(ks[17], 256),
        "mu2_w": w_init(ks[18], (256, NG * OUT), 256),
        "mu2_b": b_init(ks[19], NG * OUT),
    }
    x = jax.random.normal(ks[20], (B, H, W), jnp.float32)

    fwd = jax.jit(functools.partial(slosh_forward, num_gaussians=NG,
                                    out_features=OUT, temperature=1.0))
    pi, sigma, mu = jax.block_until_ready(fwd(x, params))

    pi_r, sigma_r, mu_r = reference_forward(x, params, num_gaussians=NG,
                                            out_features=OUT, temperature=1.0)

    assert pi.shape == (B, NG), pi.shape
    assert sigma.shape == (B, NG, OUT), sigma.shape
    assert mu.shape == (B, NG, OUT), mu.shape
    assert bool(jnp.allclose(jnp.sum(pi, axis=1), 1.0, atol=1e-3))
    for got, ref, name in ((pi, pi_r, "pi"), (sigma, sigma_r, "sigma"),
                           (mu, mu_r, "mu")):
        if not bool(jnp.allclose(got, ref, rtol=2e-2, atol=2e-2)):
            err = float(jnp.max(jnp.abs(got - ref)))
            raise AssertionError(f"{name} mismatch vs reference (max abs err {err:.3e})")

    print("KERNEL_OK")
</pallas_src>

<mosaic_0001>
module attributes {stable_mosaic.version = 11 : i64} {
  func.func @_gemm_bias_act_kernel(%arg0: i32, %arg1: i32, %arg2: i32, %arg3: memref<256x128xf32, #tpu.memory_space<vmem>>, %arg4: memref<128x128xf32, #tpu.memory_space<vmem>>, %arg5: memref<1x128xf32, #tpu.memory_space<vmem>>, %arg6: memref<256x128xf32, #tpu.memory_space<vmem>>, %arg7: memref<256x128xf32, #tpu.memory_space<vmem>>) attributes {dimension_semantics = [#tpu.dimension_semantics<parallel>, #tpu.dimension_semantics<parallel>, #tpu.dimension_semantics<arbitrary>], iteration_bounds = array<i64: 128, 1, 1>, scalar_prefetch = 0 : i64, scratch_operands = 1 : i64, tpu.core_type = #tpu.core_type<tc>, window_params = [{transform_indices = @transform_0, window_bounds = array<i64: 256, 128>}, {transform_indices = @transform_1, window_bounds = array<i64: 128, 128>}, {transform_indices = @transform_2, window_bounds = array<i64: 1, 128>}, {transform_indices = @transform_3, window_bounds = array<i64: 256, 128>}]} {
    %c0_i32 = arith.constant 0 : i32
    %0 = arith.cmpi eq, %arg2, %c0_i32 : i32
    %1 = arith.extui %0 : i1 to i32
    %c0_i32_0 = arith.constant 0 : i32
    %2 = arith.cmpi ne, %1, %c0_i32_0 : i32
    scf.if %2 {
      %cst_10 = arith.constant 0.000000e+00 : f32
      %12 = vector.broadcast %cst_10 : f32 to vector<256x128xf32>
      %c0_11 = arith.constant 0 : index
      %c0_12 = arith.constant 0 : index
      %13 = vector.load %arg7[%c0_11, %c0_12] : memref<256x128xf32, #tpu.memory_space<vmem>>, vector<256x128xf32>
      tpu.vector_store %arg7[%c0_11, %c0_12], %12 {strides = array<i32>} : memref<256x128xf32, #tpu.memory_space<vmem>>, vector<256x128xf32>,
    } else {
    }
    %c0 = arith.constant 0 : index
    %c0_1 = arith.constant 0 : index
    %3 = vector.load %arg7[%c0, %c0_1] : memref<256x128xf32, #tpu.memory_space<vmem>>, vector<256x128xf32>
    %c0_2 = arith.constant 0 : index
    %c0_3 = arith.constant 0 : index
    %4 = vector.load %arg3[%c0_2, %c0_3] : memref<256x128xf32, #tpu.memory_space<vmem>>, vector<256x128xf32>
    %c0_4 = arith.constant 0 : index
    %c0_5 = arith.constant 0 : index
    %5 = vector.load %arg4[%c0_4, %c0_5] : memref<128x128xf32, #tpu.memory_space<vmem>>, vector<128x128xf32>
    %cst = arith.constant dense<0.000000e+00> : vector<256x128xf32>
    %6 = tpu.matmul %4, %5, %cst {dimension_numbers = #tpu.dot_dimension_numbers<[1], [0], [0], [1], [0, 0, 1, 1], [], []>} : vector<256x128xf32>, vector<128x128xf32>, vector<256x128xf32> -> vector<256x128xf32>
    %7 = arith.addf %3, %6 : vector<256x128xf32>
    %c0_6 = arith.constant 0 : index
    %c0_7 = arith.constant 0 : index
    %8 = vector.load %arg7[%c0_6, %c0_7] : memref<256x128xf32, #tpu.memory_space<vmem>>, vector<256x128xf32>
    tpu.vector_store %arg7[%c0_6, %c0_7], %7 {strides = array<i32>} : memref<256x128xf32, #tpu.memory_space<vmem>>, vector<256x128xf32>,
    %c0_i32_8 = arith.constant 0 : i32
    %9 = arith.cmpi eq, %arg2, %c0_i32_8 : i32
    %10 = arith.extui %9 : i1 to i32
    %c0_i32_9 = arith.constant 0 : i32
    %11 = arith.cmpi ne, %10, %c0_i32_9 : i32
    scf.if %11 {
      %c0_10 = arith.constant 0 : index
      %c0_11 = arith.constant 0 : index
      %12 = vector.load %arg7[%c0_10, %c0_11] : memref<256x128xf32, #tpu.memory_space<vmem>>, vector<256x128xf32>
      %c0_12 = arith.constant 0 : index
      %c0_13 = arith.constant 0 : index
      %13 = vector.load %arg5[%c0_12, %c0_13] : memref<1x128xf32, #tpu.memory_space<vmem>>, vector<1x128xf32>
      %14 = vector.broadcast %13 : vector<1x128xf32> to vector<256x128xf32>
      %15 = arith.addf %12, %14 : vector<256x128xf32>
      %cst_14 = arith.constant 0.000000e+00 : f32
      %16 = vector.broadcast %cst_14 : f32 to vector<256x128xf32>
      %17 = arith.cmpf oge, %15, %16 : vector<256x128xf32>
      %cst_15 = arith.constant 1.000000e-01 : f32
      %18 = vector.broadcast %cst_15 : f32 to vector<256x128xf32>
      %19 = arith.mulf %18, %15 : vector<256x128xf32>
      %20 = arith.select %17, %15, %19 : vector<256x128xi1>, vector<256x128xf32>
      %c0_16 = arith.constant 0 : index
      %c0_17 = arith.constant 0 : index
      %21 = vector.load %arg6[%c0_16, %c0_17] : memref<256x128xf32, #tpu.memory_space<vmem>>, vector<256x128xf32>
      tpu.vector_store %arg6[%c0_16, %c0_17], %20 {strides = array<i32>} : memref<256x128xf32, #tpu.memory_space<vmem>>, vector<256x128xf32>,
    } else {
    }
    return
  }
  func.func @transform_0(%arg0: i32, %arg1: i32, %arg2: i32) -> (i32, i32) {
    %c0_i32 = arith.constant 0 : i32
    return %arg0, %arg2 : i32, i32
  }
  func.func @transform_1(%arg0: i32, %arg1: i32, %arg2: i32) -> (i32, i32) {
    %c0_i32 = arith.constant 0 : i32
    return %arg2, %arg1 : i32, i32
  }
  func.func @transform_2(%arg0: i32, %arg1: i32, %arg2: i32) -> (i32, i32) {
    %c0_i32 = arith.constant 0 : i32
    %c0_i32_0 = arith.constant 0 : i32
    return %c0_i32, %arg1 : i32, i32
  }
  func.func @transform_3(%arg0: i32, %arg1: i32, %arg2: i32) -> (i32, i32) {
    %c0_i32 = arith.constant 0 : i32
    return %arg0, %arg1 : i32, i32
  }
}

module attributes {stable_mosaic.version = 11 : i64} {
  func.func @_gemm_bias_act_kernel(%arg0: i32, %arg1: i32, %arg2: i32, %arg3: memref<256x128xf32, #tpu.memory_space<vmem>>, %arg4: memref<128x128xf32, #tpu.memory_space<vmem>>, %arg5: memref<1x128xf32, #tpu.memory_space<vmem>>, %arg6: memref<256x128xf32, #tpu.memory_space<vmem>>, %arg7: memref<256x128xf32, #tpu.memory_space<vmem>>) attributes {dimension_semantics = [#tpu.dimension_semantics<parallel>, #tpu.dimension_semantics<parallel>, #tpu.dimension_semantics<arbitrary>], iteration_bounds = array<i64: 32, 1, 1>, scalar_prefetch = 0 : i64, scratch_operands = 1 : i64, tpu.core_type = #tpu.core_type<tc>, window_params = [{transform_indices = @transform_0, window_bounds = array<i64: 256, 128>}, {transform_indices = @transform_1, window_bounds = array<i64: 128, 128>}, {transform_indices = @transform_2, window_bounds = array<i64: 1, 128>}, {transform_indices = @transform_3, window_bounds = array<i64: 256, 128>}]} {
    %c0_i32 = arith.constant 0 : i32
    %0 = arith.cmpi eq, %arg2, %c0_i32 : i32
    %1 = arith.extui %0 : i1 to i32
    %c0_i32_0 = arith.constant 0 : i32
    %2 = arith.cmpi ne, %1, %c0_i32_0 : i32
    scf.if %2 {
      %cst_10 = arith.constant 0.000000e+00 : f32
      %12 = vector.broadcast %cst_10 : f32 to vector<256x128xf32>
      %c0_11 = arith.constant 0 : index
      %c0_12 = arith.constant 0 : index
      %13 = vector.load %arg7[%c0_11, %c0_12] : memref<256x128xf32, #tpu.memory_space<vmem>>, vector<256x128xf32>
      tpu.vector_store %arg7[%c0_11, %c0_12], %12 {strides = array<i32>} : memref<256x128xf32, #tpu.memory_space<vmem>>, vector<256x128xf32>,
    } else {
    }
    %c0 = arith.constant 0 : index
    %c0_1 = arith.constant 0 : index
    %3 = vector.load %arg7[%c0, %c0_1] : memref<256x128xf32, #tpu.memory_space<vmem>>, vector<256x128xf32>
    %c0_2 = arith.constant 0 : index
    %c0_3 = arith.constant 0 : index
    %4 = vector.load %arg3[%c0_2, %c0_3] : memref<256x128xf32, #tpu.memory_space<vmem>>, vector<256x128xf32>
    %c0_4 = arith.constant 0 : index
    %c0_5 = arith.constant 0 : index
    %5 = vector.load %arg4[%c0_4, %c0_5] : memref<128x128xf32, #tpu.memory_space<vmem>>, vector<128x128xf32>
    %cst = arith.constant dense<0.000000e+00> : vector<256x128xf32>
    %6 = tpu.matmul %4, %5, %cst {dimension_numbers = #tpu.dot_dimension_numbers<[1], [0], [0], [1], [0, 0, 1, 1], [], []>} : vector<256x128xf32>, vector<128x128xf32>, vector<256x128xf32> -> vector<256x128xf32>
    %7 = arith.addf %3, %6 : vector<256x128xf32>
    %c0_6 = arith.constant 0 : index
    %c0_7 = arith.constant 0 : index
    %8 = vector.load %arg7[%c0_6, %c0_7] : memref<256x128xf32, #tpu.memory_space<vmem>>, vector<256x128xf32>
    tpu.vector_store %arg7[%c0_6, %c0_7], %7 {strides = array<i32>} : memref<256x128xf32, #tpu.memory_space<vmem>>, vector<256x128xf32>,
    %c0_i32_8 = arith.constant 0 : i32
    %9 = arith.cmpi eq, %arg2, %c0_i32_8 : i32
    %10 = arith.extui %9 : i1 to i32
    %c0_i32_9 = arith.constant 0 : i32
    %11 = arith.cmpi ne, %10, %c0_i32_9 : i32
    scf.if %11 {
      %c0_10 = arith.constant 0 : index
      %c0_11 = arith.constant 0 : index
      %12 = vector.load %arg7[%c0_10, %c0_11] : memref<256x128xf32, #tpu.memory_space<vmem>>, vector<256x128xf32>
      %c0_12 = arith.constant 0 : index
      %c0_13 = arith.constant 0 : index
      %13 = vector.load %arg5[%c0_12, %c0_13] : memref<1x128xf32, #tpu.memory_space<vmem>>, vector<1x128xf32>
      %14 = vector.broadcast %13 : vector<1x128xf32> to vector<256x128xf32>
      %15 = arith.addf %12, %14 : vector<256x128xf32>
      %cst_14 = arith.constant 0.000000e+00 : f32
      %16 = vector.broadcast %cst_14 : f32 to vector<256x128xf32>
      %17 = arith.cmpf oge, %15, %16 : vector<256x128xf32>
      %cst_15 = arith.constant 1.000000e-01 : f32
      %18 = vector.broadcast %cst_15 : f32 to vector<256x128xf32>
      %19 = arith.mulf %18, %15 : vector<256x128xf32>
      %20 = arith.select %17, %15, %19 : vector<256x128xi1>, vector<256x128xf32>
      %c0_16 = arith.constant 0 : index
      %c0_17 = arith.constant 0 : index
      %21 = vector.load %arg6[%c0_16, %c0_17] : memref<256x128xf32, #tpu.memory_space<vmem>>, vector<256x128xf32>
      tpu.vector_store %arg6[%c0_16, %c0_17], %20 {strides = array<i32>} : memref<256x128xf32, #tpu.memory_space<vmem>>, vector<256x128xf32>,
    } else {
    }
    return
  }
  func.func @transform_0(%arg0: i32, %arg1: i32, %arg2: i32) -> (i32, i32) {
    %c0_i32 = arith.constant 0 : i32
    return %arg0, %arg2 : i32, i32
  }
  func.func @transform_1(%arg0: i32, %arg1: i32, %arg2: i32) -> (i32, i32) {
    %c0_i32 = arith.constant 0 : i32
    return %arg2, %arg1 : i32, i32
  }
  func.func @transform_2(%arg0: i32, %arg1: i32, %arg2: i32) -> (i32, i32) {
    %c0_i32 = arith.constant 0 : i32
    %c0_i32_0 = arith.constant 0 : i32
    return %c0_i32, %arg1 : i32, i32
  }
  func.func @transform_3(%arg0: i32, %arg1: i32, %arg2: i32) -> (i32, i32) {
    %c0_i32 = arith.constant 0 : i32
    return %arg0, %arg1 : i32, i32
  }
}

module attributes {stable_mosaic.version = 11 : i64} {
  func.func @_gemm_bias_act_kernel(%arg0: i32, %arg1: i32, %arg2: i32, %arg3: memref<256x128xf32, #tpu.memory_space<vmem>>, %arg4: memref<128x128xf32, #tpu.memory_space<vmem>>, %arg5: memref<1x128xf32, #tpu.memory_space<vmem>>, %arg6: memref<256x128xf32, #tpu.memory_space<vmem>>, %arg7: memref<256x128xf32, #tpu.memory_space<vmem>>) attributes {dimension_semantics = [#tpu.dimension_semantics<parallel>, #tpu.dimension_semantics<parallel>, #tpu.dimension_semantics<arbitrary>], iteration_bounds = array<i64: 8, 1, 1>, scalar_prefetch = 0 : i64, scratch_operands = 1 : i64, tpu.core_type = #tpu.core_type<tc>, window_params = [{transform_indices = @transform_0, window_bounds = array<i64: 256, 128>}, {transform_indices = @transform_1, window_bounds = array<i64: 128, 128>}, {transform_indices = @transform_2, window_bounds = array<i64: 1, 128>}, {transform_indices = @transform_3, window_bounds = array<i64: 256, 128>}]} {
    %c0_i32 = arith.constant 0 : i32
    %0 = arith.cmpi eq, %arg2, %c0_i32 : i32
    %1 = arith.extui %0 : i1 to i32
    %c0_i32_0 = arith.constant 0 : i32
    %2 = arith.cmpi ne, %1, %c0_i32_0 : i32
    scf.if %2 {
      %cst_10 = arith.constant 0.000000e+00 : f32
      %12 = vector.broadcast %cst_10 : f32 to vector<256x128xf32>
      %c0_11 = arith.constant 0 : index
      %c0_12 = arith.constant 0 : index
      %13 = vector.load %arg7[%c0_11, %c0_12] : memref<256x128xf32, #tpu.memory_space<vmem>>, vector<256x128xf32>
      tpu.vector_store %arg7[%c0_11, %c0_12], %12 {strides = array<i32>} : memref<256x128xf32, #tpu.memory_space<vmem>>, vector<256x128xf32>,
    } else {
    }
    %c0 = arith.constant 0 : index
    %c0_1 = arith.constant 0 : index
    %3 = vector.load %arg7[%c0, %c0_1] : memref<256x128xf32, #tpu.memory_space<vmem>>, vector<256x128xf32>
    %c0_2 = arith.constant 0 : index
    %c0_3 = arith.constant 0 : index
    %4 = vector.load %arg3[%c0_2, %c0_3] : memref<256x128xf32, #tpu.memory_space<vmem>>, vector<256x128xf32>
    %c0_4 = arith.constant 0 : index
    %c0_5 = arith.constant 0 : index
    %5 = vector.load %arg4[%c0_4, %c0_5] : memref<128x128xf32, #tpu.memory_space<vmem>>, vector<128x128xf32>
    %cst = arith.constant dense<0.000000e+00> : vector<256x128xf32>
    %6 = tpu.matmul %4, %5, %cst {dimension_numbers = #tpu.dot_dimension_numbers<[1], [0], [0], [1], [0, 0, 1, 1], [], []>} : vector<256x128xf32>, vector<128x128xf32>, vector<256x128xf32> -> vector<256x128xf32>
    %7 = arith.addf %3, %6 : vector<256x128xf32>
    %c0_6 = arith.constant 0 : index
    %c0_7 = arith.constant 0 : index
    %8 = vector.load %arg7[%c0_6, %c0_7] : memref<256x128xf32, #tpu.memory_space<vmem>>, vector<256x128xf32>
    tpu.vector_store %arg7[%c0_6, %c0_7], %7 {strides = array<i32>} : memref<256x128xf32, #tpu.memory_space<vmem>>, vector<256x128xf32>,
    %c0_i32_8 = arith.constant 0 : i32
    %9 = arith.cmpi eq, %arg2, %c0_i32_8 : i32
    %10 = arith.extui %9 : i1 to i32
    %c0_i32_9 = arith.constant 0 : i32
    %11 = arith.cmpi ne, %10, %c0_i32_9 : i32
    scf.if %11 {
      %c0_10 = arith.constant 0 : index
      %c0_11 = arith.constant 0 : index
      %12 = vector.load %arg7[%c0_10, %c0_11] : memref<256x128xf32, #tpu.memory_space<vmem>>, vector<256x128xf32>
      %c0_12 = arith.constant 0 : index
      %c0_13 = arith.constant 0 : index
      %13 = vector.load %arg5[%c0_12, %c0_13] : memref<1x128xf32, #tpu.memory_space<vmem>>, vector<1x128xf32>
      %14 = vector.broadcast %13 : vector<1x128xf32> to vector<256x128xf32>
      %15 = arith.addf %12, %14 : vector<256x128xf32>
      %cst_14 = arith.constant 0.000000e+00 : f32
      %16 = vector.broadcast %cst_14 : f32 to vector<256x128xf32>
      %17 = arith.cmpf oge, %15, %16 : vector<256x128xf32>
      %cst_15 = arith.constant 1.000000e-01 : f32
      %18 = vector.broadcast %cst_15 : f32 to vector<256x128xf32>
      %19 = arith.mulf %18, %15 : vector<256x128xf32>
      %20 = arith.select %17, %15, %19 : vector<256x128xi1>, vector<256x128xf32>
      %c0_16 = arith.constant 0 : index
      %c0_17 = arith.constant 0 : index
      %21 = vector.load %arg6[%c0_16, %c0_17] : memref<256x128xf32, #tpu.memory_space<vmem>>, vector<256x128xf32>
      tpu.vector_store %arg6[%c0_16, %c0_17], %20 {strides = array<i32>} : memref<256x128xf32, #tpu.memory_space<vmem>>, vector<256x128xf32>,
    } else {
    }
    return
  }
  func.func @transform_0(%arg0: i32, %arg1: i32, %arg2: i32) -> (i32, i32) {
    %c0_i32 = arith.constant 0 : i32
    return %arg0, %arg2 : i32, i32
  }
  func.func @transform_1(%arg0: i32, %arg1: i32, %arg2: i32) -> (i32, i32) {
    %c0_i32 = arith.constant 0 : i32
    return %arg2, %arg1 : i32, i32
  }
  func.func @transform_2(%arg0: i32, %arg1: i32, %arg2: i32) -> (i32, i32) {
    %c0_i32 = arith.constant 0 : i32
    %c0_i32_0 = arith.constant 0 : i32
    return %c0_i32, %arg1 : i32, i32
  }
  func.func @transform_3(%arg0: i32, %arg1: i32, %arg2: i32) -> (i32, i32) {
    %c0_i32 = arith.constant 0 : i32
    return %arg0, %arg1 : i32, i32
  }
}

module attributes {stable_mosaic.version = 11 : i64} {
  func.func @_gemm_bias_act_kernel(%arg0: i32, %arg1: i32, %arg2: i32, %arg3: memref<8x512xf32, #tpu.memory_space<vmem>>, %arg4: memref<512x128xf32, #tpu.memory_space<vmem>>, %arg5: memref<1x128xf32, #tpu.memory_space<vmem>>, %arg6: memref<8x128xf32, #tpu.memory_space<vmem>>, %arg7: memref<8x128xf32, #tpu.memory_space<vmem>>) attributes {dimension_semantics = [#tpu.dimension_semantics<parallel>, #tpu.dimension_semantics<parallel>, #tpu.dimension_semantics<arbitrary>], iteration_bounds = array<i64: 1, 1, 8>, scalar_prefetch = 0 : i64, scratch_operands = 1 : i64, tpu.core_type = #tpu.core_type<tc>, window_params = [{transform_indices = @transform_0, window_bounds = array<i64: 8, 512>}, {transform_indices = @transform_1, window_bounds = array<i64: 512, 128>}, {transform_indices = @transform_2, window_bounds = array<i64: 1, 128>}, {transform_indices = @transform_3, window_bounds = array<i64: 8, 128>}]} {
    %c0_i32 = arith.constant 0 : i32
    %0 = arith.cmpi eq, %arg2, %c0_i32 : i32
    %1 = arith.extui %0 : i1 to i32
    %c0_i32_0 = arith.constant 0 : i32
    %2 = arith.cmpi ne, %1, %c0_i32_0 : i32
    scf.if %2 {
      %cst_9 = arith.constant 0.000000e+00 : f32
      %12 = vector.broadcast %cst_9 : f32 to vector<8x128xf32>
      %c0_10 = arith.constant 0 : index
      %c0_11 = arith.constant 0 : index
      %13 = vector.load %arg7[%c0_10, %c0_11] : memref<8x128xf32, #tpu.memory_space<vmem>>, vector<8x128xf32>
      tpu.vector_store %arg7[%c0_10, %c0_11], %12 {strides = array<i32>} : memref<8x128xf32, #tpu.memory_space<vmem>>, vector<8x128xf32>,
    } else {
    }
    %c0 = arith.constant 0 : index
    %c0_1 = arith.constant 0 : index
    %3 = vector.load %arg7[%c0, %c0_1] : memref<8x128xf32, #tpu.memory_space<vmem>>, vector<8x128xf32>
    %c0_2 = arith.constant 0 : index
    %c0_3 = arith.constant 0 : index
    %4 = vector.load %arg3[%c0_2, %c0_3] : memref<8x512xf32, #tpu.memory_space<vmem>>, vector<8x512xf32>
    %c0_4 = arith.constant 0 : index
    %c0_5 = arith.constant 0 : index
    %5 = vector.load %arg4[%c0_4, %c0_5] : memref<512x128xf32, #tpu.memory_space<vmem>>, vector<512x128xf32>
    %cst = arith.constant dense<0.000000e+00> : vector<8x128xf32>
    %6 = tpu.matmul %4, %5, %cst {dimension_numbers = #tpu.dot_dimension_numbers<[1], [0], [0], [1], [0, 0, 1, 1], [], []>} : vector<8x512xf32>, vector<512x128xf32>, vector<8x128xf32> -> vector<8x128xf32>
    %7 = arith.addf %3, %6 : vector<8x128xf32>
    %c0_6 = arith.constant 0 : index
    %c0_7 = arith.constant 0 : index
    %8 = vector.load %arg7[%c0_6, %c0_7] : memref<8x128xf32, #tpu.memory_space<vmem>>, vector<8x128xf32>
    tpu.vector_store %arg7[%c0_6, %c0_7], %7 {strides = array<i32>} : memref<8x128xf32, #tpu.memory_space<vmem>>, vector<8x128xf32>,
    %c7_i32 = arith.constant 7 : i32
    %9 = arith.cmpi eq, %arg2, %c7_i32 : i32
    %10 = arith.extui %9 : i1 to i32
    %c0_i32_8 = arith.constant 0 : i32
    %11 = arith.cmpi ne, %10, %c0_i32_8 : i32
    scf.if %11 {
      %c0_9 = arith.constant 0 : index
      %c0_10 = arith.constant 0 : index
      %12 = vector.load %arg7[%c0_9, %c0_10] : memref<8x128xf32, #tpu.memory_space<vmem>>, vector<8x128xf32>
      %c0_11 = arith.constant 0 : index
      %c0_12 = arith.constant 0 : index
      %13 = vector.load %arg5[%c0_11, %c0_12] : memref<1x128xf32, #tpu.memory_space<vmem>>, vector<1x128xf32>
      %14 = vector.broadcast %13 : vector<1x128xf32> to vector<8x128xf32>
      %15 = arith.addf %12, %14 : vector<8x128xf32>
      %cst_13 = arith.constant 0.000000e+00 : f32
      %16 = vector.broadcast %cst_13 : f32 to vector<8x128xf32>
      %17 = arith.maximumf %15, %16 : vector<8x128xf32>
      %c0_14 = arith.constant 0 : index
      %c0_15 = arith.constant 0 : index
      %18 = vector.load %arg6[%c0_14, %c0_15] : memref<8x128xf32, #tpu.memory_space<vmem>>, vector<8x128xf32>
      tpu.vector_store %arg6[%c0_14, %c0_15], %17 {strides = array<i32>} : memref<8x128xf32, #tpu.memory_space<vmem>>, vector<8x128xf32>,
    } else {
    }
    return
  }
  func.func @transform_0(%arg0: i32, %arg1: i32, %arg2: i32) -> (i32, i32) {
    %c0_i32 = arith.constant 0 : i32
    return %arg0, %arg2 : i32, i32
  }
  func.func @transform_1(%arg0: i32, %arg1: i32, %arg2: i32) -> (i32, i32) {
    %c0_i32 = arith.constant 0 : i32
    return %arg2, %arg1 : i32, i32
  }
  func.func @transform_2(%arg0: i32, %arg1: i32, %arg2: i32) -> (i32, i32) {
    %c0_i32 = arith.constant 0 : i32
    %c0_i32_0 = arith.constant 0 : i32
    return %c0_i32, %arg1 : i32, i32
  }
  func.func @transform_3(%arg0: i32, %arg1: i32, %arg2: i32) -> (i32, i32) {
    %c0_i32 = arith.constant 0 : i32
    return %arg0, %arg1 : i32, i32
  }
}

module attributes {stable_mosaic.version = 11 : i64} {
  func.func @_gemm_bias_act_kernel(%arg0: i32, %arg1: i32, %arg2: i32, %arg3: memref<8x128xf32, #tpu.memory_space<vmem>>, %arg4: memref<128x256xf32, #tpu.memory_space<vmem>>, %arg5: memref<1x256xf32, #tpu.memory_space<vmem>>, %arg6: memref<8x256xf32, #tpu.memory_space<vmem>>, %arg7: memref<8x256xf32, #tpu.memory_space<vmem>>) attributes {dimension_semantics = [#tpu.dimension_semantics<parallel>, #tpu.dimension_semantics<parallel>, #tpu.dimension_semantics<arbitrary>], iteration_bounds = array<i64: 1, 1, 1>, scalar_prefetch = 0 : i64, scratch_operands = 1 : i64, tpu.core_type = #tpu.core_type<tc>, window_params = [{transform_indices = @transform_0, window_bounds = array<i64: 8, 128>}, {transform_indices = @transform_1, window_bounds = array<i64: 128, 256>}, {transform_indices = @transform_2, window_bounds = array<i64: 1, 256>}, {transform_indices = @transform_3, window_bounds = array<i64: 8, 256>}]} {
    %c0_i32 = arith.constant 0 : i32
    %0 = arith.cmpi eq, %arg2, %c0_i32 : i32
    %1 = arith.extui %0 : i1 to i32
    %c0_i32_0 = arith.constant 0 : i32
    %2 = arith.cmpi ne, %1, %c0_i32_0 : i32
    scf.if %2 {
      %cst_10 = arith.constant 0.000000e+00 : f32
      %12 = vector.broadcast %cst_10 : f32 to vector<8x256xf32>
      %c0_11 = arith.constant 0 : index
      %c0_12 = arith.constant 0 : index
      %13 = vector.load %arg7[%c0_11, %c0_12] : memref<8x256xf32, #tpu.memory_space<vmem>>, vector<8x256xf32>
      tpu.vector_store %arg7[%c0_11, %c0_12], %12 {strides = array<i32>} : memref<8x256xf32, #tpu.memory_space<vmem>>, vector<8x256xf32>,
    } else {
    }
    %c0 = arith.constant 0 : index
    %c0_1 = arith.constant 0 : index
    %3 = vector.load %arg7[%c0, %c0_1] : memref<8x256xf32, #tpu.memory_space<vmem>>, vector<8x256xf32>
    %c0_2 = arith.constant 0 : index
    %c0_3 = arith.constant 0 : index
    %4 = vector.load %arg3[%c0_2, %c0_3] : memref<8x128xf32, #tpu.memory_space<vmem>>, vector<8x128xf32>
    %c0_4 = arith.constant 0 : index
    %c0_5 = arith.constant 0 : index
    %5 = vector.load %arg4[%c0_4, %c0_5] : memref<128x256xf32, #tpu.memory_space<vmem>>, vector<128x256xf32>
    %cst = arith.constant dense<0.000000e+00> : vector<8x256xf32>
    %6 = tpu.matmul %4, %5, %cst {dimension_numbers = #tpu.dot_dimension_numbers<[1], [0], [0], [1], [0, 0, 1, 1], [], []>} : vector<8x128xf32>, vector<128x256xf32>, vector<8x256xf32> -> vector<8x256xf32>
    %7 = arith.addf %3, %6 : vector<8x256xf32>
    %c0_6 = arith.constant 0 : index
    %c0_7 = arith.constant 0 : index
    %8 = vector.load %arg7[%c0_6, %c0_7] : memref<8x256xf32, #tpu.memory_space<vmem>>, vector<8x256xf32>
    tpu.vector_store %arg7[%c0_6, %c0_7], %7 {strides = array<i32>} : memref<8x256xf32, #tpu.memory_space<vmem>>, vector<8x256xf32>,
    %c0_i32_8 = arith.constant 0 : i32
    %9 = arith.cmpi eq, %arg2, %c0_i32_8 : i32
    %10 = arith.extui %9 : i1 to i32
    %c0_i32_9 = arith.constant 0 : i32
    %11 = arith.cmpi ne, %10, %c0_i32_9 : i32
    scf.if %11 {
      %c0_10 = arith.constant 0 : index
      %c0_11 = arith.constant 0 : index
      %12 = vector.load %arg7[%c0_10, %c0_11] : memref<8x256xf32, #tpu.memory_space<vmem>>, vector<8x256xf32>
      %c0_12 = arith.constant 0 : index
      %c0_13 = arith.constant 0 : index
      %13 = vector.load %arg5[%c0_12, %c0_13] : memref<1x256xf32, #tpu.memory_space<vmem>>, vector<1x256xf32>
      %14 = vector.broadcast %13 : vector<1x256xf32> to vector<8x256xf32>
      %15 = arith.addf %12, %14 : vector<8x256xf32>
      %cst_14 = arith.constant 0.000000e+00 : f32
      %16 = vector.broadcast %cst_14 : f32 to vector<8x256xf32>
      %17 = arith.maximumf %15, %16 : vector<8x256xf32>
      %c0_15 = arith.constant 0 : index
      %c0_16 = arith.constant 0 : index
      %18 = vector.load %arg6[%c0_15, %c0_16] : memref<8x256xf32, #tpu.memory_space<vmem>>, vector<8x256xf32>
      tpu.vector_store %arg6[%c0_15, %c0_16], %17 {strides = array<i32>} : memref<8x256xf32, #tpu.memory_space<vmem>>, vector<8x256xf32>,
    } else {
    }
    return
  }
  func.func @transform_0(%arg0: i32, %arg1: i32, %arg2: i32) -> (i32, i32) {
    %c0_i32 = arith.constant 0 : i32
    return %arg0, %arg2 : i32, i32
  }
  func.func @transform_1(%arg0: i32, %arg1: i32, %arg2: i32) -> (i32, i32) {
    %c0_i32 = arith.constant 0 : i32
    return %arg2, %arg1 : i32, i32
  }
  func.func @transform_2(%arg0: i32, %arg1: i32, %arg2: i32) -> (i32, i32) {
    %c0_i32 = arith.constant 0 : i32
    %c0_i32_0 = arith.constant 0 : i32
    return %c0_i32, %arg1 : i32, i32
  }
  func.func @transform_3(%arg0: i32, %arg1: i32, %arg2: i32) -> (i32, i32) {
    %c0_i32 = arith.constant 0 : i32
    return %arg0, %arg1 : i32, i32
  }
}

module attributes {stable_mosaic.version = 11 : i64} {
  func.func @_gemm_bias_act_kernel(%arg0: i32, %arg1: i32, %arg2: i32, %arg3: memref<8x256xf32, #tpu.memory_space<vmem>>, %arg4: memref<256x128xf32, #tpu.memory_space<vmem>>, %arg5: memref<1x128xf32, #tpu.memory_space<vmem>>, %arg6: memref<8x128xf32, #tpu.memory_space<vmem>>, %arg7: memref<8x128xf32, #tpu.memory_space<vmem>>) attributes {dimension_semantics = [#tpu.dimension_semantics<parallel>, #tpu.dimension_semantics<parallel>, #tpu.dimension_semantics<arbitrary>], iteration_bounds = array<i64: 1, 1, 1>, scalar_prefetch = 0 : i64, scratch_operands = 1 : i64, tpu.core_type = #tpu.core_type<tc>, window_params = [{transform_indices = @transform_0, window_bounds = array<i64: 8, 256>}, {transform_indices = @transform_1, window_bounds = array<i64: 256, 128>}, {transform_indices = @transform_2, window_bounds = array<i64: 1, 128>}, {transform_indices = @transform_3, window_bounds = array<i64: 8, 128>}]} {
    %c0_i32 = arith.constant 0 : i32
    %0 = arith.cmpi eq, %arg2, %c0_i32 : i32
    %1 = arith.extui %0 : i1 to i32
    %c0_i32_0 = arith.constant 0 : i32
    %2 = arith.cmpi ne, %1, %c0_i32_0 : i32
    scf.if %2 {
      %cst_10 = arith.constant 0.000000e+00 : f32
      %12 = vector.broadcast %cst_10 : f32 to vector<8x128xf32>
      %c0_11 = arith.constant 0 : index
      %c0_12 = arith.constant 0 : index
      %13 = vector.load %arg7[%c0_11, %c0_12] : memref<8x128xf32, #tpu.memory_space<vmem>>, vector<8x128xf32>
      tpu.vector_store %arg7[%c0_11, %c0_12], %12 {strides = array<i32>} : memref<8x128xf32, #tpu.memory_space<vmem>>, vector<8x128xf32>,
    } else {
    }
    %c0 = arith.constant 0 : index
    %c0_1 = arith.constant 0 : index
    %3 = vector.load %arg7[%c0, %c0_1] : memref<8x128xf32, #tpu.memory_space<vmem>>, vector<8x128xf32>
    %c0_2 = arith.constant 0 : index
    %c0_3 = arith.constant 0 : index
    %4 = vector.load %arg3[%c0_2, %c0_3] : memref<8x256xf32, #tpu.memory_space<vmem>>, vector<8x256xf32>
    %c0_4 = arith.constant 0 : index
    %c0_5 = arith.constant 0 : index
    %5 = vector.load %arg4[%c0_4, %c0_5] : memref<256x128xf32, #tpu.memory_space<vmem>>, vector<256x128xf32>
    %cst = arith.constant dense<0.000000e+00> : vector<8x128xf32>
    %6 = tpu.matmul %4, %5, %cst {dimension_numbers = #tpu.dot_dimension_numbers<[1], [0], [0], [1], [0, 0, 1, 1], [], []>} : vector<8x256xf32>, vector<256x128xf32>, vector<8x128xf32> -> vector<8x128xf32>
    %7 = arith.addf %3, %6 : vector<8x128xf32>
    %c0_6 = arith.constant 0 : index
    %c0_7 = arith.constant 0 : index
    %8 = vector.load %arg7[%c0_6, %c0_7] : memref<8x128xf32, #tpu.memory_space<vmem>>, vector<8x128xf32>
    tpu.vector_store %arg7[%c0_6, %c0_7], %7 {strides = array<i32>} : memref<8x128xf32, #tpu.memory_space<vmem>>, vector<8x128xf32>,
    %c0_i32_8 = arith.constant 0 : i32
    %9 = arith.cmpi eq, %arg2, %c0_i32_8 : i32
    %10 = arith.extui %9 : i1 to i32
    %c0_i32_9 = arith.constant 0 : i32
    %11 = arith.cmpi ne, %10, %c0_i32_9 : i32
    scf.if %11 {
      %c0_10 = arith.constant 0 : index
      %c0_11 = arith.constant 0 : index
      %12 = vector.load %arg7[%c0_10, %c0_11] : memref<8x128xf32, #tpu.memory_space<vmem>>, vector<8x128xf32>
      %c0_12 = arith.constant 0 : index
      %c0_13 = arith.constant 0 : index
      %13 = vector.load %arg5[%c0_12, %c0_13] : memref<1x128xf32, #tpu.memory_space<vmem>>, vector<1x128xf32>
      %14 = vector.broadcast %13 : vector<1x128xf32> to vector<8x128xf32>
      %15 = arith.addf %12, %14 : vector<8x128xf32>
      %cst_14 = arith.constant 2.000000e+01 : f32
      %16 = vector.broadcast %cst_14 : f32 to vector<8x128xf32>
      %17 = arith.cmpf ogt, %15, %16 : vector<8x128xf32>
      %cst_15 = arith.constant 2.000000e+01 : f32
      %18 = vector.broadcast %cst_15 : f32 to vector<8x128xf32>
      %19 = arith.minimumf %15, %18 : vector<8x128xf32>
      %20 = math.exp %19 : vector<8x128xf32>
      %cst_16 = arith.constant 1.000000e+00 : f32
      %21 = vector.broadcast %cst_16 : f32 to vector<8x128xf32>
      %22 = arith.addf %21, %20 : vector<8x128xf32>
      %23 = math.log %22 : vector<8x128xf32>
      %24 = arith.select %17, %15, %23 : vector<8x128xi1>, vector<8x128xf32>
      %c0_17 = arith.constant 0 : index
      %c0_18 = arith.constant 0 : index
      %25 = vector.load %arg6[%c0_17, %c0_18] : memref<8x128xf32, #tpu.memory_space<vmem>>, vector<8x128xf32>
      tpu.vector_store %arg6[%c0_17, %c0_18], %24 {strides = array<i32>} : memref<8x128xf32, #tpu.memory_space<vmem>>, vector<8x128xf32>,
    } else {
    }
    return
  }
  func.func @transform_0(%arg0: i32, %arg1: i32, %arg2: i32) -> (i32, i32) {
    %c0_i32 = arith.constant 0 : i32
    return %arg0, %arg2 : i32, i32
  }
  func.func @transform_1(%arg0: i32, %arg1: i32, %arg2: i32) -> (i32, i32) {
    %c0_i32 = arith.constant 0 : i32
    return %arg2, %arg1 : i32, i32
  }
  func.func @transform_2(%arg0: i32, %arg1: i32, %arg2: i32) -> (i32, i32) {
    %c0_i32 = arith.constant 0 : i32
    %c0_i32_0 = arith.constant 0 : i32
    return %c0_i32, %arg1 : i32, i32
  }
  func.func @transform_3(%arg0: i32, %arg1: i32, %arg2: i32) -> (i32, i32) {
    %c0_i32 = arith.constant 0 : i32
    return %arg0, %arg1 : i32, i32
  }
}

module attributes {stable_mosaic.version = 11 : i64} {
  func.func @_gemm_bias_act_kernel(%arg0: i32, %arg1: i32, %arg2: i32, %arg3: memref<8x256xf32, #tpu.memory_space<vmem>>, %arg4: memref<256x128xf32, #tpu.memory_space<vmem>>, %arg5: memref<1x128xf32, #tpu.memory_space<vmem>>, %arg6: memref<8x128xf32, #tpu.memory_space<vmem>>, %arg7: memref<8x128xf32, #tpu.memory_space<vmem>>) attributes {dimension_semantics = [#tpu.dimension_semantics<parallel>, #tpu.dimension_semantics<parallel>, #tpu.dimension_semantics<arbitrary>], iteration_bounds = array<i64: 1, 1, 1>, scalar_prefetch = 0 : i64, scratch_operands = 1 : i64, tpu.core_type = #tpu.core_type<tc>, window_params = [{transform_indices = @transform_0, window_bounds = array<i64: 8, 256>}, {transform_indices = @transform_1, window_bounds = array<i64: 256, 128>}, {transform_indices = @transform_2, window_bounds = array<i64: 1, 128>}, {transform_indices = @transform_3, window_bounds = array<i64: 8, 128>}]} {
    %c0_i32 = arith.constant 0 : i32
    %0 = arith.cmpi eq, %arg2, %c0_i32 : i32
    %1 = arith.extui %0 : i1 to i32
    %c0_i32_0 = arith.constant 0 : i32
    %2 = arith.cmpi ne, %1, %c0_i32_0 : i32
    scf.if %2 {
      %cst_10 = arith.constant 0.000000e+00 : f32
      %12 = vector.broadcast %cst_10 : f32 to vector<8x128xf32>
      %c0_11 = arith.constant 0 : index
      %c0_12 = arith.constant 0 : index
      %13 = vector.load %arg7[%c0_11, %c0_12] : memref<8x128xf32, #tpu.memory_space<vmem>>, vector<8x128xf32>
      tpu.vector_store %arg7[%c0_11, %c0_12], %12 {strides = array<i32>} : memref<8x128xf32, #tpu.memory_space<vmem>>, vector<8x128xf32>,
    } else {
    }
    %c0 = arith.constant 0 : index
    %c0_1 = arith.constant 0 : index
    %3 = vector.load %arg7[%c0, %c0_1] : memref<8x128xf32, #tpu.memory_space<vmem>>, vector<8x128xf32>
    %c0_2 = arith.constant 0 : index
    %c0_3 = arith.constant 0 : index
    %4 = vector.load %arg3[%c0_2, %c0_3] : memref<8x256xf32, #tpu.memory_space<vmem>>, vector<8x256xf32>
    %c0_4 = arith.constant 0 : index
    %c0_5 = arith.constant 0 : index
    %5 = vector.load %arg4[%c0_4, %c0_5] : memref<256x128xf32, #tpu.memory_space<vmem>>, vector<256x128xf32>
    %cst = arith.constant dense<0.000000e+00> : vector<8x128xf32>
    %6 = tpu.matmul %4, %5, %cst {dimension_numbers = #tpu.dot_dimension_numbers<[1], [0], [0], [1], [0, 0, 1, 1], [], []>} : vector<8x256xf32>, vector<256x128xf32>, vector<8x128xf32> -> vector<8x128xf32>
    %7 = arith.addf %3, %6 : vector<8x128xf32>
    %c0_6 = arith.constant 0 : index
    %c0_7 = arith.constant 0 : index
    %8 = vector.load %arg7[%c0_6, %c0_7] : memref<8x128xf32, #tpu.memory_space<vmem>>, vector<8x128xf32>
    tpu.vector_store %arg7[%c0_6, %c0_7], %7 {strides = array<i32>} : memref<8x128xf32, #tpu.memory_space<vmem>>, vector<8x128xf32>,
    %c0_i32_8 = arith.constant 0 : i32
    %9 = arith.cmpi eq, %arg2, %c0_i32_8 : i32
    %10 = arith.extui %9 : i1 to i32
    %c0_i32_9 = arith.constant 0 : i32
    %11 = arith.cmpi ne, %10, %c0_i32_9 : i32
    scf.if %11 {
      %c0_10 = arith.constant 0 : index
      %c0_11 = arith.constant 0 : index
      %12 = vector.load %arg7[%c0_10, %c0_11] : memref<8x128xf32, #tpu.memory_space<vmem>>, vector<8x128xf32>
      %c0_12 = arith.constant 0 : index
      %c0_13 = arith.constant 0 : index
      %13 = vector.load %arg5[%c0_12, %c0_13] : memref<1x128xf32, #tpu.memory_space<vmem>>, vector<1x128xf32>
      %14 = vector.broadcast %13 : vector<1x128xf32> to vector<8x128xf32>
      %15 = arith.addf %12, %14 : vector<8x128xf32>
      %cst_14 = arith.constant 5.000000e+00 : f32
      %16 = vector.broadcast %cst_14 : f32 to vector<8x128xf32>
      %17 = arith.cmpf ogt, %15, %16 : vector<8x128xf32>
      %cst_15 = arith.constant 5.000000e+00 : f32
      %18 = vector.broadcast %cst_15 : f32 to vector<8x128xf32>
      %19 = arith.minimumf %15, %18 : vector<8x128xf32>
      %20 = math.exp %19 : vector<8x128xf32>
      %cst_16 = arith.constant 1.000000e+00 : f32
      %21 = vector.broadcast %cst_16 : f32 to vector<8x128xf32>
      %22 = arith.addf %21, %20 : vector<8x128xf32>
      %23 = math.log %22 : vector<8x128xf32>
      %24 = arith.select %17, %15, %23 : vector<8x128xi1>, vector<8x128xf32>
      %c0_17 = arith.constant 0 : index
      %c0_18 = arith.constant 0 : index
      %25 = vector.load %arg6[%c0_17, %c0_18] : memref<8x128xf32, #tpu.memory_space<vmem>>, vector<8x128xf32>
      tpu.vector_store %arg6[%c0_17, %c0_18], %24 {strides = array<i32>} : memref<8x128xf32, #tpu.memory_space<vmem>>, vector<8x128xf32>,
    } else {
    }
    return
  }
  func.func @transform_0(%arg0: i32, %arg1: i32, %arg2: i32) -> (i32, i32) {
    %c0_i32 = arith.constant 0 : i32
    return %arg0, %arg2 : i32, i32
  }
  func.func @transform_1(%arg0: i32, %arg1: i32, %arg2: i32) -> (i32, i32) {
    %c0_i32 = arith.constant 0 : i32
    return %arg2, %arg1 : i32, i32
  }
  func.func @transform_2(%arg0: i32, %arg1: i32, %arg2: i32) -> (i32, i32) {
    %c0_i32 = arith.constant 0 : i32
    %c0_i32_0 = arith.constant 0 : i32
    return %c0_i32, %arg1 : i32, i32
  }
  func.func @transform_3(%arg0: i32, %arg1: i32, %arg2: i32) -> (i32, i32) {
    %c0_i32 = arith.constant 0 : i32
    return %arg0, %arg1 : i32, i32
  }
}

module attributes {stable_mosaic.version = 11 : i64} {
  func.func @_gemm_bias_act_kernel(%arg0: i32, %arg1: i32, %arg2: i32, %arg3: memref<8x256xf32, #tpu.memory_space<vmem>>, %arg4: memref<256x128xf32, #tpu.memory_space<vmem>>, %arg5: memref<1x128xf32, #tpu.memory_space<vmem>>, %arg6: memref<8x128xf32, #tpu.memory_space<vmem>>, %arg7: memref<8x128xf32, #tpu.memory_space<vmem>>) attributes {dimension_semantics = [#tpu.dimension_semantics<parallel>, #tpu.dimension_semantics<parallel>, #tpu.dimension_semantics<arbitrary>], iteration_bounds = array<i64: 1, 1, 1>, scalar_prefetch = 0 : i64, scratch_operands = 1 : i64, tpu.core_type = #tpu.core_type<tc>, window_params = [{transform_indices = @transform_0, window_bounds = array<i64: 8, 256>}, {transform_indices = @transform_1, window_bounds = array<i64: 256, 128>}, {transform_indices = @transform_2, window_bounds = array<i64: 1, 128>}, {transform_indices = @transform_3, window_bounds = array<i64: 8, 128>}]} {
    %c0_i32 = arith.constant 0 : i32
    %0 = arith.cmpi eq, %arg2, %c0_i32 : i32
    %1 = arith.extui %0 : i1 to i32
    %c0_i32_0 = arith.constant 0 : i32
    %2 = arith.cmpi ne, %1, %c0_i32_0 : i32
    scf.if %2 {
      %cst_10 = arith.constant 0.000000e+00 : f32
      %12 = vector.broadcast %cst_10 : f32 to vector<8x128xf32>
      %c0_11 = arith.constant 0 : index
      %c0_12 = arith.constant 0 : index
      %13 = vector.load %arg7[%c0_11, %c0_12] : memref<8x128xf32, #tpu.memory_space<vmem>>, vector<8x128xf32>
      tpu.vector_store %arg7[%c0_11, %c0_12], %12 {strides = array<i32>} : memref<8x128xf32, #tpu.memory_space<vmem>>, vector<8x128xf32>,
    } else {
    }
    %c0 = arith.constant 0 : index
    %c0_1 = arith.constant 0 : index
    %3 = vector.load %arg7[%c0, %c0_1] : memref<8x128xf32, #tpu.memory_space<vmem>>, vector<8x128xf32>
    %c0_2 = arith.constant 0 : index
    %c0_3 = arith.constant 0 : index
    %4 = vector.load %arg3[%c0_2, %c0_3] : memref<8x256xf32, #tpu.memory_space<vmem>>, vector<8x256xf32>
    %c0_4 = arith.constant 0 : index
    %c0_5 = arith.constant 0 : index
    %5 = vector.load %arg4[%c0_4, %c0_5] : memref<256x128xf32, #tpu.memory_space<vmem>>, vector<256x128xf32>
    %cst = arith.constant dense<0.000000e+00> : vector<8x128xf32>
    %6 = tpu.matmul %4, %5, %cst {dimension_numbers = #tpu.dot_dimension_numbers<[1], [0], [0], [1], [0, 0, 1, 1], [], []>} : vector<8x256xf32>, vector<256x128xf32>, vector<8x128xf32> -> vector<8x128xf32>
    %7 = arith.addf %3, %6 : vector<8x128xf32>
    %c0_6 = arith.constant 0 : index
    %c0_7 = arith.constant 0 : index
    %8 = vector.load %arg7[%c0_6, %c0_7] : memref<8x128xf32, #tpu.memory_space<vmem>>, vector<8x128xf32>
    tpu.vector_store %arg7[%c0_6, %c0_7], %7 {strides = array<i32>} : memref<8x128xf32, #tpu.memory_space<vmem>>, vector<8x128xf32>,
    %c0_i32_8 = arith.constant 0 : i32
    %9 = arith.cmpi eq, %arg2, %c0_i32_8 : i32
    %10 = arith.extui %9 : i1 to i32
    %c0_i32_9 = arith.constant 0 : i32
    %11 = arith.cmpi ne, %10, %c0_i32_9 : i32
    scf.if %11 {
      %c0_10 = arith.constant 0 : index
      %c0_11 = arith.constant 0 : index
      %12 = vector.load %arg7[%c0_10, %c0_11] : memref<8x128xf32, #tpu.memory_space<vmem>>, vector<8x128xf32>
      %c0_12 = arith.constant 0 : index
      %c0_13 = arith.constant 0 : index
      %13 = vector.load %arg5[%c0_12, %c0_13] : memref<1x128xf32, #tpu.memory_space<vmem>>, vector<1x128xf32>
      %14 = vector.broadcast %13 : vector<1x128xf32> to vector<8x128xf32>
      %15 = arith.addf %12, %14 : vector<8x128xf32>
      %16 = tpu.iota {dimensions = array<i32: 1>} : vector<8x128xi32>
      %c4_i32 = arith.constant 4 : i32
      %17 = vector.broadcast %c4_i32 : i32 to vector<8x128xi32>
      %18 = arith.cmpi slt, %16, %17 : vector<8x128xi32>
      %cst_14 = arith.constant 1.000000e+00 : f32
      %19 = vector.broadcast %cst_14 : f32 to vector<8x128xf32>
      %20 = arith.divf %15, %19 : vector<8x128xf32>
      %cst_15 = arith.constant -1.000000e+30 : f32
      %21 = vector.broadcast %cst_15 : f32 to vector<8x128xf32>
      %22 = arith.select %18, %20, %21 : vector<8x128xi1>, vector<8x128xf32>
      %cst_16 = arith.constant dense<0xFF800000> : vector<8xf32>
      %23 = vector.multi_reduction <maximumf>, %22, %cst_16 [1] : vector<8x128xf32> to vector<8xf32>
      %24 = vector.shape_cast %23 : vector<8xf32> to vector<8x1xf32>
      %25 = vector.broadcast %24 : vector<8x1xf32> to vector<8x128xf32>
      %26 = arith.subf %22, %25 : vector<8x128xf32>
      %27 = math.exp %26 : vector<8x128xf32>
      %cst_17 = arith.constant dense<0.000000e+00> : vector<8xf32>
      %28 = vector.multi_reduction <add>, %27, %cst_17 [1] : vector<8x128xf32> to vector<8xf32>
      %29 = vector.shape_cast %28 : vector<8xf32> to vector<8x1xf32>
      %30 = tpu.reciprocal %29 {approx = true} : vector<8x1xf32> -> vector<8x1xf32>
      %31 = vector.broadcast %30 : vector<8x1xf32> to vector<8x128xf32>
      %32 = arith.mulf %27, %31 : vector<8x128xf32>
      %c0_18 = arith.constant 0 : index
      %c0_19 = arith.constant 0 : index
      %33 = vector.load %arg6[%c0_18, %c0_19] : memref<8x128xf32, #tpu.memory_space<vmem>>, vector<8x128xf32>
      tpu.vector_store %arg6[%c0_18, %c0_19], %32 {strides = array<i32>} : memref<8x128xf32, #tpu.memory_space<vmem>>, vector<8x128xf32>,
    } else {
    }
    return
  }
  func.func @transform_0(%arg0: i32, %arg1: i32, %arg2: i32) -> (i32, i32) {
    %c0_i32 = arith.constant 0 : i32
    return %arg0, %arg2 : i32, i32
  }
  func.func @transform_1(%arg0: i32, %arg1: i32, %arg2: i32) -> (i32, i32) {
    %c0_i32 = arith.constant 0 : i32
    return %arg2, %arg1 : i32, i32
  }
  func.func @transform_2(%arg0: i32, %arg1: i32, %arg2: i32) -> (i32, i32) {
    %c0_i32 = arith.constant 0 : i32
    %c0_i32_0 = arith.constant 0 : i32
    return %c0_i32, %arg1 : i32, i32
  }
  func.func @transform_3(%arg0: i32, %arg1: i32, %arg2: i32) -> (i32, i32) {
    %c0_i32 = arith.constant 0 : i32
    return %arg0, %arg1 : i32, i32
  }
}

</mosaic_0001>

<bundles_post_ra>
// kernel: slosh_forward.10
= control target key start
LH: loop header
LB: loop body
LE: loop exit
PB: predicated region body
PF: predicated region fallthrough
CT: control target
= control target key end

     0   :  { %8 = vsyncpa [#allocation4], 0  ;;  %s1548_s0 = inlined_call_operand.vmem [shape: f32[32768,128], index: 0, kind: input, shape index: {}]   ;;  %s1549_s1 = inlined_call_operand.hbm [shape: f32[128,128], index: 1, kind: input, shape index: {}]   ;;  %s1550_s2 = inlined_call_operand.hbm [shape: f32[1,128], index: 2, kind: input, shape index: {}]   ;;  %s1551_s3 = inlined_call_operand.vmem [shape: f32[32768,128], index: 3, kind: output, shape index: {}]  }
   0x1   :  { %9 = vsyncpa [#allocation6], 0  ;;  %s1326_s12 = smov 0   ;;  %s1328_s13 = smov 0  }
   0x2   :  { %s1330_s14 = smov 0  }
   0x3 LB: > { %s975_s15 = sadd.s32 4294967295, %s1300_s14   ;;  %s34_s16 = sadd.s32 1, %s1296_s13  ;;  %s1300_s14 = sphi %s1330_s14, %s15_s14   ;;  %s1296_s13 = sphi %s1328_s13, %s1561_s13   ;;  %s1292_s12 = sphi %s1326_s12, %s1560_s12  }
   0x4   : > { %p36_p0 = scmp.ge.s32.totalorder %s34_s16, 128  ;;  %p977_p1 = scmp.ge.s32.totalorder %s1300_s14, 1 }
   0x5   : > { %p149_p2 = scmp.lt.s32.totalorder %s1300_s14, 129  ;;  %p1351_p4 = scmp.eq.s32.totalorder %s975_s15, 0 }
   0x6   : > { %s1563_s16 = smov (%p36_p0, %s34_s16), 0  ;;  %s1302_s19 = smov [#allocation3]  }
   0x7   : > { %p1347_p3 = pnand %p977_p1, %p149_p2  ;;  %s165_s20 = sshll.u32 %s1302_s19, 4  ;;  %s166_s20 = int_to_ptr.vmem [resolvable:$true] %s165_s20 }
   0x8   : > { %s1556_s18 = scalar_select %p1351_p4, 1, 0 }
   0x9   : > { %s1555_s17 = scalar_select %p1347_p3, 1, 0 }
   0xa   : > { %p1175_p5 = pneg %p1347_p3  ;;  %s1303_s22 = smov [#allocation5]  }
   0xb   : > { %s181_s23 = sshll.u32 %s1303_s22, 4  ;;  %s1214_s26 = scalar_lea.hbm %s1549_s1, 2048  ;;  %s1363_s23 = int_to_ptr.vmem [resolvable:$true] %s181_s23 }
   0xc   : > { %p1359_p6 = pnand %p1351_p4, %p1175_p5  ;;  %p1215_p7 = scmp.ne.s32.totalorder %s1549_s1, %s1214_s26 }
   0xd   : > { %p1221_p11 = scmp.lt.u32.totalorder %s1214_s26, %s1549_s1 }
   0xe   : > { %p1216_p8 = pneg %p1359_p6 }
  0x10   : > { %p1217_p9 = pnand %p1216_p8, %p1215_p7 }
  0x12   : > { %p1218_p10 = pneg %p1217_p9 }
  0x14   : > { %p1223_p12 = pnand %p1221_p11, %p1218_p10 }
  0x16   : > { %1226 = shalt.err (!%p1223_p12)
}
  0x17   : > { %s1227_s4 = scalar_lea.vmem %s166_s20, 2048  ;;  %p1235_p2 = scmp.lt.s32.totalorder %s166_s20, %s166_s20 }
  0x18   : > { %p1228_p13 = scmp.ne.s32.totalorder %s166_s20, %s1227_s4  ;;  %p1236_p5 = scmp.lt.s32.totalorder %s1227_s4, %s1227_s4 }
  0x1a   : > { %p1230_p0 = pnand %p1228_p13, %p1216_p8  ;;  %p1237_p4 = por %p1236_p5, %p1235_p2 }
  0x1c   : > { %p1231_p1 = pneg %p1230_p0 }
  0x1e   : > { %p1238_p3 = pnand %p1237_p4, %p1231_p1 }
  0x20   : > { %1241 = shalt.err (!%p1238_p3)
}
  0x21   : > { %s1304_s5 = smov 128   ;;  %s1305_s6 = smov 8  }
  0x22   : > { %1178 = dma.hbm_to_vmem [thread:$0]  (!%p1359_p6), %s1549_s1, 2048, %s166_s20, [#allocation4], %s1304_s5, %s1304_s5, %s1305_s6  }
  0x23   : > { %s1242_s11 = scalar_lea.hbm %s1550_s2, 16 }
  0x24   : > { %p1243_p7 = scmp.ne.s32.totalorder %s1550_s2, %s1242_s11  ;;  %p1249_p9 = scmp.lt.u32.totalorder %s1242_s11, %s1550_s2 }
  0x26   : > { %p1245_p3 = pnand %p1243_p7, %p1216_p8 }
  0x28   : > { %p1246_p4 = pneg %p1245_p3 }
  0x2a   : > { %p1251_p10 = pnand %p1249_p9, %p1246_p4 }
  0x2c   : > { %1254 = shalt.err (!%p1251_p10)
}
  0x2d   : > { %s1255_s20 = scalar_lea.vmem %s1363_s23, 16  ;;  %s1262_s25 = scalar_lea.vmem %s1363_s23, 32 }
  0x2e   : > { %p1256_p11 = scmp.ne.s32.totalorder %s1363_s23, %s1255_s20  ;;  %p1263_p0 = scmp.lt.s32.totalorder %s1363_s23, %s1363_s23 }
  0x2f   : > { %p1264_p1 = scmp.lt.s32.totalorder %s1262_s25, %s1255_s20 }
  0x30   : > { %p1258_p12 = pnand %p1256_p11, %p1216_p8 }
  0x31   : > { %p1265_p2 = por %p1264_p1, %p1263_p0 }
  0x32   : > { %p1259_p13 = pneg %p1258_p12 }
  0x34   : > { %p1266_p5 = pnand %p1265_p2, %p1259_p13 }
  0x36   : > { %1269 = shalt.err (!%p1266_p5)
}
  0x37   : > { %1181 = dma.hbm_to_vmem [thread:$0]  (!%p1359_p6), %s1550_s2, 16, %s1363_s23, [#allocation6]  }
  0x38   : > { %p1558_p7 = scmp.ne.s32.totalorder %s1555_s17, 0 }
  0x39   : > { %p1559_p8 = scmp.ne.s32.totalorder (!%p1558_p7), %s1556_s18, 0 }
  0x3a   : > { %206 = sbr.rel (%p1558_p7) target bundleno = 353 (0x161), region = 32 }
  0x41   : > { %1283 = dma.done.wait (%p1559_p8), [#allocation4], 2048  }
  0x42   : > { %1285 = vsyncadd (%p1559_p8), [#allocation4], 4294965248 }
  0x43   : > { %1287 = dma.done.wait (%p1559_p8), [#allocation6], 16  }
  0x44   : > { %1289 = vsyncadd (%p1559_p8), [#allocation6], 4294967280  ;;  %s984_s21 = sshll.u32 %s1292_s12, 5  ;;  %v359_v0 = vld [vmem:[#allocation3] sm:$0xff]  ;;  %v360_v1 = vld [vmem:[#allocation3 + $0x8] sm:$0xff] }
  0x45   : > { %p241_p3 = scmp.lt.s32.totalorder %s984_s21, 4095  ;;  %v361_v2 = vld [vmem:[#allocation3 + $0x10] sm:$0xff]  ;;  %v1119_v3 = vpack.c.bf16 %v360_v1, %v359_v0  ;;  %v362_v4 = vld [vmem:[#allocation3 + $0x18] sm:$0xff]  ;;  %v363_v6 = vld [vmem:[#allocation3 + $0x20] sm:$0xff] }
  0x46   : > { %v1123_v5 = vpack.c.bf16 %v362_v4, %v361_v2  ;;  %v364_v7 = vld [vmem:[#allocation3 + $0x28] sm:$0xff]  ;;  %v365_v11 = vld [vmem:[#allocation3 + $0x30] sm:$0xff]  ;;  %v366_v12 = vld [vmem:[#allocation3 + $0x38] sm:$0xff] }
  0x47   : > { %s1565_s21 = smov (!%p241_p3, %s984_s21), 4095  ;;  %1120 = vmatprep.subr.bf16.mxu0 %v1119_v3  ;;  %1151 = vmatprep.subr.bf16.mxu1 %v1119_v3  ;;  %v1127_v8 = vpack.c.bf16 %v364_v7, %v363_v6  ;;  %v1131_v13 = vpack.c.bf16 %v366_v12, %v365_v11  ;;  %v367_v14 = vld [vmem:[#allocation3 + $0x40] sm:$0xff]  ;;  %v368_v15 = vld [vmem:[#allocation3 + $0x48] sm:$0xff]  ;;  %v369_v17 = vld [vmem:[#allocation3 + $0x50] sm:$0xff] }
  0x48   : > { %s985_s17 = sshll.u32 %s1565_s21, 3  ;;  %1122 = vmatpush3.bf16.msra.mxu0 %v1119_v3  ;;  %1159 = vmatpush3.bf16.msra.mxu1 %v1119_v3  ;;  %v1135_v16 = vpack.c.bf16 %v368_v15, %v367_v14  ;;  %v370_v18 = vld [vmem:[#allocation3 + $0x58] sm:$0xff]  ;;  %v371_v20 = vld [vmem:[#allocation3 + $0x60] sm:$0xff]  ;;  %v372_v21 = vld [vmem:[#allocation3 + $0x68] sm:$0xff] }
  0x49   : > { %s1432_s28 = scalar_lea.vmem %s1548_s0, %s985_s17  ;;  %1124 = vmatprep.subr.bf16.mxu0 %v1123_v5  ;;  %1152 = vmatprep.subr.bf16.mxu1 %v1123_v5  ;;  %v1139_v19 = vpack.c.bf16 %v370_v18, %v369_v17  ;;  %v1143_v22 = vpack.c.bf16 %v372_v21, %v371_v20  ;;  %v373_v23 = vld [vmem:[#allocation3 + $0x70] sm:$0xff]  ;;  %v374_v24 = vld [vmem:[#allocation3 + $0x78] sm:$0xff]  ;;  %v1466_v56 = vld [vmem:[#allocation5] ss:$0 sm:$0xff]  ;;  %s1477_s30 = scalar_lea.vmem %s1551_s3, %s985_s17 }
  0x4a   : > { %v327_v9 = vld [vmem:[%s1432_s28] sm:$0xff]  ;;  %v1147_v25 = vpack.c.bf16 %v374_v24, %v373_v23  ;;  %v328_v26 = vld [vmem:[%s1432_s28 + $0x8] sm:$0xff]  ;;  %v329_v28 = vld [vmem:[%s1432_s28 + $0x10] sm:$0xff] }
  0x4b   : > { %v343_v10 = vld [vmem:[%s1432_s28 + $0x80] sm:$0xff]  ;;  %1071 = vmatprep.mubr.f32.mxu0 %v327_v9  ;;  %v344_v27 = vld [vmem:[%s1432_s28 + $0x88] sm:$0xff]  ;;  %v345_v29 = vld [vmem:[%s1432_s28 + $0x90] sm:$0xff] }
  0x4c   : > { %1095 = vmatprep.mubr.f32.mxu1 %v343_v10  ;;  %1126 = vmatpush3.bf16.msra.mxu0 %v1123_v5  ;;  %v330_v30 = vld [vmem:[%s1432_s28 + $0x18] sm:$0xff]  ;;  %v331_v32 = vld [vmem:[%s1432_s28 + $0x20] sm:$0xff]  ;;  %v332_v34 = vld [vmem:[%s1432_s28 + $0x28] sm:$0xff] }
  0x4d   : > { %1160 = vmatpush3.bf16.msra.mxu1 %v1123_v5  ;;  %1128 = vmatprep.subr.bf16.mxu0 %v1127_v8  ;;  %v346_v31 = vld [vmem:[%s1432_s28 + $0x98] sm:$0xff]  ;;  %v347_v33 = vld [vmem:[%s1432_s28 + $0xa0] sm:$0xff]  ;;  %v348_v35 = vld [vmem:[%s1432_s28 + $0xa8] sm:$0xff] }
  0x4e   : > { %1153 = vmatprep.subr.bf16.mxu1 %v1127_v8  ;;  %v333_v36 = vld [vmem:[%s1432_s28 + $0x30] sm:$0xff]  ;;  %v334_v38 = vld [vmem:[%s1432_s28 + $0x38] sm:$0xff]  ;;  %v335_v40 = vld [vmem:[%s1432_s28 + $0x40] sm:$0xff] }
  0x4f   : > { %v349_v37 = vld [vmem:[%s1432_s28 + $0xb0] sm:$0xff]  ;;  %v350_v39 = vld [vmem:[%s1432_s28 + $0xb8] sm:$0xff]  ;;  %v351_v41 = vld [vmem:[%s1432_s28 + $0xc0] sm:$0xff] }
  0x50   : > { %1130 = vmatpush3.bf16.msra.mxu0 %v1127_v8  ;;  %v336_v42 = vld [vmem:[%s1432_s28 + $0x48] sm:$0xff]  ;;  %v337_v44 = vld [vmem:[%s1432_s28 + $0x50] sm:$0xff]  ;;  %v338_v46 = vld [vmem:[%s1432_s28 + $0x58] sm:$0xff] }
  0x51   : > { %1161 = vmatpush3.bf16.msra.mxu1 %v1127_v8  ;;  %1132 = vmatprep.subr.bf16.mxu0 %v1131_v13  ;;  %v352_v43 = vld [vmem:[%s1432_s28 + $0xc8] sm:$0xff]  ;;  %v353_v45 = vld [vmem:[%s1432_s28 + $0xd0] sm:$0xff]  ;;  %v354_v47 = vld [vmem:[%s1432_s28 + $0xd8] sm:$0xff] }
  0x52   : > { %1154 = vmatprep.subr.bf16.mxu1 %v1131_v13  ;;  %v339_v48 = vld [vmem:[%s1432_s28 + $0x60] sm:$0xff]  ;;  %v340_v50 = vld [vmem:[%s1432_s28 + $0x68] sm:$0xff]  ;;  %v341_v52 = vld [vmem:[%s1432_s28 + $0x70] sm:$0xff] }
  0x53   : > { %v355_v49 = vld [vmem:[%s1432_s28 + $0xe0] sm:$0xff]  ;;  %v356_v51 = vld [vmem:[%s1432_s28 + $0xe8] sm:$0xff]  ;;  %v357_v53 = vld [vmem:[%s1432_s28 + $0xf0] sm:$0xff] }
  0x54   : > { %1134 = vmatpush3.bf16.msra.mxu0 %v1131_v13  ;;  %v342_v54 = vld [vmem:[%s1432_s28 + $0x78] sm:$0xff] }
  0x55   : > { %1162 = vmatpush3.bf16.msra.mxu1 %v1131_v13  ;;  %1136 = vmatprep.subr.bf16.mxu0 %v1135_v16  ;;  %v358_v55 = vld [vmem:[%s1432_s28 + $0xf8] sm:$0xff] }
  0x56   : > { %1155 = vmatprep.subr.bf16.mxu1 %v1135_v16 }
  0x58   : > { %1138 = vmatpush3.bf16.msra.mxu0 %v1135_v16 }
  0x59   : > { %1163 = vmatpush3.bf16.msra.mxu1 %v1135_v16  ;;  %1140 = vmatprep.subr.bf16.mxu0 %v1139_v19 }
  0x5a   : > { %1156 = vmatprep.subr.bf16.mxu1 %v1139_v19 }
  0x5c   : > { %1142 = vmatpush3.bf16.msra.mxu0 %v1139_v19 }
  0x5d   : > { %1164 = vmatpush3.bf16.msra.mxu1 %v1139_v19  ;;  %1144 = vmatprep.subr.bf16.mxu0 %v1143_v22 }
  0x5e   : > { %1157 = vmatprep.subr.bf16.mxu1 %v1143_v22 }
  0x60   : > { %1146 = vmatpush3.bf16.msra.mxu0 %v1143_v22 }
  0x61   : > { %1165 = vmatpush3.bf16.msra.mxu1 %v1143_v22  ;;  %1148 = vmatprep.subr.bf16.mxu0 %v1147_v25 }
  0x62   : > { %1158 = vmatprep.subr.bf16.mxu1 %v1147_v25 }
  0x64   : > { %1150 = vmatpush3.bf16.msra.mxu0 %v1147_v25 }
  0x65   : > { %1166 = vmatpush3.bf16.msra.mxu1 %v1147_v25 }
  0x67   : > { %1072 = vmatmul.mubr.f32.vlgmr.msra.gmra.mrb[0].mxu0 %v328_v26 }
  0x68   : > { %1096 = vmatmul.mubr.f32.vlgmr.msra.gmra.mrb[0].mxu1 %v344_v27  ;;  %1074 = vmatprep.mubr.f32.mxu0 %v329_v28 }
  0x69   : > { %1098 = vmatprep.mubr.f32.mxu1 %v345_v29 }
  0x6b   : > { %1075 = vmatmul.mubr.f32.gmra.mrb[2].mxu0 %v330_v30 }
  0x6c   : > { %1099 = vmatmul.mubr.f32.gmra.mrb[2].mxu1 %v346_v31  ;;  %1077 = vmatprep.mubr.f32.mxu0 %v331_v32 }
  0x6d   : > { %1101 = vmatprep.mubr.f32.mxu1 %v347_v33 }
  0x6f   : > { %1078 = vmatmul.mubr.f32.gmra.mrb[4].mxu0 %v332_v34 }
  0x70   : > { %1102 = vmatmul.mubr.f32.gmra.mrb[4].mxu1 %v348_v35  ;;  %1080 = vmatprep.mubr.f32.mxu0 %v333_v36 }
  0x71   : > { %1104 = vmatprep.mubr.f32.mxu1 %v349_v37 }
  0x73   : > { %1081 = vmatmul.mubr.f32.gmra.mrb[6].mxu0 %v334_v38 }
  0x74   : > { %1105 = vmatmul.mubr.f32.gmra.mrb[6].mxu1 %v350_v39  ;;  %1083 = vmatprep.mubr.f32.mxu0 %v335_v40 }
  0x75   : > { %1107 = vmatprep.mubr.f32.mxu1 %v351_v41 }
  0x77   : > { %1084 = vmatmul.mubr.f32.gmra.mrb[8].mxu0 %v336_v42 }
  0x78   : > { %1108 = vmatmul.mubr.f32.gmra.mrb[8].mxu1 %v352_v43  ;;  %1086 = vmatprep.mubr.f32.mxu0 %v337_v44 }
  0x79   : > { %1110 = vmatprep.mubr.f32.mxu1 %v353_v45 }
  0x7b   : > { %1087 = vmatmul.mubr.f32.gmra.mrb[10].mxu0 %v338_v46 }
  0x7c   : > { %1111 = vmatmul.mubr.f32.gmra.mrb[10].mxu1 %v354_v47  ;;  %1089 = vmatprep.mubr.f32.mxu0 %v339_v48 }
  0x7d   : > { %1113 = vmatprep.mubr.f32.mxu1 %v355_v49 }
  0x7f   : > { %1090 = vmatmul.mubr.f32.gmra.mrb[12].mxu0 %v340_v50 }
  0x80   : > { %1114 = vmatmul.mubr.f32.gmra.mrb[12].mxu1 %v356_v51  ;;  %1092 = vmatprep.mubr.f32.mxu0 %v341_v52 }
  0x81   : > { %1116 = vmatprep.mubr.f32.mxu1 %v357_v53 }
  0x83   : > { %1093 = vmatmul.mubr.f32.gmra.mrb[14].mxu0 %v342_v54 }
  0x84   : > { %1117 = vmatmul.mubr.f32.gmra.mrb[14].mxu1 %v358_v55 }
 0x13a   : > { %v1073_v57 = vpop.f32.mrb[0].mxu0 }
 0x13b   : > { %v1097_v58 = vpop.f32.mrb[0].mxu1  ;;  %v707_v59 = vadd.f32 %v1073_v57, %v1466_v56  ;;  %v441_v61 = vpop.f32.mrb[1].mxu0 }
 0x13c   : > { %v723_v60 = vadd.f32 %v1097_v58, %v1466_v56  ;;  %v521_v62 = vpop.f32.mrb[1].mxu1  ;;  %v706_v63 = vadd.f32 %v1466_v56, %v441_v61 }
 0x13d   : > { %v722_v0 = vadd.f32 %v1466_v56, %v521_v62  ;;  %vm739_vm0 = vcmp.ge.f32.partialorder %v707_v59, 0.0  ;;  %v771_v1 = vmul.f32 0.1, %v707_v59 }
 0x13e   : > { %vm755_vm1 = vcmp.ge.f32.partialorder %v723_v60, 0.0  ;;  %v787_v2 = vmul.f32 0.1, %v723_v60  ;;  %vm738_vm2 = vcmp.ge.f32.partialorder %v706_v63, 0.0  ;;  %v770_v3 = vmul.f32 0.1, %v706_v63 }
 0x13f   : > { %vm754_vm3 = vcmp.ge.f32.partialorder %v722_v0, 0.0  ;;  %v786_v4 = vmul.f32 0.1, %v722_v0  ;;  %v803_v5 = vsel %vm739_vm0, %v707_v59, %v771_v1  ;;  %v1076_v7 = vpop.f32.mrb[2].mxu0  ;;  %v1100_v8 = vpop.f32.mrb[2].mxu1 }
 0x140   : > { %v819_v6 = vsel %vm755_vm1, %v723_v60, %v787_v2  ;;  %835 = vst [vmem:[%s1477_s30 + $0x8] sm:$0xff] %v803_v5  ;;  %v802_v9 = vsel %vm738_vm2, %v706_v63, %v770_v3  ;;  %v709_v11 = vadd.f32 %v1076_v7, %v1466_v56  ;;  %v725_v12 = vadd.f32 %v1100_v8, %v1466_v56  ;;  %v451_v13 = vpop.f32.mrb[3].mxu0  ;;  %v531_v14 = vpop.f32.mrb[3].mxu1 }
 0x141   : > { %851 = vst [vmem:[%s1477_s30 + $0x88] sm:$0xff] %v819_v6  ;;  %v818_v10 = vsel %vm754_vm3, %v722_v0, %v786_v4  ;;  %834 = vst [vmem:[%s1477_s30] sm:$0xff] %v802_v9  ;;  %v708_v15 = vadd.f32 %v1466_v56, %v451_v13  ;;  %v724_v16 = vadd.f32 %v1466_v56, %v531_v14 }
 0x142   : > { %850 = vst [vmem:[%s1477_s30 + $0x80] sm:$0xff] %v818_v10  ;;  %vm741_vm4 = vcmp.ge.f32.partialorder %v709_v11, 0.0  ;;  %v773_v17 = vmul.f32 0.1, %v709_v11  ;;  %vm757_vm5 = vcmp.ge.f32.partialorder %v725_v12, 0.0  ;;  %v1079_v23 = vpop.f32.mrb[4].mxu0 }
 0x143   : > { %v789_v18 = vmul.f32 0.1, %v725_v12  ;;  %vm740_vm6 = vcmp.ge.f32.partialorder %v708_v15, 0.0  ;;  %v772_v19 = vmul.f32 0.1, %v708_v15  ;;  %vm756_vm7 = vcmp.ge.f32.partialorder %v724_v16, 0.0 }
 0x144   : > { %v788_v20 = vmul.f32 0.1, %v724_v16  ;;  %v805_v21 = vsel %vm741_vm4, %v709_v11, %v773_v17  ;;  %v1103_v24 = vpop.f32.mrb[4].mxu1  ;;  %v711_v27 = vadd.f32 %v1079_v23, %v1466_v56  ;;  %v461_v29 = vpop.f32.mrb[5].mxu0 }
 0x145   : > { %v821_v22 = vsel %vm757_vm5, %v725_v12, %v789_v18  ;;  %837 = vst [vmem:[%s1477_s30 + $0x18] sm:$0xff] %v805_v21  ;;  %v804_v25 = vsel %vm740_vm6, %v708_v15, %v772_v19  ;;  %v727_v28 = vadd.f32 %v1103_v24, %v1466_v56  ;;  %v541_v30 = vpop.f32.mrb[5].mxu1  ;;  %v710_v31 = vadd.f32 %v1466_v56, %v461_v29 }
 0x146   : > { %853 = vst [vmem:[%s1477_s30 + $0x98] sm:$0xff] %v821_v22  ;;  %v820_v26 = vsel %vm756_vm7, %v724_v16, %v788_v20  ;;  %836 = vst [vmem:[%s1477_s30 + $0x10] sm:$0xff] %v804_v25  ;;  %v726_v32 = vadd.f32 %v1466_v56, %v541_v30  ;;  %v1082_v33 = vpop.f32.mrb[6].mxu0  ;;  %vm743_vm8 = vcmp.ge.f32.partialorder %v711_v27, 0.0  ;;  %v775_v35 = vmul.f32 0.1, %v711_v27 }
 0x147   : > { %852 = vst [vmem:[%s1477_s30 + $0x90] sm:$0xff] %v820_v26  ;;  %v1106_v34 = vpop.f32.mrb[6].mxu1  ;;  %vm759_vm9 = vcmp.ge.f32.partialorder %v727_v28, 0.0  ;;  %v791_v36 = vmul.f32 0.1, %v727_v28  ;;  %vm742_vm10 = vcmp.ge.f32.partialorder %v710_v31, 0.0  ;;  %v713_v41 = vadd.f32 %v1082_v33, %v1466_v56 }
 0x148   : > { %v774_v37 = vmul.f32 0.1, %v710_v31  ;;  %vm758_vm11 = vcmp.ge.f32.partialorder %v726_v32, 0.0  ;;  %v790_v38 = vmul.f32 0.1, %v726_v32  ;;  %v807_v39 = vsel %vm743_vm8, %v711_v27, %v775_v35  ;;  %v471_v43 = vpop.f32.mrb[7].mxu0 }
 0x149   : > { %v823_v40 = vsel %vm759_vm9, %v727_v28, %v791_v36  ;;  %v729_v42 = vadd.f32 %v1106_v34, %v1466_v56  ;;  %v551_v44 = vpop.f32.mrb[7].mxu1  ;;  %839 = vst [vmem:[%s1477_s30 + $0x28] sm:$0xff] %v807_v39  ;;  %v712_v47 = vadd.f32 %v1466_v56, %v471_v43  ;;  %vm745_vm12 = vcmp.ge.f32.partialorder %v713_v41, 0.0 }
 0x14a   : > { %855 = vst [vmem:[%s1477_s30 + $0xa8] sm:$0xff] %v823_v40  ;;  %v806_v45 = vsel %vm742_vm10, %v710_v31, %v774_v37  ;;  %v822_v46 = vsel %vm758_vm11, %v726_v32, %v790_v38  ;;  %v728_v48 = vadd.f32 %v1466_v56, %v551_v44  ;;  %v1085_v49 = vpop.f32.mrb[8].mxu0  ;;  %v777_v51 = vmul.f32 0.1, %v713_v41 }
 0x14b   : > { %v1109_v50 = vpop.f32.mrb[8].mxu1  ;;  %838 = vst [vmem:[%s1477_s30 + $0x20] sm:$0xff] %v806_v45  ;;  %854 = vst [vmem:[%s1477_s30 + $0xa0] sm:$0xff] %v822_v46  ;;  %vm761_vm13 = vcmp.ge.f32.partialorder %v729_v42, 0.0  ;;  %v793_v52 = vmul.f32 0.1, %v729_v42  ;;  %v715_v58 = vadd.f32 %v1085_v49, %v1466_v56 }
 0x14c   : > { %vm744_vm14 = vcmp.ge.f32.partialorder %v712_v47, 0.0  ;;  %v776_v53 = vmul.f32 0.1, %v712_v47  ;;  %vm760_vm15 = vcmp.ge.f32.partialorder %v728_v48, 0.0  ;;  %v792_v54 = vmul.f32 0.1, %v728_v48 }
 0x14d   : > { %v809_v55 = vsel %vm745_vm12, %v713_v41, %v777_v51  ;;  %v825_v57 = vsel %vm761_vm13, %v729_v42, %v793_v52  ;;  %v731_v59 = vadd.f32 %v1109_v50, %v1466_v56  ;;  %v481_v60 = vpop.f32.mrb[9].mxu0  ;;  %v561_v61 = vpop.f32.mrb[9].mxu1  ;;  %vm747_vm0 = vcmp.ge.f32.partialorder %v715_v58, 0.0 }
 0x14e   : > { %841 = vst [vmem:[%s1477_s30 + $0x38] sm:$0xff] %v809_v55  ;;  %857 = vst [vmem:[%s1477_s30 + $0xb8] sm:$0xff] %v825_v57  ;;  %v808_v62 = vsel %vm744_vm14, %v712_v47, %v776_v53  ;;  %v824_v63 = vsel %vm760_vm15, %v728_v48, %v792_v54  ;;  %v714_v0 = vadd.f32 %v1466_v56, %v481_v60  ;;  %v1088_v2 = vpop.f32.mrb[10].mxu0  ;;  %v779_v4 = vmul.f32 0.1, %v715_v58 }
 0x14f   : > { %v730_v1 = vadd.f32 %v1466_v56, %v561_v61  ;;  %v1112_v3 = vpop.f32.mrb[10].mxu1  ;;  %840 = vst [vmem:[%s1477_s30 + $0x30] sm:$0xff] %v808_v62  ;;  %856 = vst [vmem:[%s1477_s30 + $0xb0] sm:$0xff] %v824_v63  ;;  %vm763_vm1 = vcmp.ge.f32.partialorder %v731_v59, 0.0  ;;  %v795_v5 = vmul.f32 0.1, %v731_v59  ;;  %v717_v10 = vadd.f32 %v1088_v2, %v1466_v56 }
 0x150   : > { %vm746_vm2 = vcmp.ge.f32.partialorder %v714_v0, 0.0  ;;  %v778_v6 = vmul.f32 0.1, %v714_v0  ;;  %v811_v8 = vsel %vm747_vm0, %v715_v58, %v779_v4  ;;  %v733_v11 = vadd.f32 %v1112_v3, %v1466_v56  ;;  %v491_v12 = vpop.f32.mrb[11].mxu0  ;;  %v571_v13 = vpop.f32.mrb[11].mxu1 }
 0x151   : > { %vm762_vm3 = vcmp.ge.f32.partialorder %v730_v1, 0.0  ;;  %v794_v7 = vmul.f32 0.1, %v730_v1  ;;  %v827_v9 = vsel %vm763_vm1, %v731_v59, %v795_v5  ;;  %843 = vst [vmem:[%s1477_s30 + $0x48] sm:$0xff] %v811_v8  ;;  %v716_v16 = vadd.f32 %v1466_v56, %v491_v12 }
 0x152   : > { %859 = vst [vmem:[%s1477_s30 + $0xc8] sm:$0xff] %v827_v9  ;;  %v810_v14 = vsel %vm746_vm2, %v714_v0, %v778_v6  ;;  %v732_v17 = vadd.f32 %v1466_v56, %v571_v13  ;;  %v1091_v18 = vpop.f32.mrb[12].mxu0  ;;  %vm749_vm4 = vcmp.ge.f32.partialorder %v717_v10, 0.0  ;;  %v781_v20 = vmul.f32 0.1, %v717_v10 }
 0x153   : > { %v826_v15 = vsel %vm762_vm3, %v730_v1, %v794_v7  ;;  %v1115_v19 = vpop.f32.mrb[12].mxu1  ;;  %842 = vst [vmem:[%s1477_s30 + $0x40] sm:$0xff] %v810_v14  ;;  %vm765_vm5 = vcmp.ge.f32.partialorder %v733_v11, 0.0  ;;  %v797_v21 = vmul.f32 0.1, %v733_v11  ;;  %vm748_vm6 = vcmp.ge.f32.partialorder %v716_v16, 0.0 }
 0x154   : > { %858 = vst [vmem:[%s1477_s30 + $0xc0] sm:$0xff] %v826_v15  ;;  %v780_v22 = vmul.f32 0.1, %v716_v16  ;;  %vm764_vm7 = vcmp.ge.f32.partialorder %v732_v17, 0.0  ;;  %v796_v23 = vmul.f32 0.1, %v732_v17  ;;  %v813_v24 = vsel %vm749_vm4, %v717_v10, %v781_v20 }
 0x155   : > { %v829_v25 = vsel %vm765_vm5, %v733_v11, %v797_v21  ;;  %v719_v26 = vadd.f32 %v1091_v18, %v1466_v56  ;;  %v735_v27 = vadd.f32 %v1115_v19, %v1466_v56  ;;  %v501_v28 = vpop.f32.mrb[13].mxu0  ;;  %v581_v29 = vpop.f32.mrb[13].mxu1  ;;  %845 = vst [vmem:[%s1477_s30 + $0x58] sm:$0xff] %v813_v24 }
 0x156   : > { %861 = vst [vmem:[%s1477_s30 + $0xd8] sm:$0xff] %v829_v25  ;;  %v812_v30 = vsel %vm748_vm6, %v716_v16, %v780_v22  ;;  %v828_v31 = vsel %vm764_vm7, %v732_v17, %v796_v23  ;;  %v718_v32 = vadd.f32 %v1466_v56, %v501_v28  ;;  %v734_v33 = vadd.f32 %v1466_v56, %v581_v29  ;;  %v1094_v34 = vpop.f32.mrb[14].mxu0 }
 0x157   : > { %v1118_v35 = vpop.f32.mrb[14].mxu1  ;;  %844 = vst [vmem:[%s1477_s30 + $0x50] sm:$0xff] %v812_v30  ;;  %860 = vst [vmem:[%s1477_s30 + $0xd0] sm:$0xff] %v828_v31  ;;  %vm751_vm8 = vcmp.ge.f32.partialorder %v719_v26, 0.0  ;;  %v783_v36 = vmul.f32 0.1, %v719_v26  ;;  %v721_v42 = vadd.f32 %v1094_v34, %v1466_v56 }
 0x158   : > { %vm767_vm9 = vcmp.ge.f32.partialorder %v735_v27, 0.0  ;;  %v799_v37 = vmul.f32 0.1, %v735_v27  ;;  %vm750_vm10 = vcmp.ge.f32.partialorder %v718_v32, 0.0  ;;  %v782_v38 = vmul.f32 0.1, %v718_v32 }
 0x159   : > { %vm766_vm11 = vcmp.ge.f32.partialorder %v734_v33, 0.0  ;;  %v798_v39 = vmul.f32 0.1, %v734_v33  ;;  %v815_v40 = vsel %vm751_vm8, %v719_v26, %v783_v36  ;;  %v737_v43 = vadd.f32 %v1118_v35, %v1466_v56  ;;  %v511_v44 = vpop.f32.mrb[15].mxu0  ;;  %v591_v45 = vpop.f32.mrb[15].mxu1 }
 0x15a   : > { %v831_v41 = vsel %vm767_vm9, %v735_v27, %v799_v37  ;;  %847 = vst [vmem:[%s1477_s30 + $0x68] sm:$0xff] %v815_v40  ;;  %v814_v46 = vsel %vm750_vm10, %v718_v32, %v782_v38  ;;  %v720_v48 = vadd.f32 %v1466_v56, %v511_v44  ;;  %v736_v49 = vadd.f32 %v1466_v56, %v591_v45 }
 0x15b   : > { %863 = vst [vmem:[%s1477_s30 + $0xe8] sm:$0xff] %v831_v41  ;;  %v830_v47 = vsel %vm766_vm11, %v734_v33, %v798_v39  ;;  %846 = vst [vmem:[%s1477_s30 + $0x60] sm:$0xff] %v814_v46  ;;  %vm753_vm12 = vcmp.ge.f32.partialorder %v721_v42, 0.0  ;;  %v785_v50 = vmul.f32 0.1, %v721_v42  ;;  %vm769_vm13 = vcmp.ge.f32.partialorder %v737_v43, 0.0 }
 0x15c   : > { %862 = vst [vmem:[%s1477_s30 + $0xe0] sm:$0xff] %v830_v47  ;;  %v801_v51 = vmul.f32 0.1, %v737_v43  ;;  %vm752_vm14 = vcmp.ge.f32.partialorder %v720_v48, 0.0  ;;  %v784_v52 = vmul.f32 0.1, %v720_v48 }
 0x15d   : > { %vm768_vm15 = vcmp.ge.f32.partialorder %v736_v49, 0.0  ;;  %v800_v53 = vmul.f32 0.1, %v736_v49  ;;  %v817_v54 = vsel %vm753_vm12, %v721_v42, %v785_v50 }
 0x15e   : > { %v833_v55 = vsel %vm769_vm13, %v737_v43, %v801_v51  ;;  %849 = vst [vmem:[%s1477_s30 + $0x78] sm:$0xff] %v817_v54  ;;  %v816_v57 = vsel %vm752_vm14, %v720_v48, %v784_v52 }
 0x15f   : > { %865 = vst [vmem:[%s1477_s30 + $0xf8] sm:$0xff] %v833_v55  ;;  %v832_v58 = vsel %vm768_vm15, %v736_v49, %v800_v53  ;;  %848 = vst [vmem:[%s1477_s30 + $0x70] sm:$0xff] %v816_v57 }
 0x160   : > { %864 = vst [vmem:[%s1477_s30 + $0xf0] sm:$0xff] %v832_v58 }
 0x161 PF: > { %s15_s14 = sadd.s32 1, %s1300_s14   ;;  %s1560_s12 = smov %s1296_s13 }
 0x162   : > { %p12_p6 = scmp.ge.s32.totalorder %s15_s14, 130   ;;  %s1561_s13 = smov %s1563_s16 }
 0x164   :  { %14 = sbr.rel (!%p12_p6) target bundleno = 3 (0x3), region = 81 }
 0x16b   :  { %894 = vsyncpa [#allocation4], 1 }
 0x16c   :  { %896 = vsyncpa [#allocation4 + $0x1], 1 }
 0x16d   :  { %897 = vsyncpa [#allocation6], 1 }

// kernel: slosh_forward.11
= control target key start
LH: loop header
LB: loop body
LE: loop exit
PB: predicated region body
PF: predicated region fallthrough
CT: control target
= control target key end

     0   :  { %s1235_s12 = smov 0   ;;  %s1237_s13 = smov 0   ;;  %s1428_s0 = inlined_call_operand.vmem [shape: f32[8192,128], index: 0, kind: input, shape index: {}]   ;;  %s1429_s1 = inlined_call_operand.vmem [shape: f32[128,128], index: 1, kind: input, shape index: {}]   ;;  %s1430_s2 = inlined_call_operand.vmem [shape: f32[1,128], index: 2, kind: input, shape index: {}]   ;;  %s1431_s3 = inlined_call_operand.vmem [shape: f32[8192,128], index: 3, kind: output, shape index: {}]  }
   0x1   :  { %s1239_s14 = smov 0  }
   0x2 LB: > { %s32_s15 = sadd.s32 1, %s1209_s13  ;;  %p983_p0 = scmp.ge.s32.totalorder %s1213_s14, 1  ;;  %s1213_s14 = sphi %s1239_s14, %s13_s14   ;;  %s1209_s13 = sphi %s1237_s13, %s1433_s13   ;;  %s1205_s12 = sphi %s1235_s12, %s1432_s12  }
   0x3   : > { %p34_p1 = scmp.ge.s32.totalorder %s32_s15, 32  ;;  %p188_p2 = scmp.lt.s32.totalorder %s1213_s14, 33 }
   0x5   : > { %s1435_s15 = smov (%p34_p1, %s32_s15), 0  ;;  %p189_p3 = pnand %p983_p0, %p188_p2 }
   0x6   : > { %v359_v0 = vld [vmem:[%s1429_s1] sm:$0xff] (!%p189_p3)  ;;  %v360_v1 = vld [vmem:[%s1429_s1 + $0x8] sm:$0xff] (!%p189_p3)  ;;  %v361_v2 = vld [vmem:[%s1429_s1 + $0x10] sm:$0xff] (!%p189_p3)  ;;  %s984_s22 = sshll.u32 (!%p189_p3), %s1205_s12, 5 }
   0x7   : > { %192 = sbr.rel (%p189_p3) target bundleno = 291 (0x123), region = 32  ;;  %v1119_v3 = vpack.c.bf16 (!%p189_p3), %v360_v1, %v359_v0  ;;  %v362_v4 = vld [vmem:[%s1429_s1 + $0x18] sm:$0xff] (!%p189_p3)  ;;  %p230_p4 = scmp.lt.s32.totalorder (!%p189_p3), %s984_s22, 1023  ;;  %v363_v6 = vld [vmem:[%s1429_s1 + $0x20] sm:$0xff] (!%p189_p3)  ;;  %v364_v7 = vld [vmem:[%s1429_s1 + $0x28] sm:$0xff] (!%p189_p3) }
   0x8   : > { %v1123_v5 = vpack.c.bf16 (!%p189_p3), %v362_v4, %v361_v2  ;;  %v1127_v8 = vpack.c.bf16 (!%p189_p3), %v364_v7, %v363_v6  ;;  %v365_v9 = vld [vmem:[%s1429_s1 + $0x30] sm:$0xff] (!%p189_p3)  ;;  %v366_v10 = vld [vmem:[%s1429_s1 + $0x38] sm:$0xff] (!%p189_p3)  ;;  %v367_v14 = vld [vmem:[%s1429_s1 + $0x40] sm:$0xff] (!%p189_p3) }
   0x9   : > { %1120 = vmatprep.subr.bf16.mxu0 (!%p189_p3), %v1119_v3  ;;  %1151 = vmatprep.subr.bf16.mxu1 (!%p189_p3), %v1119_v3  ;;  %v1131_v13 = vpack.c.bf16 (!%p189_p3), %v366_v10, %v365_v9  ;;  %v368_v15 = vld [vmem:[%s1429_s1 + $0x48] sm:$0xff] (!%p189_p3)  ;;  %v369_v17 = vld [vmem:[%s1429_s1 + $0x50] sm:$0xff] (!%p189_p3)  ;;  %v370_v18 = vld [vmem:[%s1429_s1 + $0x58] sm:$0xff] (!%p189_p3) }
   0xa   : > { %1122 = vmatpush3.bf16.msra.mxu0 (!%p189_p3), %v1119_v3  ;;  %1159 = vmatpush3.bf16.msra.mxu1 (!%p189_p3), %v1119_v3  ;;  %v1135_v16 = vpack.c.bf16 (!%p189_p3), %v368_v15, %v367_v14  ;;  %v1139_v19 = vpack.c.bf16 (!%p189_p3), %v370_v18, %v369_v17  ;;  %v371_v20 = vld [vmem:[%s1429_s1 + $0x60] sm:$0xff] (!%p189_p3)  ;;  %v372_v21 = vld [vmem:[%s1429_s1 + $0x68] sm:$0xff] (!%p189_p3)  ;;  %v373_v23 = vld [vmem:[%s1429_s1 + $0x70] sm:$0xff] (!%p189_p3) }
   0xb   : > { %1124 = vmatprep.subr.bf16.mxu0 (!%p189_p3), %v1123_v5  ;;  %1152 = vmatprep.subr.bf16.mxu1 (!%p189_p3), %v1123_v5  ;;  %v1143_v22 = vpack.c.bf16 (!%p189_p3), %v372_v21, %v371_v20  ;;  %v374_v24 = vld [vmem:[%s1429_s1 + $0x78] sm:$0xff] (!%p189_p3)  ;;  %v1346_v56 = vld [vmem:[%s1430_s2] ss:$0 sm:$0xff] (!%p189_p3) }
   0xc   : > { %v1147_v25 = vpack.c.bf16 (!%p189_p3), %v374_v24, %v373_v23 }
   0xe   : > { %s1437_s22 = smov (!%p230_p4, %s984_s22), 1023  ;;  %1126 = vmatpush3.bf16.msra.mxu0 %v1123_v5  ;;  %1160 = vmatpush3.bf16.msra.mxu1 %v1123_v5 }
   0xf   : > { %s985_s29 = sshll.u32 %s1437_s22, 3  ;;  %1128 = vmatprep.subr.bf16.mxu0 %v1127_v8  ;;  %1153 = vmatprep.subr.bf16.mxu1 %v1127_v8 }
  0x10   : > { %s1285_s9 = scalar_lea.vmem %s1428_s0, %s985_s29  ;;  %s1357_s8 = scalar_lea.vmem %s1431_s3, %s985_s29 }
  0x11   : > { %v327_v11 = vld [vmem:[%s1285_s9] sm:$0xff]  ;;  %v328_v26 = vld [vmem:[%s1285_s9 + $0x8] sm:$0xff]  ;;  %v329_v28 = vld [vmem:[%s1285_s9 + $0x10] sm:$0xff] }
  0x12   : > { %v343_v12 = vld [vmem:[%s1285_s9 + $0x80] sm:$0xff]  ;;  %1071 = vmatprep.mubr.f32.mxu0 %v327_v11  ;;  %1130 = vmatpush3.bf16.msra.mxu0 %v1127_v8  ;;  %v344_v27 = vld [vmem:[%s1285_s9 + $0x88] sm:$0xff]  ;;  %v345_v29 = vld [vmem:[%s1285_s9 + $0x90] sm:$0xff] }
  0x13   : > { %1095 = vmatprep.mubr.f32.mxu1 %v343_v12  ;;  %1161 = vmatpush3.bf16.msra.mxu1 %v1127_v8  ;;  %v330_v30 = vld [vmem:[%s1285_s9 + $0x18] sm:$0xff]  ;;  %v331_v32 = vld [vmem:[%s1285_s9 + $0x20] sm:$0xff]  ;;  %v332_v34 = vld [vmem:[%s1285_s9 + $0x28] sm:$0xff] }
  0x14   : > { %1132 = vmatprep.subr.bf16.mxu0 %v1131_v13  ;;  %1154 = vmatprep.subr.bf16.mxu1 %v1131_v13  ;;  %v346_v31 = vld [vmem:[%s1285_s9 + $0x98] sm:$0xff]  ;;  %v347_v33 = vld [vmem:[%s1285_s9 + $0xa0] sm:$0xff]  ;;  %v348_v35 = vld [vmem:[%s1285_s9 + $0xa8] sm:$0xff] }
  0x15   : > { %v333_v36 = vld [vmem:[%s1285_s9 + $0x30] sm:$0xff]  ;;  %v334_v38 = vld [vmem:[%s1285_s9 + $0x38] sm:$0xff]  ;;  %v335_v40 = vld [vmem:[%s1285_s9 + $0x40] sm:$0xff] }
  0x16   : > { %1134 = vmatpush3.bf16.msra.mxu0 %v1131_v13  ;;  %v349_v37 = vld [vmem:[%s1285_s9 + $0xb0] sm:$0xff]  ;;  %v350_v39 = vld [vmem:[%s1285_s9 + $0xb8] sm:$0xff]  ;;  %v351_v41 = vld [vmem:[%s1285_s9 + $0xc0] sm:$0xff] }
  0x17   : > { %1162 = vmatpush3.bf16.msra.mxu1 %v1131_v13  ;;  %1136 = vmatprep.subr.bf16.mxu0 %v1135_v16  ;;  %v336_v42 = vld [vmem:[%s1285_s9 + $0x48] sm:$0xff]  ;;  %v337_v44 = vld [vmem:[%s1285_s9 + $0x50] sm:$0xff]  ;;  %v338_v46 = vld [vmem:[%s1285_s9 + $0x58] sm:$0xff] }
  0x18   : > { %1155 = vmatprep.subr.bf16.mxu1 %v1135_v16  ;;  %v352_v43 = vld [vmem:[%s1285_s9 + $0xc8] sm:$0xff]  ;;  %v353_v45 = vld [vmem:[%s1285_s9 + $0xd0] sm:$0xff]  ;;  %v354_v47 = vld [vmem:[%s1285_s9 + $0xd8] sm:$0xff] }
  0x19   : > { %v339_v48 = vld [vmem:[%s1285_s9 + $0x60] sm:$0xff]  ;;  %v340_v50 = vld [vmem:[%s1285_s9 + $0x68] sm:$0xff]  ;;  %v341_v52 = vld [vmem:[%s1285_s9 + $0x70] sm:$0xff] }
  0x1a   : > { %1138 = vmatpush3.bf16.msra.mxu0 %v1135_v16  ;;  %v355_v49 = vld [vmem:[%s1285_s9 + $0xe0] sm:$0xff]  ;;  %v356_v51 = vld [vmem:[%s1285_s9 + $0xe8] sm:$0xff]  ;;  %v357_v53 = vld [vmem:[%s1285_s9 + $0xf0] sm:$0xff] }
  0x1b   : > { %1163 = vmatpush3.bf16.msra.mxu1 %v1135_v16  ;;  %1140 = vmatprep.subr.bf16.mxu0 %v1139_v19  ;;  %v342_v54 = vld [vmem:[%s1285_s9 + $0x78] sm:$0xff] }
  0x1c   : > { %1156 = vmatprep.subr.bf16.mxu1 %v1139_v19  ;;  %v358_v55 = vld [vmem:[%s1285_s9 + $0xf8] sm:$0xff] }
  0x1e   : > { %1142 = vmatpush3.bf16.msra.mxu0 %v1139_v19 }
  0x1f   : > { %1164 = vmatpush3.bf16.msra.mxu1 %v1139_v19  ;;  %1144 = vmatprep.subr.bf16.mxu0 %v1143_v22 }
  0x20   : > { %1157 = vmatprep.subr.bf16.mxu1 %v1143_v22 }
  0x22   : > { %1146 = vmatpush3.bf16.msra.mxu0 %v1143_v22 }
  0x23   : > { %1165 = vmatpush3.bf16.msra.mxu1 %v1143_v22  ;;  %1148 = vmatprep.subr.bf16.mxu0 %v1147_v25 }
  0x24   : > { %1158 = vmatprep.subr.bf16.mxu1 %v1147_v25 }
  0x26   : > { %1150 = vmatpush3.bf16.msra.mxu0 %v1147_v25 }
  0x27   : > { %1166 = vmatpush3.bf16.msra.mxu1 %v1147_v25 }
  0x29   : > { %1072 = vmatmul.mubr.f32.vlgmr.msra.gmra.mrb[0].mxu0 %v328_v26 }
  0x2a   : > { %1096 = vmatmul.mubr.f32.vlgmr.msra.gmra.mrb[0].mxu1 %v344_v27  ;;  %1074 = vmatprep.mubr.f32.mxu0 %v329_v28 }
  0x2b   : > { %1098 = vmatprep.mubr.f32.mxu1 %v345_v29 }
  0x2d   : > { %1075 = vmatmul.mubr.f32.gmra.mrb[2].mxu0 %v330_v30 }
  0x2e   : > { %1099 = vmatmul.mubr.f32.gmra.mrb[2].mxu1 %v346_v31  ;;  %1077 = vmatprep.mubr.f32.mxu0 %v331_v32 }
  0x2f   : > { %1101 = vmatprep.mubr.f32.mxu1 %v347_v33 }
  0x31   : > { %1078 = vmatmul.mubr.f32.gmra.mrb[4].mxu0 %v332_v34 }
  0x32   : > { %1102 = vmatmul.mubr.f32.gmra.mrb[4].mxu1 %v348_v35  ;;  %1080 = vmatprep.mubr.f32.mxu0 %v333_v36 }
  0x33   : > { %1104 = vmatprep.mubr.f32.mxu1 %v349_v37 }
  0x35   : > { %1081 = vmatmul.mubr.f32.gmra.mrb[6].mxu0 %v334_v38 }
  0x36   : > { %1105 = vmatmul.mubr.f32.gmra.mrb[6].mxu1 %v350_v39  ;;  %1083 = vmatprep.mubr.f32.mxu0 %v335_v40 }
  0x37   : > { %1107 = vmatprep.mubr.f32.mxu1 %v351_v41 }
  0x39   : > { %1084 = vmatmul.mubr.f32.gmra.mrb[8].mxu0 %v336_v42 }
  0x3a   : > { %1108 = vmatmul.mubr.f32.gmra.mrb[8].mxu1 %v352_v43  ;;  %1086 = vmatprep.mubr.f32.mxu0 %v337_v44 }
  0x3b   : > { %1110 = vmatprep.mubr.f32.mxu1 %v353_v45 }
  0x3d   : > { %1087 = vmatmul.mubr.f32.gmra.mrb[10].mxu0 %v338_v46 }
  0x3e   : > { %1111 = vmatmul.mubr.f32.gmra.mrb[10].mxu1 %v354_v47  ;;  %1089 = vmatprep.mubr.f32.mxu0 %v339_v48 }
  0x3f   : > { %1113 = vmatprep.mubr.f32.mxu1 %v355_v49 }
  0x41   : > { %1090 = vmatmul.mubr.f32.gmra.mrb[12].mxu0 %v340_v50 }
  0x42   : > { %1114 = vmatmul.mubr.f32.gmra.mrb[12].mxu1 %v356_v51  ;;  %1092 = vmatprep.mubr.f32.mxu0 %v341_v52 }
  0x43   : > { %1116 = vmatprep.mubr.f32.mxu1 %v357_v53 }
  0x45   : > { %1093 = vmatmul.mubr.f32.gmra.mrb[14].mxu0 %v342_v54 }
  0x46   : > { %1117 = vmatmul.mubr.f32.gmra.mrb[14].mxu1 %v358_v55 }
  0xfc   : > { %v1073_v57 = vpop.f32.mrb[0].mxu0 }
  0xfd   : > { %v1097_v58 = vpop.f32.mrb[0].mxu1  ;;  %v707_v59 = vadd.f32 %v1073_v57, %v1346_v56  ;;  %v441_v61 = vpop.f32.mrb[1].mxu0 }
  0xfe   : > { %v723_v60 = vadd.f32 %v1097_v58, %v1346_v56  ;;  %v521_v62 = vpop.f32.mrb[1].mxu1  ;;  %v706_v63 = vadd.f32 %v1346_v56, %v441_v61 }
  0xff   : > { %v722_v0 = vadd.f32 %v1346_v56, %v521_v62  ;;  %vm739_vm0 = vcmp.ge.f32.partialorder %v707_v59, 0.0  ;;  %v771_v1 = vmul.f32 0.1, %v707_v59 }
 0x100   : > { %vm755_vm1 = vcmp.ge.f32.partialorder %v723_v60, 0.0  ;;  %v787_v2 = vmul.f32 0.1, %v723_v60  ;;  %vm738_vm2 = vcmp.ge.f32.partialorder %v706_v63, 0.0  ;;  %v770_v3 = vmul.f32 0.1, %v706_v63 }
 0x101   : > { %vm754_vm3 = vcmp.ge.f32.partialorder %v722_v0, 0.0  ;;  %v786_v4 = vmul.f32 0.1, %v722_v0  ;;  %v803_v5 = vsel %vm739_vm0, %v707_v59, %v771_v1  ;;  %v1076_v7 = vpop.f32.mrb[2].mxu0  ;;  %v1100_v8 = vpop.f32.mrb[2].mxu1 }
 0x102   : > { %v819_v6 = vsel %vm755_vm1, %v723_v60, %v787_v2  ;;  %835 = vst [vmem:[%s1357_s8 + $0x8] sm:$0xff] %v803_v5  ;;  %v802_v9 = vsel %vm738_vm2, %v706_v63, %v770_v3  ;;  %v709_v11 = vadd.f32 %v1076_v7, %v1346_v56  ;;  %v725_v12 = vadd.f32 %v1100_v8, %v1346_v56  ;;  %v451_v13 = vpop.f32.mrb[3].mxu0  ;;  %v531_v14 = vpop.f32.mrb[3].mxu1 }
 0x103   : > { %851 = vst [vmem:[%s1357_s8 + $0x88] sm:$0xff] %v819_v6  ;;  %v818_v10 = vsel %vm754_vm3, %v722_v0, %v786_v4  ;;  %834 = vst [vmem:[%s1357_s8] sm:$0xff] %v802_v9  ;;  %v708_v15 = vadd.f32 %v1346_v56, %v451_v13  ;;  %v724_v16 = vadd.f32 %v1346_v56, %v531_v14 }
 0x104   : > { %850 = vst [vmem:[%s1357_s8 + $0x80] sm:$0xff] %v818_v10  ;;  %vm741_vm4 = vcmp.ge.f32.partialorder %v709_v11, 0.0  ;;  %v773_v17 = vmul.f32 0.1, %v709_v11  ;;  %vm757_vm5 = vcmp.ge.f32.partialorder %v725_v12, 0.0  ;;  %v1079_v23 = vpop.f32.mrb[4].mxu0 }
 0x105   : > { %v789_v18 = vmul.f32 0.1, %v725_v12  ;;  %vm740_vm6 = vcmp.ge.f32.partialorder %v708_v15, 0.0  ;;  %v772_v19 = vmul.f32 0.1, %v708_v15  ;;  %vm756_vm7 = vcmp.ge.f32.partialorder %v724_v16, 0.0 }
 0x106   : > { %v788_v20 = vmul.f32 0.1, %v724_v16  ;;  %v805_v21 = vsel %vm741_vm4, %v709_v11, %v773_v17  ;;  %v1103_v24 = vpop.f32.mrb[4].mxu1  ;;  %v711_v27 = vadd.f32 %v1079_v23, %v1346_v56  ;;  %v461_v29 = vpop.f32.mrb[5].mxu0 }
 0x107   : > { %v821_v22 = vsel %vm757_vm5, %v725_v12, %v789_v18  ;;  %837 = vst [vmem:[%s1357_s8 + $0x18] sm:$0xff] %v805_v21  ;;  %v804_v25 = vsel %vm740_vm6, %v708_v15, %v772_v19  ;;  %v727_v28 = vadd.f32 %v1103_v24, %v1346_v56  ;;  %v541_v30 = vpop.f32.mrb[5].mxu1  ;;  %v710_v31 = vadd.f32 %v1346_v56, %v461_v29 }
 0x108   : > { %853 = vst [vmem:[%s1357_s8 + $0x98] sm:$0xff] %v821_v22  ;;  %v820_v26 = vsel %vm756_vm7, %v724_v16, %v788_v20  ;;  %836 = vst [vmem:[%s1357_s8 + $0x10] sm:$0xff] %v804_v25  ;;  %v726_v32 = vadd.f32 %v1346_v56, %v541_v30  ;;  %v1082_v33 = vpop.f32.mrb[6].mxu0  ;;  %vm743_vm8 = vcmp.ge.f32.partialorder %v711_v27, 0.0  ;;  %v775_v35 = vmul.f32 0.1, %v711_v27 }
 0x109   : > { %852 = vst [vmem:[%s1357_s8 + $0x90] sm:$0xff] %v820_v26  ;;  %v1106_v34 = vpop.f32.mrb[6].mxu1  ;;  %vm759_vm9 = vcmp.ge.f32.partialorder %v727_v28, 0.0  ;;  %v791_v36 = vmul.f32 0.1, %v727_v28  ;;  %vm742_vm10 = vcmp.ge.f32.partialorder %v710_v31, 0.0  ;;  %v713_v41 = vadd.f32 %v1082_v33, %v1346_v56 }
 0x10a   : > { %v774_v37 = vmul.f32 0.1, %v710_v31  ;;  %vm758_vm11 = vcmp.ge.f32.partialorder %v726_v32, 0.0  ;;  %v790_v38 = vmul.f32 0.1, %v726_v32  ;;  %v807_v39 = vsel %vm743_vm8, %v711_v27, %v775_v35  ;;  %v471_v43 = vpop.f32.mrb[7].mxu0 }
 0x10b   : > { %v823_v40 = vsel %vm759_vm9, %v727_v28, %v791_v36  ;;  %v729_v42 = vadd.f32 %v1106_v34, %v1346_v56  ;;  %v551_v44 = vpop.f32.mrb[7].mxu1  ;;  %839 = vst [vmem:[%s1357_s8 + $0x28] sm:$0xff] %v807_v39  ;;  %v712_v47 = vadd.f32 %v1346_v56, %v471_v43  ;;  %vm745_vm12 = vcmp.ge.f32.partialorder %v713_v41, 0.0 }
 0x10c   : > { %855 = vst [vmem:[%s1357_s8 + $0xa8] sm:$0xff] %v823_v40  ;;  %v806_v45 = vsel %vm742_vm10, %v710_v31, %v774_v37  ;;  %v822_v46 = vsel %vm758_vm11, %v726_v32, %v790_v38  ;;  %v728_v48 = vadd.f32 %v1346_v56, %v551_v44  ;;  %v1085_v49 = vpop.f32.mrb[8].mxu0  ;;  %v777_v51 = vmul.f32 0.1, %v713_v41 }
 0x10d   : > { %v1109_v50 = vpop.f32.mrb[8].mxu1  ;;  %838 = vst [vmem:[%s1357_s8 + $0x20] sm:$0xff] %v806_v45  ;;  %854 = vst [vmem:[%s1357_s8 + $0xa0] sm:$0xff] %v822_v46  ;;  %vm761_vm13 = vcmp.ge.f32.partialorder %v729_v42, 0.0  ;;  %v793_v52 = vmul.f32 0.1, %v729_v42  ;;  %v715_v58 = vadd.f32 %v1085_v49, %v1346_v56 }
 0x10e   : > { %vm744_vm14 = vcmp.ge.f32.partialorder %v712_v47, 0.0  ;;  %v776_v53 = vmul.f32 0.1, %v712_v47  ;;  %vm760_vm15 = vcmp.ge.f32.partialorder %v728_v48, 0.0  ;;  %v792_v54 = vmul.f32 0.1, %v728_v48 }
 0x10f   : > { %v809_v55 = vsel %vm745_vm12, %v713_v41, %v777_v51  ;;  %v825_v57 = vsel %vm761_vm13, %v729_v42, %v793_v52  ;;  %v731_v59 = vadd.f32 %v1109_v50, %v1346_v56  ;;  %v481_v60 = vpop.f32.mrb[9].mxu0  ;;  %v561_v61 = vpop.f32.mrb[9].mxu1  ;;  %vm747_vm0 = vcmp.ge.f32.partialorder %v715_v58, 0.0 }
 0x110   : > { %841 = vst [vmem:[%s1357_s8 + $0x38] sm:$0xff] %v809_v55  ;;  %857 = vst [vmem:[%s1357_s8 + $0xb8] sm:$0xff] %v825_v57  ;;  %v808_v62 = vsel %vm744_vm14, %v712_v47, %v776_v53  ;;  %v824_v63 = vsel %vm760_vm15, %v728_v48, %v792_v54  ;;  %v714_v0 = vadd.f32 %v1346_v56, %v481_v60  ;;  %v1088_v2 = vpop.f32.mrb[10].mxu0  ;;  %v779_v4 = vmul.f32 0.1, %v715_v58 }
 0x111   : > { %v730_v1 = vadd.f32 %v1346_v56, %v561_v61  ;;  %v1112_v3 = vpop.f32.mrb[10].mxu1  ;;  %840 = vst [vmem:[%s1357_s8 + $0x30] sm:$0xff] %v808_v62  ;;  %856 = vst [vmem:[%s1357_s8 + $0xb0] sm:$0xff] %v824_v63  ;;  %vm763_vm1 = vcmp.ge.f32.partialorder %v731_v59, 0.0  ;;  %v795_v5 = vmul.f32 0.1, %v731_v59  ;;  %v717_v10 = vadd.f32 %v1088_v2, %v1346_v56 }
 0x112   : > { %vm746_vm2 = vcmp.ge.f32.partialorder %v714_v0, 0.0  ;;  %v778_v6 = vmul.f32 0.1, %v714_v0  ;;  %v811_v8 = vsel %vm747_vm0, %v715_v58, %v779_v4  ;;  %v733_v11 = vadd.f32 %v1112_v3, %v1346_v56  ;;  %v491_v12 = vpop.f32.mrb[11].mxu0  ;;  %v571_v13 = vpop.f32.mrb[11].mxu1 }
 0x113   : > { %vm762_vm3 = vcmp.ge.f32.partialorder %v730_v1, 0.0  ;;  %v794_v7 = vmul.f32 0.1, %v730_v1  ;;  %v827_v9 = vsel %vm763_vm1, %v731_v59, %v795_v5  ;;  %843 = vst [vmem:[%s1357_s8 + $0x48] sm:$0xff] %v811_v8  ;;  %v716_v16 = vadd.f32 %v1346_v56, %v491_v12 }
 0x114   : > { %859 = vst [vmem:[%s1357_s8 + $0xc8] sm:$0xff] %v827_v9  ;;  %v810_v14 = vsel %vm746_vm2, %v714_v0, %v778_v6  ;;  %v732_v17 = vadd.f32 %v1346_v56, %v571_v13  ;;  %v1091_v18 = vpop.f32.mrb[12].mxu0  ;;  %vm749_vm4 = vcmp.ge.f32.partialorder %v717_v10, 0.0  ;;  %v781_v20 = vmul.f32 0.1, %v717_v10 }
 0x115   : > { %v826_v15 = vsel %vm762_vm3, %v730_v1, %v794_v7  ;;  %v1115_v19 = vpop.f32.mrb[12].mxu1  ;;  %842 = vst [vmem:[%s1357_s8 + $0x40] sm:$0xff] %v810_v14  ;;  %vm765_vm5 = vcmp.ge.f32.partialorder %v733_v11, 0.0  ;;  %v797_v21 = vmul.f32 0.1, %v733_v11  ;;  %vm748_vm6 = vcmp.ge.f32.partialorder %v716_v16, 0.0 }
 0x116   : > { %858 = vst [vmem:[%s1357_s8 + $0xc0] sm:$0xff] %v826_v15  ;;  %v780_v22 = vmul.f32 0.1, %v716_v16  ;;  %vm764_vm7 = vcmp.ge.f32.partialorder %v732_v17, 0.0  ;;  %v796_v23 = vmul.f32 0.1, %v732_v17  ;;  %v813_v24 = vsel %vm749_vm4, %v717_v10, %v781_v20 }
 0x117   : > { %v829_v25 = vsel %vm765_vm5, %v733_v11, %v797_v21  ;;  %v719_v26 = vadd.f32 %v1091_v18, %v1346_v56  ;;  %v735_v27 = vadd.f32 %v1115_v19, %v1346_v56  ;;  %v501_v28 = vpop.f32.mrb[13].mxu0  ;;  %v581_v29 = vpop.f32.mrb[13].mxu1  ;;  %845 = vst [vmem:[%s1357_s8 + $0x58] sm:$0xff] %v813_v24 }
 0x118   : > { %861 = vst [vmem:[%s1357_s8 + $0xd8] sm:$0xff] %v829_v25  ;;  %v812_v30 = vsel %vm748_vm6, %v716_v16, %v780_v22  ;;  %v828_v31 = vsel %vm764_vm7, %v732_v17, %v796_v23  ;;  %v718_v32 = vadd.f32 %v1346_v56, %v501_v28  ;;  %v734_v33 = vadd.f32 %v1346_v56, %v581_v29  ;;  %v1094_v34 = vpop.f32.mrb[14].mxu0 }
 0x119   : > { %v1118_v35 = vpop.f32.mrb[14].mxu1  ;;  %844 = vst [vmem:[%s1357_s8 + $0x50] sm:$0xff] %v812_v30  ;;  %860 = vst [vmem:[%s1357_s8 + $0xd0] sm:$0xff] %v828_v31  ;;  %vm751_vm8 = vcmp.ge.f32.partialorder %v719_v26, 0.0  ;;  %v783_v36 = vmul.f32 0.1, %v719_v26  ;;  %v721_v42 = vadd.f32 %v1094_v34, %v1346_v56 }
 0x11a   : > { %vm767_vm9 = vcmp.ge.f32.partialorder %v735_v27, 0.0  ;;  %v799_v37 = vmul.f32 0.1, %v735_v27  ;;  %vm750_vm10 = vcmp.ge.f32.partialorder %v718_v32, 0.0  ;;  %v782_v38 = vmul.f32 0.1, %v718_v32 }
 0x11b   : > { %vm766_vm11 = vcmp.ge.f32.partialorder %v734_v33, 0.0  ;;  %v798_v39 = vmul.f32 0.1, %v734_v33  ;;  %v815_v40 = vsel %vm751_vm8, %v719_v26, %v783_v36  ;;  %v737_v43 = vadd.f32 %v1118_v35, %v1346_v56  ;;  %v511_v44 = vpop.f32.mrb[15].mxu0  ;;  %v591_v45 = vpop.f32.mrb[15].mxu1 }
 0x11c   : > { %v831_v41 = vsel %vm767_vm9, %v735_v27, %v799_v37  ;;  %847 = vst [vmem:[%s1357_s8 + $0x68] sm:$0xff] %v815_v40  ;;  %v814_v46 = vsel %vm750_vm10, %v718_v32, %v782_v38  ;;  %v720_v48 = vadd.f32 %v1346_v56, %v511_v44  ;;  %v736_v49 = vadd.f32 %v1346_v56, %v591_v45 }
 0x11d   : > { %863 = vst [vmem:[%s1357_s8 + $0xe8] sm:$0xff] %v831_v41  ;;  %v830_v47 = vsel %vm766_vm11, %v734_v33, %v798_v39  ;;  %846 = vst [vmem:[%s1357_s8 + $0x60] sm:$0xff] %v814_v46  ;;  %vm753_vm12 = vcmp.ge.f32.partialorder %v721_v42, 0.0  ;;  %v785_v50 = vmul.f32 0.1, %v721_v42  ;;  %vm769_vm13 = vcmp.ge.f32.partialorder %v737_v43, 0.0 }
 0x11e   : > { %862 = vst [vmem:[%s1357_s8 + $0xe0] sm:$0xff] %v830_v47  ;;  %v801_v51 = vmul.f32 0.1, %v737_v43  ;;  %vm752_vm14 = vcmp.ge.f32.partialorder %v720_v48, 0.0  ;;  %v784_v52 = vmul.f32 0.1, %v720_v48 }
 0x11f   : > { %vm768_vm15 = vcmp.ge.f32.partialorder %v736_v49, 0.0  ;;  %v800_v53 = vmul.f32 0.1, %v736_v49  ;;  %v817_v54 = vsel %vm753_vm12, %v721_v42, %v785_v50 }
 0x120   : > { %v833_v55 = vsel %vm769_vm13, %v737_v43, %v801_v51  ;;  %849 = vst [vmem:[%s1357_s8 + $0x78] sm:$0xff] %v817_v54  ;;  %v816_v57 = vsel %vm752_vm14, %v720_v48, %v784_v52 }
 0x121   : > { %865 = vst [vmem:[%s1357_s8 + $0xf8] sm:$0xff] %v833_v55  ;;  %v832_v58 = vsel %vm768_vm15, %v736_v49, %v800_v53  ;;  %848 = vst [vmem:[%s1357_s8 + $0x70] sm:$0xff] %v816_v57 }
 0x122   : > { %864 = vst [vmem:[%s1357_s8 + $0xf0] sm:$0xff] %v832_v58 }
 0x123 PF: > { %s13_s14 = sadd.s32 1, %s1213_s14   ;;  %s1432_s12 = smov %s1209_s13 }
 0x124   : > { %p10_p5 = scmp.ge.s32.totalorder %s13_s14, 34   ;;  %s1433_s13 = smov %s1435_s15 }
 0x126   :  { %12 = sbr.rel (!%p10_p5) target bundleno = 2 (0x2), region = 76 }

// kernel: slosh_forward.12
= control target key start
LH: loop header
LB: loop body
LE: loop exit
PB: predicated region body
PF: predicated region fallthrough
CT: control target
= control target key end

     0   :  { %s1235_s12 = smov 0   ;;  %s1237_s13 = smov 0   ;;  %s1428_s0 = inlined_call_operand.vmem [shape: f32[2048,128], index: 0, kind: input, shape index: {}]   ;;  %s1429_s1 = inlined_call_operand.vmem [shape: f32[128,128], index: 1, kind: input, shape index: {}]   ;;  %s1430_s2 = inlined_call_operand.vmem [shape: f32[1,128], index: 2, kind: input, shape index: {}]   ;;  %s1431_s3 = inlined_call_operand.vmem [shape: f32[2048,128], index: 3, kind: output, shape index: {}]  }
   0x1   :  { %s1239_s14 = smov 0  }
   0x2 LB: > { %s32_s15 = sadd.s32 1, %s1209_s13  ;;  %p983_p0 = scmp.ge.s32.totalorder %s1213_s14, 1  ;;  %s1213_s14 = sphi %s1239_s14, %s13_s14   ;;  %s1209_s13 = sphi %s1237_s13, %s1433_s13   ;;  %s1205_s12 = sphi %s1235_s12, %s1432_s12  }
   0x3   : > { %p34_p1 = scmp.ge.s32.totalorder %s32_s15, 8  ;;  %p188_p2 = scmp.lt.s32.totalorder %s1213_s14, 9 }
   0x5   : > { %s1435_s15 = smov (%p34_p1, %s32_s15), 0  ;;  %p189_p3 = pnand %p983_p0, %p188_p2 }
   0x6   : > { %v359_v0 = vld [vmem:[%s1429_s1] sm:$0xff] (!%p189_p3)  ;;  %v360_v1 = vld [vmem:[%s1429_s1 + $0x8] sm:$0xff] (!%p189_p3)  ;;  %v361_v2 = vld [vmem:[%s1429_s1 + $0x10] sm:$0xff] (!%p189_p3)  ;;  %s984_s22 = sshll.u32 (!%p189_p3), %s1205_s12, 5 }
   0x7   : > { %192 = sbr.rel (%p189_p3) target bundleno = 291 (0x123), region = 32  ;;  %v1119_v3 = vpack.c.bf16 (!%p189_p3), %v360_v1, %v359_v0  ;;  %v362_v4 = vld [vmem:[%s1429_s1 + $0x18] sm:$0xff] (!%p189_p3)  ;;  %p230_p4 = scmp.lt.s32.totalorder (!%p189_p3), %s984_s22, 255  ;;  %v363_v6 = vld [vmem:[%s1429_s1 + $0x20] sm:$0xff] (!%p189_p3)  ;;  %v364_v7 = vld [vmem:[%s1429_s1 + $0x28] sm:$0xff] (!%p189_p3) }
   0x8   : > { %v1123_v5 = vpack.c.bf16 (!%p189_p3), %v362_v4, %v361_v2  ;;  %v1127_v8 = vpack.c.bf16 (!%p189_p3), %v364_v7, %v363_v6  ;;  %v365_v9 = vld [vmem:[%s1429_s1 + $0x30] sm:$0xff] (!%p189_p3)  ;;  %v366_v10 = vld [vmem:[%s1429_s1 + $0x38] sm:$0xff] (!%p189_p3)  ;;  %v367_v14 = vld [vmem:[%s1429_s1 + $0x40] sm:$0xff] (!%p189_p3) }
   0x9   : > { %1120 = vmatprep.subr.bf16.mxu0 (!%p189_p3), %v1119_v3  ;;  %1151 = vmatprep.subr.bf16.mxu1 (!%p189_p3), %v1119_v3  ;;  %v1131_v13 = vpack.c.bf16 (!%p189_p3), %v366_v10, %v365_v9  ;;  %v368_v15 = vld [vmem:[%s1429_s1 + $0x48] sm:$0xff] (!%p189_p3)  ;;  %v369_v17 = vld [vmem:[%s1429_s1 + $0x50] sm:$0xff] (!%p189_p3)  ;;  %v370_v18 = vld [vmem:[%s1429_s1 + $0x58] sm:$0xff] (!%p189_p3) }
   0xa   : > { %1122 = vmatpush3.bf16.msra.mxu0 (!%p189_p3), %v1119_v3  ;;  %1159 = vmatpush3.bf16.msra.mxu1 (!%p189_p3), %v1119_v3  ;;  %v1135_v16 = vpack.c.bf16 (!%p189_p3), %v368_v15, %v367_v14  ;;  %v1139_v19 = vpack.c.bf16 (!%p189_p3), %v370_v18, %v369_v17  ;;  %v371_v20 = vld [vmem:[%s1429_s1 + $0x60] sm:$0xff] (!%p189_p3)  ;;  %v372_v21 = vld [vmem:[%s1429_s1 + $0x68] sm:$0xff] (!%p189_p3)  ;;  %v373_v23 = vld [vmem:[%s1429_s1 + $0x70] sm:$0xff] (!%p189_p3) }
   0xb   : > { %1124 = vmatprep.subr.bf16.mxu0 (!%p189_p3), %v1123_v5  ;;  %1152 = vmatprep.subr.bf16.mxu1 (!%p189_p3), %v1123_v5  ;;  %v1143_v22 = vpack.c.bf16 (!%p189_p3), %v372_v21, %v371_v20  ;;  %v374_v24 = vld [vmem:[%s1429_s1 + $0x78] sm:$0xff] (!%p189_p3)  ;;  %v1346_v56 = vld [vmem:[%s1430_s2] ss:$0 sm:$0xff] (!%p189_p3) }
   0xc   : > { %v1147_v25 = vpack.c.bf16 (!%p189_p3), %v374_v24, %v373_v23 }
   0xe   : > { %s1437_s22 = smov (!%p230_p4, %s984_s22), 255  ;;  %1126 = vmatpush3.bf16.msra.mxu0 %v1123_v5  ;;  %1160 = vmatpush3.bf16.msra.mxu1 %v1123_v5 }
   0xf   : > { %s985_s29 = sshll.u32 %s1437_s22, 3  ;;  %1128 = vmatprep.subr.bf16.mxu0 %v1127_v8  ;;  %1153 = vmatprep.subr.bf16.mxu1 %v1127_v8 }
  0x10   : > { %s1285_s9 = scalar_lea.vmem %s1428_s0, %s985_s29  ;;  %s1357_s8 = scalar_lea.vmem %s1431_s3, %s985_s29 }
  0x11   : > { %v327_v11 = vld [vmem:[%s1285_s9] sm:$0xff]  ;;  %v328_v26 = vld [vmem:[%s1285_s9 + $0x8] sm:$0xff]  ;;  %v329_v28 = vld [vmem:[%s1285_s9 + $0x10] sm:$0xff] }
  0x12   : > { %v343_v12 = vld [vmem:[%s1285_s9 + $0x80] sm:$0xff]  ;;  %1071 = vmatprep.mubr.f32.mxu0 %v327_v11  ;;  %1130 = vmatpush3.bf16.msra.mxu0 %v1127_v8  ;;  %v344_v27 = vld [vmem:[%s1285_s9 + $0x88] sm:$0xff]  ;;  %v345_v29 = vld [vmem:[%s1285_s9 + $0x90] sm:$0xff] }
  0x13   : > { %1095 = vmatprep.mubr.f32.mxu1 %v343_v12  ;;  %1161 = vmatpush3.bf16.msra.mxu1 %v1127_v8  ;;  %v330_v30 = vld [vmem:[%s1285_s9 + $0x18] sm:$0xff]  ;;  %v331_v32 = vld [vmem:[%s1285_s9 + $0x20] sm:$0xff]  ;;  %v332_v34 = vld [vmem:[%s1285_s9 + $0x28] sm:$0xff] }
  0x14   : > { %1132 = vmatprep.subr.bf16.mxu0 %v1131_v13  ;;  %1154 = vmatprep.subr.bf16.mxu1 %v1131_v13  ;;  %v346_v31 = vld [vmem:[%s1285_s9 + $0x98] sm:$0xff]  ;;  %v347_v33 = vld [vmem:[%s1285_s9 + $0xa0] sm:$0xff]  ;;  %v348_v35 = vld [vmem:[%s1285_s9 + $0xa8] sm:$0xff] }
  0x15   : > { %v333_v36 = vld [vmem:[%s1285_s9 + $0x30] sm:$0xff]  ;;  %v334_v38 = vld [vmem:[%s1285_s9 + $0x38] sm:$0xff]  ;;  %v335_v40 = vld [vmem:[%s1285_s9 + $0x40] sm:$0xff] }
  0x16   : > { %1134 = vmatpush3.bf16.msra.mxu0 %v1131_v13  ;;  %v349_v37 = vld [vmem:[%s1285_s9 + $0xb0] sm:$0xff]  ;;  %v350_v39 = vld [vmem:[%s1285_s9 + $0xb8] sm:$0xff]  ;;  %v351_v41 = vld [vmem:[%s1285_s9 + $0xc0] sm:$0xff] }
  0x17   : > { %1162 = vmatpush3.bf16.msra.mxu1 %v1131_v13  ;;  %1136 = vmatprep.subr.bf16.mxu0 %v1135_v16  ;;  %v336_v42 = vld [vmem:[%s1285_s9 + $0x48] sm:$0xff]  ;;  %v337_v44 = vld [vmem:[%s1285_s9 + $0x50] sm:$0xff]  ;;  %v338_v46 = vld [vmem:[%s1285_s9 + $0x58] sm:$0xff] }
  0x18   : > { %1155 = vmatprep.subr.bf16.mxu1 %v1135_v16  ;;  %v352_v43 = vld [vmem:[%s1285_s9 + $0xc8] sm:$0xff]  ;;  %v353_v45 = vld [vmem:[%s1285_s9 + $0xd0] sm:$0xff]  ;;  %v354_v47 = vld [vmem:[%s1285_s9 + $0xd8] sm:$0xff] }
  0x19   : > { %v339_v48 = vld [vmem:[%s1285_s9 + $0x60] sm:$0xff]  ;;  %v340_v50 = vld [vmem:[%s1285_s9 + $0x68] sm:$0xff]  ;;  %v341_v52 = vld [vmem:[%s1285_s9 + $0x70] sm:$0xff] }
  0x1a   : > { %1138 = vmatpush3.bf16.msra.mxu0 %v1135_v16  ;;  %v355_v49 = vld [vmem:[%s1285_s9 + $0xe0] sm:$0xff]  ;;  %v356_v51 = vld [vmem:[%s1285_s9 + $0xe8] sm:$0xff]  ;;  %v357_v53 = vld [vmem:[%s1285_s9 + $0xf0] sm:$0xff] }
  0x1b   : > { %1163 = vmatpush3.bf16.msra.mxu1 %v1135_v16  ;;  %1140 = vmatprep.subr.bf16.mxu0 %v1139_v19  ;;  %v342_v54 = vld [vmem:[%s1285_s9 + $0x78] sm:$0xff] }
  0x1c   : > { %1156 = vmatprep.subr.bf16.mxu1 %v1139_v19  ;;  %v358_v55 = vld [vmem:[%s1285_s9 + $0xf8] sm:$0xff] }
  0x1e   : > { %1142 = vmatpush3.bf16.msra.mxu0 %v1139_v19 }
  0x1f   : > { %1164 = vmatpush3.bf16.msra.mxu1 %v1139_v19  ;;  %1144 = vmatprep.subr.bf16.mxu0 %v1143_v22 }
  0x20   : > { %1157 = vmatprep.subr.bf16.mxu1 %v1143_v22 }
  0x22   : > { %1146 = vmatpush3.bf16.msra.mxu0 %v1143_v22 }
  0x23   : > { %1165 = vmatpush3.bf16.msra.mxu1 %v1143_v22  ;;  %1148 = vmatprep.subr.bf16.mxu0 %v1147_v25 }
  0x24   : > { %1158 = vmatprep.subr.bf16.mxu1 %v1147_v25 }
  0x26   : > { %1150 = vmatpush3.bf16.msra.mxu0 %v1147_v25 }
  0x27   : > { %1166 = vmatpush3.bf16.msra.mxu1 %v1147_v25 }
  0x29   : > { %1072 = vmatmul.mubr.f32.vlgmr.msra.gmra.mrb[0].mxu0 %v328_v26 }
  0x2a   : > { %1096 = vmatmul.mubr.f32.vlgmr.msra.gmra.mrb[0].mxu1 %v344_v27  ;;  %1074 = vmatprep.mubr.f32.mxu0 %v329_v28 }
  0x2b   : > { %1098 = vmatprep.mubr.f32.mxu1 %v345_v29 }
  0x2d   : > { %1075 = vmatmul.mubr.f32.gmra.mrb[2].mxu0 %v330_v30 }
  0x2e   : > { %1099 = vmatmul.mubr.f32.gmra.mrb[2].mxu1 %v346_v31  ;;  %1077 = vmatprep.mubr.f32.mxu0 %v331_v32 }
  0x2f   : > { %1101 = vmatprep.mubr.f32.mxu1 %v347_v33 }
  0x31   : > { %1078 = vmatmul.mubr.f32.gmra.mrb[4].mxu0 %v332_v34 }
  0x32   : > { %1102 = vmatmul.mubr.f32.gmra.mrb[4].mxu1 %v348_v35  ;;  %1080 = vmatprep.mubr.f32.mxu0 %v333_v36 }
  0x33   : > { %1104 = vmatprep.mubr.f32.mxu1 %v349_v37 }
  0x35   : > { %1081 = vmatmul.mubr.f32.gmra.mrb[6].mxu0 %v334_v38 }
  0x36   : > { %1105 = vmatmul.mubr.f32.gmra.mrb[6].mxu1 %v350_v39  ;;  %1083 = vmatprep.mubr.f32.mxu0 %v335_v40 }
  0x37   : > { %1107 = vmatprep.mubr.f32.mxu1 %v351_v41 }
  0x39   : > { %1084 = vmatmul.mubr.f32.gmra.mrb[8].mxu0 %v336_v42 }
  0x3a   : > { %1108 = vmatmul.mubr.f32.gmra.mrb[8].mxu1 %v352_v43  ;;  %1086 = vmatprep.mubr.f32.mxu0 %v337_v44 }
  0x3b   : > { %1110 = vmatprep.mubr.f32.mxu1 %v353_v45 }
  0x3d   : > { %1087 = vmatmul.mubr.f32.gmra.mrb[10].mxu0 %v338_v46 }
  0x3e   : > { %1111 = vmatmul.mubr.f32.gmra.mrb[10].mxu1 %v354_v47  ;;  %1089 = vmatprep.mubr.f32.mxu0 %v339_v48 }
  0x3f   : > { %1113 = vmatprep.mubr.f32.mxu1 %v355_v49 }
  0x41   : > { %1090 = vmatmul.mubr.f32.gmra.mrb[12].mxu0 %v340_v50 }
  0x42   : > { %1114 = vmatmul.mubr.f32.gmra.mrb[12].mxu1 %v356_v51  ;;  %1092 = vmatprep.mubr.f32.mxu0 %v341_v52 }
  0x43   : > { %1116 = vmatprep.mubr.f32.mxu1 %v357_v53 }
  0x45   : > { %1093 = vmatmul.mubr.f32.gmra.mrb[14].mxu0 %v342_v54 }
  0x46   : > { %1117 = vmatmul.mubr.f32.gmra.mrb[14].mxu1 %v358_v55 }
  0xfc   : > { %v1073_v57 = vpop.f32.mrb[0].mxu0 }
  0xfd   : > { %v1097_v58 = vpop.f32.mrb[0].mxu1  ;;  %v707_v59 = vadd.f32 %v1073_v57, %v1346_v56  ;;  %v441_v61 = vpop.f32.mrb[1].mxu0 }
  0xfe   : > { %v723_v60 = vadd.f32 %v1097_v58, %v1346_v56  ;;  %v521_v62 = vpop.f32.mrb[1].mxu1  ;;  %v706_v63 = vadd.f32 %v1346_v56, %v441_v61 }
  0xff   : > { %v722_v0 = vadd.f32 %v1346_v56, %v521_v62  ;;  %vm739_vm0 = vcmp.ge.f32.partialorder %v707_v59, 0.0  ;;  %v771_v1 = vmul.f32 0.1, %v707_v59 }
 0x100   : > { %vm755_vm1 = vcmp.ge.f32.partialorder %v723_v60, 0.0  ;;  %v787_v2 = vmul.f32 0.1, %v723_v60  ;;  %vm738_vm2 = vcmp.ge.f32.partialorder %v706_v63, 0.0  ;;  %v770_v3 = vmul.f32 0.1, %v706_v63 }
 0x101   : > { %vm754_vm3 = vcmp.ge.f32.partialorder %v722_v0, 0.0  ;;  %v786_v4 = vmul.f32 0.1, %v722_v0  ;;  %v803_v5 = vsel %vm739_vm0, %v707_v59, %v771_v1  ;;  %v1076_v7 = vpop.f32.mrb[2].mxu0  ;;  %v1100_v8 = vpop.f32.mrb[2].mxu1 }
 0x102   : > { %v819_v6 = vsel %vm755_vm1, %v723_v60, %v787_v2  ;;  %835 = vst [vmem:[%s1357_s8 + $0x8] sm:$0xff] %v803_v5  ;;  %v802_v9 = vsel %vm738_vm2, %v706_v63, %v770_v3  ;;  %v709_v11 = vadd.f32 %v1076_v7, %v1346_v56  ;;  %v725_v12 = vadd.f32 %v1100_v8, %v1346_v56  ;;  %v451_v13 = vpop.f32.mrb[3].mxu0  ;;  %v531_v14 = vpop.f32.mrb[3].mxu1 }
 0x103   : > { %851 = vst [vmem:[%s1357_s8 + $0x88] sm:$0xff] %v819_v6  ;;  %v818_v10 = vsel %vm754_vm3, %v722_v0, %v786_v4  ;;  %834 = vst [vmem:[%s1357_s8] sm:$0xff] %v802_v9  ;;  %v708_v15 = vadd.f32 %v1346_v56, %v451_v13  ;;  %v724_v16 = vadd.f32 %v1346_v56, %v531_v14 }
 0x104   : > { %850 = vst [vmem:[%s1357_s8 + $0x80] sm:$0xff] %v818_v10  ;;  %vm741_vm4 = vcmp.ge.f32.partialorder %v709_v11, 0.0  ;;  %v773_v17 = vmul.f32 0.1, %v709_v11  ;;  %vm757_vm5 = vcmp.ge.f32.partialorder %v725_v12, 0.0  ;;  %v1079_v23 = vpop.f32.mrb[4].mxu0 }
 0x105   : > { %v789_v18 = vmul.f32 0.1, %v725_v12  ;;  %vm740_vm6 = vcmp.ge.f32.partialorder %v708_v15, 0.0  ;;  %v772_v19 = vmul.f32 0.1, %v708_v15  ;;  %vm756_vm7 = vcmp.ge.f32.partialorder %v724_v16, 0.0 }
 0x106   : > { %v788_v20 = vmul.f32 0.1, %v724_v16  ;;  %v805_v21 = vsel %vm741_vm4, %v709_v11, %v773_v17  ;;  %v1103_v24 = vpop.f32.mrb[4].mxu1  ;;  %v711_v27 = vadd.f32 %v1079_v23, %v1346_v56  ;;  %v461_v29 = vpop.f32.mrb[5].mxu0 }
 0x107   : > { %v821_v22 = vsel %vm757_vm5, %v725_v12, %v789_v18  ;;  %837 = vst [vmem:[%s1357_s8 + $0x18] sm:$0xff] %v805_v21  ;;  %v804_v25 = vsel %vm740_vm6, %v708_v15, %v772_v19  ;;  %v727_v28 = vadd.f32 %v1103_v24, %v1346_v56  ;;  %v541_v30 = vpop.f32.mrb[5].mxu1  ;;  %v710_v31 = vadd.f32 %v1346_v56, %v461_v29 }
 0x108   : > { %853 = vst [vmem:[%s1357_s8 + $0x98] sm:$0xff] %v821_v22  ;;  %v820_v26 = vsel %vm756_vm7, %v724_v16, %v788_v20  ;;  %836 = vst [vmem:[%s1357_s8 + $0x10] sm:$0xff] %v804_v25  ;;  %v726_v32 = vadd.f32 %v1346_v56, %v541_v30  ;;  %v1082_v33 = vpop.f32.mrb[6].mxu0  ;;  %vm743_vm8 = vcmp.ge.f32.partialorder %v711_v27, 0.0  ;;  %v775_v35 = vmul.f32 0.1, %v711_v27 }
 0x109   : > { %852 = vst [vmem:[%s1357_s8 + $0x90] sm:$0xff] %v820_v26  ;;  %v1106_v34 = vpop.f32.mrb[6].mxu1  ;;  %vm759_vm9 = vcmp.ge.f32.partialorder %v727_v28, 0.0  ;;  %v791_v36 = vmul.f32 0.1, %v727_v28  ;;  %vm742_vm10 = vcmp.ge.f32.partialorder %v710_v31, 0.0  ;;  %v713_v41 = vadd.f32 %v1082_v33, %v1346_v56 }
 0x10a   : > { %v774_v37 = vmul.f32 0.1, %v710_v31  ;;  %vm758_vm11 = vcmp.ge.f32.partialorder %v726_v32, 0.0  ;;  %v790_v38 = vmul.f32 0.1, %v726_v32  ;;  %v807_v39 = vsel %vm743_vm8, %v711_v27, %v775_v35  ;;  %v471_v43 = vpop.f32.mrb[7].mxu0 }
 0x10b   : > { %v823_v40 = vsel %vm759_vm9, %v727_v28, %v791_v36  ;;  %v729_v42 = vadd.f32 %v1106_v34, %v1346_v56  ;;  %v551_v44 = vpop.f32.mrb[7].mxu1  ;;  %839 = vst [vmem:[%s1357_s8 + $0x28] sm:$0xff] %v807_v39  ;;  %v712_v47 = vadd.f32 %v1346_v56, %v471_v43  ;;  %vm745_vm12 = vcmp.ge.f32.partialorder %v713_v41, 0.0 }
 0x10c   : > { %855 = vst [vmem:[%s1357_s8 + $0xa8] sm:$0xff] %v823_v40  ;;  %v806_v45 = vsel %vm742_vm10, %v710_v31, %v774_v37  ;;  %v822_v46 = vsel %vm758_vm11, %v726_v32, %v790_v38  ;;  %v728_v48 = vadd.f32 %v1346_v56, %v551_v44  ;;  %v1085_v49 = vpop.f32.mrb[8].mxu0  ;;  %v777_v51 = vmul.f32 0.1, %v713_v41 }
 0x10d   : > { %v1109_v50 = vpop.f32.mrb[8].mxu1  ;;  %838 = vst [vmem:[%s1357_s8 + $0x20] sm:$0xff] %v806_v45  ;;  %854 = vst [vmem:[%s1357_s8 + $0xa0] sm:$0xff] %v822_v46  ;;  %vm761_vm13 = vcmp.ge.f32.partialorder %v729_v42, 0.0  ;;  %v793_v52 = vmul.f32 0.1, %v729_v42  ;;  %v715_v58 = vadd.f32 %v1085_v49, %v1346_v56 }
 0x10e   : > { %vm744_vm14 = vcmp.ge.f32.partialorder %v712_v47, 0.0  ;;  %v776_v53 = vmul.f32 0.1, %v712_v47  ;;  %vm760_vm15 = vcmp.ge.f32.partialorder %v728_v48, 0.0  ;;  %v792_v54 = vmul.f32 0.1, %v728_v48 }
 0x10f   : > { %v809_v55 = vsel %vm745_vm12, %v713_v41, %v777_v51  ;;  %v825_v57 = vsel %vm761_vm13, %v729_v42, %v793_v52  ;;  %v731_v59 = vadd.f32 %v1109_v50, %v1346_v56  ;;  %v481_v60 = vpop.f32.mrb[9].mxu0  ;;  %v561_v61 = vpop.f32.mrb[9].mxu1  ;;  %vm747_vm0 = vcmp.ge.f32.partialorder %v715_v58, 0.0 }
 0x110   : > { %841 = vst [vmem:[%s1357_s8 + $0x38] sm:$0xff] %v809_v55  ;;  %857 = vst [vmem:[%s1357_s8 + $0xb8] sm:$0xff] %v825_v57  ;;  %v808_v62 = vsel %vm744_vm14, %v712_v47, %v776_v53  ;;  %v824_v63 = vsel %vm760_vm15, %v728_v48, %v792_v54  ;;  %v714_v0 = vadd.f32 %v1346_v56, %v481_v60  ;;  %v1088_v2 = vpop.f32.mrb[10].mxu0  ;;  %v779_v4 = vmul.f32 0.1, %v715_v58 }
 0x111   : > { %v730_v1 = vadd.f32 %v1346_v56, %v561_v61  ;;  %v1112_v3 = vpop.f32.mrb[10].mxu1  ;;  %840 = vst [vmem:[%s1357_s8 + $0x30] sm:$0xff] %v808_v62  ;;  %856 = vst [vmem:[%s1357_s8 + $0xb0] sm:$0xff] %v824_v63  ;;  %vm763_vm1 = vcmp.ge.f32.partialorder %v731_v59, 0.0  ;;  %v795_v5 = vmul.f32 0.1, %v731_v59  ;;  %v717_v10 = vadd.f32 %v1088_v2, %v1346_v56 }
 0x112   : > { %vm746_vm2 = vcmp.ge.f32.partialorder %v714_v0, 0.0  ;;  %v778_v6 = vmul.f32 0.1, %v714_v0  ;;  %v811_v8 = vsel %vm747_vm0, %v715_v58, %v779_v4  ;;  %v733_v11 = vadd.f32 %v1112_v3, %v1346_v56  ;;  %v491_v12 = vpop.f32.mrb[11].mxu0  ;;  %v571_v13 = vpop.f32.mrb[11].mxu1 }
 0x113   : > { %vm762_vm3 = vcmp.ge.f32.partialorder %v730_v1, 0.0  ;;  %v794_v7 = vmul.f32 0.1, %v730_v1  ;;  %v827_v9 = vsel %vm763_vm1, %v731_v59, %v795_v5  ;;  %843 = vst [vmem:[%s1357_s8 + $0x48] sm:$0xff] %v811_v8  ;;  %v716_v16 = vadd.f32 %v1346_v56, %v491_v12 }
 0x114   : > { %859 = vst [vmem:[%s1357_s8 + $0xc8] sm:$0xff] %v827_v9  ;;  %v810_v14 = vsel %vm746_vm2, %v714_v0, %v778_v6  ;;  %v732_v17 = vadd.f32 %v1346_v56, %v571_v13  ;;  %v1091_v18 = vpop.f32.mrb[12].mxu0  ;;  %vm749_vm4 = vcmp.ge.f32.partialorder %v717_v10, 0.0  ;;  %v781_v20 = vmul.f32 0.1, %v717_v10 }
 0x115   : > { %v826_v15 = vsel %vm762_vm3, %v730_v1, %v794_v7  ;;  %v1115_v19 = vpop.f32.mrb[12].mxu1  ;;  %842 = vst [vmem:[%s1357_s8 + $0x40] sm:$0xff] %v810_v14  ;;  %vm765_vm5 = vcmp.ge.f32.partialorder %v733_v11, 0.0  ;;  %v797_v21 = vmul.f32 0.1, %v733_v11  ;;  %vm748_vm6 = vcmp.ge.f32.partialorder %v716_v16, 0.0 }
 0x116   : > { %858 = vst [vmem:[%s1357_s8 + $0xc0] sm:$0xff] %v826_v15  ;;  %v780_v22 = vmul.f32 0.1, %v716_v16  ;;  %vm764_vm7 = vcmp.ge.f32.partialorder %v732_v17, 0.0  ;;  %v796_v23 = vmul.f32 0.1, %v732_v17  ;;  %v813_v24 = vsel %vm749_vm4, %v717_v10, %v781_v20 }
 0x117   : > { %v829_v25 = vsel %vm765_vm5, %v733_v11, %v797_v21  ;;  %v719_v26 = vadd.f32 %v1091_v18, %v1346_v56  ;;  %v735_v27 = vadd.f32 %v1115_v19, %v1346_v56  ;;  %v501_v28 = vpop.f32.mrb[13].mxu0  ;;  %v581_v29 = vpop.f32.mrb[13].mxu1  ;;  %845 = vst [vmem:[%s1357_s8 + $0x58] sm:$0xff] %v813_v24 }
 0x118   : > { %861 = vst [vmem:[%s1357_s8 + $0xd8] sm:$0xff] %v829_v25  ;;  %v812_v30 = vsel %vm748_vm6, %v716_v16, %v780_v22  ;;  %v828_v31 = vsel %vm764_vm7, %v732_v17, %v796_v23  ;;  %v718_v32 = vadd.f32 %v1346_v56, %v501_v28  ;;  %v734_v33 = vadd.f32 %v1346_v56, %v581_v29  ;;  %v1094_v34 = vpop.f32.mrb[14].mxu0 }
 0x119   : > { %v1118_v35 = vpop.f32.mrb[14].mxu1  ;;  %844 = vst [vmem:[%s1357_s8 + $0x50] sm:$0xff] %v812_v30  ;;  %860 = vst [vmem:[%s1357_s8 + $0xd0] sm:$0xff] %v828_v31  ;;  %vm751_vm8 = vcmp.ge.f32.partialorder %v719_v26, 0.0  ;;  %v783_v36 = vmul.f32 0.1, %v719_v26  ;;  %v721_v42 = vadd.f32 %v1094_v34, %v1346_v56 }
 0x11a   : > { %vm767_vm9 = vcmp.ge.f32.partialorder %v735_v27, 0.0  ;;  %v799_v37 = vmul.f32 0.1, %v735_v27  ;;  %vm750_vm10 = vcmp.ge.f32.partialorder %v718_v32, 0.0  ;;  %v782_v38 = vmul.f32 0.1, %v718_v32 }
 0x11b   : > { %vm766_vm11 = vcmp.ge.f32.partialorder %v734_v33, 0.0  ;;  %v798_v39 = vmul.f32 0.1, %v734_v33  ;;  %v815_v40 = vsel %vm751_vm8, %v719_v26, %v783_v36  ;;  %v737_v43 = vadd.f32 %v1118_v35, %v1346_v56  ;;  %v511_v44 = vpop.f32.mrb[15].mxu0  ;;  %v591_v45 = vpop.f32.mrb[15].mxu1 }
 0x11c   : > { %v831_v41 = vsel %vm767_vm9, %v735_v27, %v799_v37  ;;  %847 = vst [vmem:[%s1357_s8 + $0x68] sm:$0xff] %v815_v40  ;;  %v814_v46 = vsel %vm750_vm10, %v718_v32, %v782_v38  ;;  %v720_v48 = vadd.f32 %v1346_v56, %v511_v44  ;;  %v736_v49 = vadd.f32 %v1346_v56, %v591_v45 }
 0x11d   : > { %863 = vst [vmem:[%s1357_s8 + $0xe8] sm:$0xff] %v831_v41  ;;  %v830_v47 = vsel %vm766_vm11, %v734_v33, %v798_v39  ;;  %846 = vst [vmem:[%s1357_s8 + $0x60] sm:$0xff] %v814_v46  ;;  %vm753_vm12 = vcmp.ge.f32.partialorder %v721_v42, 0.0  ;;  %v785_v50 = vmul.f32 0.1, %v721_v42  ;;  %vm769_vm13 = vcmp.ge.f32.partialorder %v737_v43, 0.0 }
 0x11e   : > { %862 = vst [vmem:[%s1357_s8 + $0xe0] sm:$0xff] %v830_v47  ;;  %v801_v51 = vmul.f32 0.1, %v737_v43  ;;  %vm752_vm14 = vcmp.ge.f32.partialorder %v720_v48, 0.0  ;;  %v784_v52 = vmul.f32 0.1, %v720_v48 }
 0x11f   : > { %vm768_vm15 = vcmp.ge.f32.partialorder %v736_v49, 0.0  ;;  %v800_v53 = vmul.f32 0.1, %v736_v49  ;;  %v817_v54 = vsel %vm753_vm12, %v721_v42, %v785_v50 }
 0x120   : > { %v833_v55 = vsel %vm769_vm13, %v737_v43, %v801_v51  ;;  %849 = vst [vmem:[%s1357_s8 + $0x78] sm:$0xff] %v817_v54  ;;  %v816_v57 = vsel %vm752_vm14, %v720_v48, %v784_v52 }
 0x121   : > { %865 = vst [vmem:[%s1357_s8 + $0xf8] sm:$0xff] %v833_v55  ;;  %v832_v58 = vsel %vm768_vm15, %v736_v49, %v800_v53  ;;  %848 = vst [vmem:[%s1357_s8 + $0x70] sm:$0xff] %v816_v57 }
 0x122   : > { %864 = vst [vmem:[%s1357_s8 + $0xf0] sm:$0xff] %v832_v58 }
 0x123 PF: > { %s13_s14 = sadd.s32 1, %s1213_s14   ;;  %s1432_s12 = smov %s1209_s13 }
 0x124   : > { %p10_p5 = scmp.ge.s32.totalorder %s13_s14, 10   ;;  %s1433_s13 = smov %s1435_s15 }
 0x126   :  { %12 = sbr.rel (!%p10_p5) target bundleno = 2 (0x2), region = 76 }

// kernel: slosh_forward.13
= control target key start
LH: loop header
LB: loop body
LE: loop exit
PB: predicated region body
PF: predicated region fallthrough
CT: control target
= control target key end

     0   :  { %s814_s12 = smov 0   ;;  %s816_s13 = smov 0   ;;  %s931_s0 = inlined_call_operand.vmem [shape: f32[8,4096], index: 0, kind: input, shape index: {}]   ;;  %s932_s1 = inlined_call_operand.vmem [shape: f32[4096,128], index: 1, kind: input, shape index: {}]   ;;  %s933_s2 = inlined_call_operand.vmem [shape: f32[1,128], index: 2, kind: input, shape index: {}]   ;;  %s934_s3 = inlined_call_operand.vmem [shape: f32[8,128], index: 3, kind: output, shape index: {}]  }
   0x1   :  { %s818_s14 = smov 0  }
   0x2 LB: > { %s25_s15 = sadd.s32 1, %s787_s13  ;;  %p599_p0 = scmp.ge.s32.totalorder %s791_s14, 1  ;;  %s791_s14 = sphi %s818_s14, %s13_s14   ;;  %s787_s13 = sphi %s816_s13, %s936_s13   ;;  %s783_s12 = sphi %s814_s12, %s935_s12  }
   0x3   : > { %p26_p1 = scmp.ge.s32.totalorder %s25_s15, 8  ;;  %p189_p2 = scmp.lt.s32.totalorder %s791_s14, 9 }
   0x5   : > { %s938_s15 = smov (%p26_p1, %s25_s15), 0  ;;  %p190_p3 = pnand %p599_p0, %p189_p2 }
   0x6   : > { %s600_s16 = sshll.u32 (!%p190_p3), %s783_s12, 2  ;;  %s602_s17 = sshll.u32 (!%p190_p3), %s783_s12, 6 }
   0x7   : > { %193 = sbr.rel (%p190_p3) target bundleno = 293 (0x125), region = 32  ;;  %p233_p4 = scmp.lt.s32.totalorder (!%p190_p3), %s600_s16, 31 }
   0x8   : > { %p241_p5 = scmp.lt.s32.totalorder (!%p190_p3), %s602_s17, 511  ;;  %p604_p6 = scmp.ne.s32.totalorder (!%p190_p3), %s783_s12, 0 }
   0xe   : > { %s940_s16 = smov (!%p233_p4, %s600_s16), 31  ;;  %s942_s17 = smov (!%p241_p5, %s602_s17), 511 }
   0xf   : > { %s601_s18 = sshll.u32 %s940_s16, 3  ;;  %s603_s22 = sshll.u32 %s942_s17, 3  ;;  %v793_v0 = vmov (!%p604_p6), 0.0  }
  0x10   : > { %s839_s21 = scalar_lea.vmem %s931_s0, %s601_s18  ;;  %s844_s25 = scalar_lea.vmem %s932_s1, %s603_s22  ;;  %263 = vst [vmem:[#allocation2] sm:$0xff] (!%p604_p6), %v793_v0 }
  0x11   : > { %262 = sbr.rel (%p604_p6) target bundleno = 24 (0x18), region = 36 }
  0x18 PF: > { %v285_v1 = vld [vmem:[%s844_s25 + $0x80] sm:$0xff]  ;;  %v286_v2 = vld [vmem:[%s844_s25 + $0x88] sm:$0xff]  ;;  %v287_v12 = vld [vmem:[%s844_s25 + $0x90] sm:$0xff]  ;;  %p605_p7 = scmp.ne.s32.totalorder %s783_s12, 7 }
  0x19   : > { %v317_v3 = vld [vmem:[%s844_s25 + $0x180] sm:$0xff]  ;;  %v680_v4 = vpack.c.bf16 %v286_v2, %v285_v1  ;;  %v318_v5 = vld [vmem:[%s844_s25 + $0x188] sm:$0xff]  ;;  %v288_v14 = vld [vmem:[%s844_s25 + $0x98] sm:$0xff] }
  0x1a   : > { %v269_v6 = vld [vmem:[%s844_s25] sm:$0xff]  ;;  %v270_v7 = vld [vmem:[%s844_s25 + $0x8] sm:$0xff]  ;;  %v712_v8 = vpack.c.bf16 %v318_v5, %v317_v3  ;;  %v319_v15 = vld [vmem:[%s844_s25 + $0x190] sm:$0xff]  ;;  %v684_v17 = vpack.c.bf16 %v288_v14, %v287_v12 }
  0x1b   : > { %v682_v9 = vpack.c.bf16 %v270_v7, %v269_v6  ;;  %v301_v10 = vld [vmem:[%s844_s25 + $0x100] sm:$0xff]  ;;  %v302_v11 = vld [vmem:[%s844_s25 + $0x108] sm:$0xff]  ;;  %681 = vmatprep.subr.bf16.mxu0 %v680_v4  ;;  %v320_v16 = vld [vmem:[%s844_s25 + $0x198] sm:$0xff] }
  0x1c   : > { %v714_v13 = vpack.c.bf16 %v302_v11, %v301_v10  ;;  %713 = vmatprep.subr.bf16.mxu1 %v712_v8  ;;  %v716_v18 = vpack.c.bf16 %v320_v16, %v319_v15  ;;  %v271_v19 = vld [vmem:[%s844_s25 + $0x10] sm:$0xff]  ;;  %v272_v20 = vld [vmem:[%s844_s25 + $0x18] sm:$0xff]  ;;  %v289_v24 = vld [vmem:[%s844_s25 + $0xa0] sm:$0xff] }
  0x1d   : > { %683 = vmatpush3.bf16.msra.mxu0 %v682_v9  ;;  %v303_v21 = vld [vmem:[%s844_s25 + $0x110] sm:$0xff]  ;;  %v686_v22 = vpack.c.bf16 %v272_v20, %v271_v19  ;;  %v304_v23 = vld [vmem:[%s844_s25 + $0x118] sm:$0xff]  ;;  %v290_v25 = vld [vmem:[%s844_s25 + $0xa8] sm:$0xff] }
  0x1e   : > { %715 = vmatpush3.bf16.msra.mxu1 %v714_v13  ;;  %685 = vmatprep.subr.bf16.mxu0 %v684_v17  ;;  %v718_v26 = vpack.c.bf16 %v304_v23, %v303_v21  ;;  %v688_v27 = vpack.c.bf16 %v290_v25, %v289_v24  ;;  %v321_v28 = vld [vmem:[%s844_s25 + $0x1a0] sm:$0xff]  ;;  %v322_v29 = vld [vmem:[%s844_s25 + $0x1a8] sm:$0xff]  ;;  %v291_v36 = vld [vmem:[%s844_s25 + $0xb0] sm:$0xff] }
  0x1f   : > { %717 = vmatprep.subr.bf16.mxu1 %v716_v18  ;;  %v273_v30 = vld [vmem:[%s844_s25 + $0x20] sm:$0xff]  ;;  %v720_v31 = vpack.c.bf16 %v322_v29, %v321_v28  ;;  %v274_v32 = vld [vmem:[%s844_s25 + $0x28] sm:$0xff]  ;;  %v292_v37 = vld [vmem:[%s844_s25 + $0xb8] sm:$0xff] }
  0x20   : > { %v305_v33 = vld [vmem:[%s844_s25 + $0x120] sm:$0xff]  ;;  %v306_v34 = vld [vmem:[%s844_s25 + $0x128] sm:$0xff]  ;;  %v690_v35 = vpack.c.bf16 %v274_v32, %v273_v30  ;;  %v323_v38 = vld [vmem:[%s844_s25 + $0x1b0] sm:$0xff]  ;;  %v692_v40 = vpack.c.bf16 %v292_v37, %v291_v36 }
  0x21   : > { %687 = vmatpush3.bf16.msra.mxu0 %v686_v22  ;;  %v722_v39 = vpack.c.bf16 %v306_v34, %v305_v33  ;;  %v324_v41 = vld [vmem:[%s844_s25 + $0x1b8] sm:$0xff]  ;;  %v275_v42 = vld [vmem:[%s844_s25 + $0x30] sm:$0xff]  ;;  %v293_v47 = vld [vmem:[%s844_s25 + $0xc0] sm:$0xff] }
  0x22   : > { %719 = vmatpush3.bf16.msra.mxu1 %v718_v26  ;;  %689 = vmatprep.subr.bf16.mxu0 %v688_v27  ;;  %v276_v43 = vld [vmem:[%s844_s25 + $0x38] sm:$0xff]  ;;  %v724_v44 = vpack.c.bf16 %v324_v41, %v323_v38  ;;  %v307_v45 = vld [vmem:[%s844_s25 + $0x130] sm:$0xff]  ;;  %v294_v48 = vld [vmem:[%s844_s25 + $0xc8] sm:$0xff] }
  0x23   : > { %721 = vmatprep.subr.bf16.mxu1 %v720_v31  ;;  %v308_v46 = vld [vmem:[%s844_s25 + $0x138] sm:$0xff]  ;;  %v325_v49 = vld [vmem:[%s844_s25 + $0x1c0] sm:$0xff]  ;;  %v326_v50 = vld [vmem:[%s844_s25 + $0x1c8] sm:$0xff]  ;;  %v694_v51 = vpack.c.bf16 %v276_v43, %v275_v42  ;;  %v696_v53 = vpack.c.bf16 %v294_v48, %v293_v47 }
  0x24   : > { %v726_v52 = vpack.c.bf16 %v308_v46, %v307_v45  ;;  %v277_v54 = vld [vmem:[%s844_s25 + $0x40] sm:$0xff]  ;;  %v278_v55 = vld [vmem:[%s844_s25 + $0x48] sm:$0xff]  ;;  %v728_v57 = vpack.c.bf16 %v326_v50, %v325_v49  ;;  %v295_v59 = vld [vmem:[%s844_s25 + $0xd0] sm:$0xff] }
  0x25   : > { %691 = vmatpush3.bf16.msra.mxu0 %v690_v35  ;;  %v309_v56 = vld [vmem:[%s844_s25 + $0x140] sm:$0xff]  ;;  %v310_v58 = vld [vmem:[%s844_s25 + $0x148] sm:$0xff]  ;;  %v296_v60 = vld [vmem:[%s844_s25 + $0xd8] sm:$0xff]  ;;  %v698_v63 = vpack.c.bf16 %v278_v55, %v277_v54 }
  0x26   : > { %723 = vmatpush3.bf16.msra.mxu1 %v722_v39  ;;  %693 = vmatprep.subr.bf16.mxu0 %v692_v40  ;;  %v327_v61 = vld [vmem:[%s844_s25 + $0x1d0] sm:$0xff]  ;;  %v328_v62 = vld [vmem:[%s844_s25 + $0x1d8] sm:$0xff]  ;;  %v730_v0 = vpack.c.bf16 %v310_v58, %v309_v56  ;;  %v700_v1 = vpack.c.bf16 %v296_v60, %v295_v59  ;;  %v297_v7 = vld [vmem:[%s844_s25 + $0xe0] sm:$0xff] }
  0x27   : > { %725 = vmatprep.subr.bf16.mxu1 %v724_v44  ;;  %v279_v2 = vld [vmem:[%s844_s25 + $0x50] sm:$0xff]  ;;  %v280_v3 = vld [vmem:[%s844_s25 + $0x58] sm:$0xff]  ;;  %v732_v5 = vpack.c.bf16 %v328_v62, %v327_v61  ;;  %v298_v8 = vld [vmem:[%s844_s25 + $0xe8] sm:$0xff] }
  0x28   : > { %v311_v4 = vld [vmem:[%s844_s25 + $0x150] sm:$0xff]  ;;  %v312_v6 = vld [vmem:[%s844_s25 + $0x158] sm:$0xff]  ;;  %v329_v9 = vld [vmem:[%s844_s25 + $0x1e0] sm:$0xff]  ;;  %v702_v11 = vpack.c.bf16 %v280_v3, %v279_v2  ;;  %v704_v15 = vpack.c.bf16 %v298_v8, %v297_v7 }
  0x29   : > { %695 = vmatpush3.bf16.msra.mxu0 %v694_v51  ;;  %v330_v10 = vld [vmem:[%s844_s25 + $0x1e8] sm:$0xff]  ;;  %v281_v12 = vld [vmem:[%s844_s25 + $0x60] sm:$0xff]  ;;  %v734_v14 = vpack.c.bf16 %v312_v6, %v311_v4  ;;  %v268_v18 = vld [vmem:[%s839_s21 + $0x18] sm:$0xff] }
  0x2a   : > { %727 = vmatpush3.bf16.msra.mxu1 %v726_v52  ;;  %697 = vmatprep.subr.bf16.mxu0 %v696_v53  ;;  %v282_v13 = vld [vmem:[%s844_s25 + $0x68] sm:$0xff]  ;;  %v313_v16 = vld [vmem:[%s844_s25 + $0x160] sm:$0xff]  ;;  %v736_v19 = vpack.c.bf16 %v330_v10, %v329_v9  ;;  %v299_v21 = vld [vmem:[%s844_s25 + $0xf0] sm:$0xff] }
  0x2b   : > { %729 = vmatprep.subr.bf16.mxu1 %v728_v57  ;;  %v266_v17 = vld [vmem:[%s839_s21 + $0x8] sm:$0xff]  ;;  %v300_v22 = vld [vmem:[%s844_s25 + $0xf8] sm:$0xff]  ;;  %v331_v23 = vld [vmem:[%s844_s25 + $0x1f0] sm:$0xff]  ;;  %467 = vmatprep.mubr.f32.mxu1 %v268_v18  ;;  %v706_v25 = vpack.c.bf16 %v282_v13, %v281_v12 }
  0x2c   : > { %v314_v20 = vld [vmem:[%s844_s25 + $0x168] sm:$0xff]  ;;  %397 = vmatprep.mubr.f32.mxu0 %v266_v17  ;;  %v332_v24 = vld [vmem:[%s844_s25 + $0x1f8] sm:$0xff]  ;;  %v708_v27 = vpack.c.bf16 %v300_v22, %v299_v21  ;;  %v283_v28 = vld [vmem:[%s844_s25 + $0x70] sm:$0xff] }
  0x2d   : > { %699 = vmatpush3.bf16.msra.mxu0 %v698_v63  ;;  %v738_v26 = vpack.c.bf16 %v314_v20, %v313_v16  ;;  %v284_v29 = vld [vmem:[%s844_s25 + $0x78] sm:$0xff]  ;;  %v740_v30 = vpack.c.bf16 %v332_v24, %v331_v23  ;;  %v315_v31 = vld [vmem:[%s844_s25 + $0x170] sm:$0xff]  ;;  %v265_v35 = vld [vmem:[%s839_s21] sm:$0xff] }
  0x2e   : > { %731 = vmatpush3.bf16.msra.mxu1 %v730_v0  ;;  %701 = vmatprep.subr.bf16.mxu0 %v700_v1  ;;  %v316_v32 = vld [vmem:[%s844_s25 + $0x178] sm:$0xff]  ;;  %v710_v33 = vpack.c.bf16 %v284_v29, %v283_v28  ;;  %v267_v36 = vld [vmem:[%s839_s21 + $0x10] sm:$0xff]  ;;  %v264_v43 = vld [vmem:[#allocation2] sm:$0xff] }
  0x2f   : > { %733 = vmatprep.subr.bf16.mxu1 %v732_v5  ;;  %v742_v34 = vpack.c.bf16 %v316_v32, %v315_v31  ;;  %v606_v47 = vld [vmem:[%s933_s2] ss:$0 sm:$0xff] (!%p605_p7) }
  0x31   : > { %703 = vmatpush3.bf16.msra.mxu0 %v702_v11 }
  0x32   : > { %735 = vmatpush3.bf16.msra.mxu1 %v734_v14  ;;  %705 = vmatprep.subr.bf16.mxu0 %v704_v15 }
  0x33   : > { %737 = vmatprep.subr.bf16.mxu1 %v736_v19 }
  0x35   : > { %707 = vmatpush3.bf16.msra.mxu0 %v706_v25 }
  0x36   : > { %739 = vmatpush3.bf16.msra.mxu1 %v738_v26  ;;  %709 = vmatprep.subr.bf16.mxu0 %v708_v27 }
  0x37   : > { %741 = vmatprep.subr.bf16.mxu1 %v740_v30 }
  0x39   : > { %711 = vmatpush3.bf16.msra.mxu0 %v710_v33 }
  0x3a   : > { %743 = vmatpush3.bf16.msra.mxu1 %v742_v34 }
  0x3c   : > { %398 = vmatmul.mubr.f32.vlgmr.msra.gmra.mrb[0].mxu0 %v265_v35 }
  0x3d   : > { %468 = vmatmul.mubr.f32.vlgmr.msra.gmra.mrb[0].mxu1 %v267_v36 }
 0x10f   : > { %v642_v37 = vpop.f32.mrb[0].mxu0 }
 0x110   : > { %v677_v38 = vpop.f32.mrb[0].mxu1  ;;  %v643_v39 = vpop.f32.mrb[1].mxu0 }
 0x111   : > { %v644_v40 = vadd.f32 %v643_v39, %v642_v37  ;;  %v678_v41 = vpop.f32.mrb[1].mxu1 }
 0x112   : > { %v679_v42 = vadd.f32 %v678_v41, %v677_v38  ;;  %478 = sbr.rel (%p605_p7) target bundleno = 293 (0x125), region = 40 }
 0x114   : > { %v470_v44 = vadd.f32 %v679_v42, %v644_v40 }
 0x116   : > { %v473_v45 = vadd.f32 %v470_v44, %v264_v43 }
 0x118   : > { %474 = vst [vmem:[#allocation2] sm:$0xff] %v473_v45 }
 0x11f   : > { %v479_v46 = vld [vmem:[#allocation2] sm:$0xff] }
 0x120   : > { %v487_v48 = vadd.f32 %v606_v47, %v479_v46 }
 0x122   : > { %v488_v49 = vmax.f32 %v487_v48, 0.0 }
 0x124   : > { %489 = vst [vmem:[%s934_s3] sm:$0xff] %v488_v49 }
 0x125 PF: > { %s13_s14 = sadd.s32 1, %s791_s14   ;;  %s935_s12 = smov %s787_s13 }
 0x126   : > { %p10_p8 = scmp.ge.s32.totalorder %s13_s14, 10   ;;  %s936_s13 = smov %s938_s15 }
 0x128   :  { %12 = sbr.rel (!%p10_p8) target bundleno = 2 (0x2), region = 76 }

// kernel: slosh_forward.14
= control target key start
LH: loop header
LB: loop body
LE: loop exit
PB: predicated region body
PF: predicated region fallthrough
CT: control target
= control target key end

     0   :  { %v190_v3 = vmov 0.0   ;;  %v137_v50 = vlaneseq  ;;  %s319_s1 = inlined_call_operand.vmem [shape: f32[128,256], index: 1, kind: input, shape index: {}]   ;;  %s320_s0 = inlined_call_operand.vmem [shape: f32[8,128], index: 0, kind: input, shape index: {}]   ;;  %s321_s2 = inlined_call_operand.vmem [shape: f32[1,256], index: 2, kind: input, shape index: {}]   ;;  %s322_s3 = inlined_call_operand.vmem [shape: f32[8,256], index: 3, kind: output, shape index: {}]  }
   0x1   :  { %v24_v0 = vld [vmem:[%s319_s1 + $0x8] sm:$0xff]  ;;  %v26_v1 = vld [vmem:[%s319_s1 + $0x18] sm:$0xff]  ;;  %v23_v2 = vld [vmem:[%s319_s1] sm:$0xff]  ;;  %119 = vmatprep.mubr.f32.mxu0 %v190_v3 }
   0x2   :  { %v157_v4 = vpack.c.bf16 %v26_v1, %v24_v0  ;;  %v25_v5 = vld [vmem:[%s319_s1 + $0x10] sm:$0xff]  ;;  %v28_v6 = vld [vmem:[%s319_s1 + $0x28] sm:$0xff]  ;;  %v30_v7 = vld [vmem:[%s319_s1 + $0x38] sm:$0xff]  ;;  %v138_v51 = vshrl.u32 %v137_v50, 7 }
   0x3   :  { %v159_v8 = vpack.c.bf16 %v25_v5, %v23_v2  ;;  %v161_v9 = vpack.c.bf16 %v30_v7, %v28_v6  ;;  %v27_v10 = vld [vmem:[%s319_s1 + $0x20] sm:$0xff]  ;;  %v29_v11 = vld [vmem:[%s319_s1 + $0x30] sm:$0xff]  ;;  %v32_v12 = vld [vmem:[%s319_s1 + $0x48] sm:$0xff] }
   0x4   :  { %158 = vmatprep.subr.bf16.mxu0 %v157_v4  ;;  %v34_v13 = vld [vmem:[%s319_s1 + $0x58] sm:$0xff]  ;;  %v163_v14 = vpack.c.bf16 %v29_v11, %v27_v10  ;;  %v31_v16 = vld [vmem:[%s319_s1 + $0x40] sm:$0xff]  ;;  %v33_v17 = vld [vmem:[%s319_s1 + $0x50] sm:$0xff]  ;;  %v139_v52 = vsub.s32 0, %v138_v51  ;;  %v143_v54 = vsub.s32 1, %v138_v51 }
   0x5   :  { %160 = vmatpush1.bf16.msra.mxu0 %v159_v8  ;;  %v165_v15 = vpack.c.bf16 %v34_v13, %v32_v12  ;;  %v36_v18 = vld [vmem:[%s319_s1 + $0x68] sm:$0xff]  ;;  %v38_v19 = vld [vmem:[%s319_s1 + $0x78] sm:$0xff]  ;;  %v167_v20 = vpack.c.bf16 %v33_v17, %v31_v16  ;;  %v35_v22 = vld [vmem:[%s319_s1 + $0x60] sm:$0xff] }
   0x6   :  { %162 = vmatprep.subr.bf16.mxu0 %v161_v9  ;;  %v169_v21 = vpack.c.bf16 %v38_v19, %v36_v18  ;;  %v37_v23 = vld [vmem:[%s319_s1 + $0x70] sm:$0xff]  ;;  %v40_v24 = vld [vmem:[%s319_s1 + $0x88] sm:$0xff]  ;;  %v42_v25 = vld [vmem:[%s319_s1 + $0x98] sm:$0xff] }
   0x7   :  { %v171_v26 = vpack.c.bf16 %v37_v23, %v35_v22  ;;  %v173_v27 = vpack.c.bf16 %v42_v25, %v40_v24  ;;  %v39_v28 = vld [vmem:[%s319_s1 + $0x80] sm:$0xff]  ;;  %v41_v29 = vld [vmem:[%s319_s1 + $0x90] sm:$0xff]  ;;  %v44_v30 = vld [vmem:[%s319_s1 + $0xa8] sm:$0xff] }
   0x8   :  { %v46_v31 = vld [vmem:[%s319_s1 + $0xb8] sm:$0xff]  ;;  %v175_v32 = vpack.c.bf16 %v41_v29, %v39_v28  ;;  %v43_v34 = vld [vmem:[%s319_s1 + $0xa0] sm:$0xff]  ;;  %v45_v35 = vld [vmem:[%s319_s1 + $0xb0] sm:$0xff] }
   0x9   :  { %164 = vmatpush1.bf16.msra.mxu0 %v163_v14  ;;  %v177_v33 = vpack.c.bf16 %v46_v31, %v44_v30  ;;  %v48_v36 = vld [vmem:[%s319_s1 + $0xc8] sm:$0xff]  ;;  %v50_v37 = vld [vmem:[%s319_s1 + $0xd8] sm:$0xff]  ;;  %v179_v38 = vpack.c.bf16 %v45_v35, %v43_v34  ;;  %v47_v40 = vld [vmem:[%s319_s1 + $0xc0] sm:$0xff] }
   0xa   :  { %166 = vmatprep.subr.bf16.mxu0 %v165_v15  ;;  %v181_v39 = vpack.c.bf16 %v50_v37, %v48_v36  ;;  %v49_v41 = vld [vmem:[%s319_s1 + $0xd0] sm:$0xff]  ;;  %v52_v42 = vld [vmem:[%s319_s1 + $0xe8] sm:$0xff]  ;;  %v54_v43 = vld [vmem:[%s319_s1 + $0xf8] sm:$0xff] }
   0xb   :  { %v183_v44 = vpack.c.bf16 %v49_v41, %v47_v40  ;;  %v185_v45 = vpack.c.bf16 %v54_v43, %v52_v42  ;;  %v51_v46 = vld [vmem:[%s319_s1 + $0xe0] sm:$0xff]  ;;  %v53_v47 = vld [vmem:[%s319_s1 + $0xf0] sm:$0xff] }
   0xc   :  { %v187_v48 = vpack.c.bf16 %v53_v47, %v51_v46  ;;  %v22_v49 = vld [vmem:[%s320_s0] sm:$0xff] }
   0xd   :  { %168 = vmatpush1.bf16.msra.mxu0 %v167_v20  ;;  %v135_v53 = vld [vmem:[%s321_s2] sm:$0x3] }
   0xe   :  { %170 = vmatprep.subr.bf16.mxu0 %v169_v21  ;;  %v140_v55 = vrot.slane %v135_v53, %v139_v52  ;;  %v144_v56 = vrot.slane %v135_v53, %v143_v54 }
  0x11   :  { %172 = vmatpush1.bf16.msra.mxu0 %v171_v26 }
  0x12   :  { %174 = vmatprep.subr.bf16.mxu0 %v173_v27 }
  0x15   :  { %176 = vmatpush1.bf16.msra.mxu0 %v175_v32 }
  0x16   :  { %178 = vmatprep.subr.bf16.mxu0 %v177_v33 }
  0x19   :  { %180 = vmatpush1.bf16.msra.mxu0 %v179_v38 }
  0x1a   :  { %182 = vmatprep.subr.bf16.mxu0 %v181_v39 }
  0x1d   :  { %184 = vmatpush1.bf16.msra.mxu0 %v183_v44 }
  0x1e   :  { %186 = vmatprep.subr.bf16.mxu0 %v185_v45 }
  0x21   :  { %188 = vmatpush1.bf16.msra.mxu0 %v187_v48 }
  0x24   :  { %120 = vmatmul.mubr.f32.vlgmr.msra.gmra.mrb[0].mxu0 %v22_v49 }
  0xf7   :  { %v121_v57 = vpop.f32.mrb[0].mxu0 }
  0xf8   :  { %v147_v58 = vadd.f32 %v140_v55, %v121_v57  ;;  %v123_v59 = vpop.f32.mrb[1].mxu0 }
  0xf9   :  { %v148_v60 = vadd.f32 %v144_v56, %v123_v59 }
  0xfa   :  { %v149_v61 = vmax.f32 %v147_v58, 0.0 }
  0xfb   :  { %v150_v62 = vmax.f32 %v148_v60, 0.0 }
  0xfc   :  { %151 = vst [vmem:[%s322_s3] sm:$0xff] %v149_v61 }
  0xfd   :  { %152 = vst [vmem:[%s322_s3 + $0x8] sm:$0xff] %v150_v62 }

// kernel: slosh_forward.17
= control target key start
LH: loop header
LB: loop body
LE: loop exit
PB: predicated region body
PF: predicated region fallthrough
CT: control target
= control target key end

     0   :  { %s351_s1 = inlined_call_operand.vmem [shape: f32[256,128], index: 1, kind: input, shape index: {}]   ;;  %s352_s0 = inlined_call_operand.vmem [shape: f32[8,256], index: 0, kind: input, shape index: {}]   ;;  %s353_s2 = inlined_call_operand.vmem [shape: f32[1,128], index: 2, kind: input, shape index: {}]   ;;  %s354_s3 = inlined_call_operand.vmem [shape: f32[8,128], index: 3, kind: output, shape index: {}]  }
   0x1   :  { %v38_v0 = vld [vmem:[%s351_s1 + $0x80] sm:$0xff]  ;;  %v39_v1 = vld [vmem:[%s351_s1 + $0x88] sm:$0xff]  ;;  %v40_v5 = vld [vmem:[%s351_s1 + $0x90] sm:$0xff] }
   0x2   :  { %v22_v2 = vld [vmem:[%s351_s1] sm:$0xff]  ;;  %v187_v3 = vpack.c.bf16 %v39_v1, %v38_v0  ;;  %v23_v4 = vld [vmem:[%s351_s1 + $0x8] sm:$0xff]  ;;  %v41_v6 = vld [vmem:[%s351_s1 + $0x98] sm:$0xff] }
   0x3   :  { %v189_v7 = vpack.c.bf16 %v23_v4, %v22_v2  ;;  %v191_v8 = vpack.c.bf16 %v41_v6, %v40_v5  ;;  %v24_v9 = vld [vmem:[%s351_s1 + $0x10] sm:$0xff]  ;;  %v25_v10 = vld [vmem:[%s351_s1 + $0x18] sm:$0xff]  ;;  %v42_v11 = vld [vmem:[%s351_s1 + $0xa0] sm:$0xff] }
   0x4   :  { %188 = vmatprep.subr.bf16.mxu0 %v187_v3  ;;  %v43_v12 = vld [vmem:[%s351_s1 + $0xa8] sm:$0xff]  ;;  %v193_v13 = vpack.c.bf16 %v25_v10, %v24_v9  ;;  %v26_v15 = vld [vmem:[%s351_s1 + $0x20] sm:$0xff]  ;;  %v44_v17 = vld [vmem:[%s351_s1 + $0xb0] sm:$0xff] }
   0x5   :  { %190 = vmatpush3.bf16.msra.mxu0 %v189_v7  ;;  %v195_v14 = vpack.c.bf16 %v43_v12, %v42_v11  ;;  %v27_v16 = vld [vmem:[%s351_s1 + $0x28] sm:$0xff]  ;;  %v45_v18 = vld [vmem:[%s351_s1 + $0xb8] sm:$0xff]  ;;  %v28_v21 = vld [vmem:[%s351_s1 + $0x30] sm:$0xff] }
   0x6   :  { %192 = vmatprep.subr.bf16.mxu0 %v191_v8  ;;  %v197_v19 = vpack.c.bf16 %v27_v16, %v26_v15  ;;  %v199_v20 = vpack.c.bf16 %v45_v18, %v44_v17  ;;  %v29_v22 = vld [vmem:[%s351_s1 + $0x38] sm:$0xff]  ;;  %v46_v23 = vld [vmem:[%s351_s1 + $0xc0] sm:$0xff]  ;;  %v47_v24 = vld [vmem:[%s351_s1 + $0xc8] sm:$0xff] }
   0x7   :  { %v21_v25 = vld [vmem:[%s352_s0 + $0x8] sm:$0xff]  ;;  %v201_v26 = vpack.c.bf16 %v29_v22, %v28_v21  ;;  %v203_v27 = vpack.c.bf16 %v47_v24, %v46_v23  ;;  %v30_v28 = vld [vmem:[%s351_s1 + $0x40] sm:$0xff]  ;;  %v48_v30 = vld [vmem:[%s351_s1 + $0xd0] sm:$0xff] }
   0x8   :  { %118 = vmatprep.mubr.f32.mxu0 %v21_v25  ;;  %v31_v29 = vld [vmem:[%s351_s1 + $0x48] sm:$0xff]  ;;  %v49_v31 = vld [vmem:[%s351_s1 + $0xd8] sm:$0xff]  ;;  %v32_v34 = vld [vmem:[%s351_s1 + $0x50] sm:$0xff] }
   0x9   :  { %194 = vmatpush3.bf16.msra.mxu0 %v193_v13  ;;  %v205_v32 = vpack.c.bf16 %v31_v29, %v30_v28  ;;  %v207_v33 = vpack.c.bf16 %v49_v31, %v48_v30  ;;  %v33_v35 = vld [vmem:[%s351_s1 + $0x58] sm:$0xff]  ;;  %v50_v36 = vld [vmem:[%s351_s1 + $0xe0] sm:$0xff]  ;;  %v51_v37 = vld [vmem:[%s351_s1 + $0xe8] sm:$0xff] }
   0xa   :  { %196 = vmatprep.subr.bf16.mxu0 %v195_v14  ;;  %v209_v38 = vpack.c.bf16 %v33_v35, %v32_v34  ;;  %v211_v39 = vpack.c.bf16 %v51_v37, %v50_v36  ;;  %v34_v40 = vld [vmem:[%s351_s1 + $0x60] sm:$0xff]  ;;  %v35_v41 = vld [vmem:[%s351_s1 + $0x68] sm:$0xff]  ;;  %v52_v42 = vld [vmem:[%s351_s1 + $0xf0] sm:$0xff] }
   0xb   :  { %v53_v43 = vld [vmem:[%s351_s1 + $0xf8] sm:$0xff]  ;;  %v213_v44 = vpack.c.bf16 %v35_v41, %v34_v40  ;;  %v36_v46 = vld [vmem:[%s351_s1 + $0x70] sm:$0xff]  ;;  %v20_v49 = vld [vmem:[%s352_s0] sm:$0xff] }
   0xc   :  { %v215_v45 = vpack.c.bf16 %v53_v43, %v52_v42  ;;  %v37_v47 = vld [vmem:[%s351_s1 + $0x78] sm:$0xff]  ;;  %v151_v52 = vld [vmem:[%s353_s2] ss:$0 sm:$0xff] }
   0xd   :  { %198 = vmatpush3.bf16.msra.mxu0 %v197_v19  ;;  %v217_v48 = vpack.c.bf16 %v37_v47, %v36_v46 }
   0xe   :  { %200 = vmatprep.subr.bf16.mxu0 %v199_v20 }
  0x11   :  { %202 = vmatpush3.bf16.msra.mxu0 %v201_v26 }
  0x12   :  { %204 = vmatprep.subr.bf16.mxu0 %v203_v27 }
  0x15   :  { %206 = vmatpush3.bf16.msra.mxu0 %v205_v32 }
  0x16   :  { %208 = vmatprep.subr.bf16.mxu0 %v207_v33 }
  0x19   :  { %210 = vmatpush3.bf16.msra.mxu0 %v209_v38 }
  0x1a   :  { %212 = vmatprep.subr.bf16.mxu0 %v211_v39 }
  0x1d   :  { %214 = vmatpush3.bf16.msra.mxu0 %v213_v44 }
  0x1e   :  { %216 = vmatprep.subr.bf16.mxu0 %v215_v45 }
  0x21   :  { %218 = vmatpush3.bf16.msra.mxu0 %v217_v48 }
  0x24   :  { %119 = vmatmul.mubr.f32.vlgmr.msra.gmra.mrb[0].mxu0 %v20_v49 }
  0xf7   :  { %v184_v50 = vpop.f32.mrb[0].mxu0 }
  0xf8   :  { %v185_v51 = vpop.f32.mrb[1].mxu0 }
  0xf9   :  { %v186_v53 = vadd.f32 %v185_v51, %v184_v50 }
  0xfb   :  { %v137_v54 = vadd.f32 %v186_v53, %v151_v52 }
  0xfd   :  { %v139_v55 = vmin.f32 %v137_v54, 20.0  ;;  %vm138_vm0 = vcmp.gt.f32.partialorder %v137_v54, 20.0 }
  0xff   :  { %v140_v56 = vmul.f32 1.442695, %v139_v55 }
 0x101   :  { %219 = vpow2.f32 %v140_v56 }
 0x10b   :  { %v220_v57 = vpop.eup %219 }
 0x10c   :  { %v142_v58 = vadd.f32 1.0, %v220_v57 }
 0x10e   :  { %221 = vlog2.f32 %v142_v58 }
 0x118   :  { %v222_v59 = vpop.eup %221 }
 0x119   :  { %v144_v60 = vmul.f32 0.6931472, %v222_v59 }
 0x11b   :  { %v145_v61 = vsel %vm138_vm0, %v137_v54, %v144_v60 }
 0x11c   :  { %146 = vst [vmem:[%s354_s3] sm:$0xff] %v145_v61 }

// kernel: slosh_forward.19
= control target key start
LH: loop header
LB: loop body
LE: loop exit
PB: predicated region body
PF: predicated region fallthrough
CT: control target
= control target key end

     0   :  { %s351_s1 = inlined_call_operand.vmem [shape: f32[256,128], index: 1, kind: input, shape index: {}]   ;;  %s352_s0 = inlined_call_operand.vmem [shape: f32[8,256], index: 0, kind: input, shape index: {}]   ;;  %s353_s2 = inlined_call_operand.vmem [shape: f32[1,128], index: 2, kind: input, shape index: {}]   ;;  %s354_s3 = inlined_call_operand.vmem [shape: f32[8,128], index: 3, kind: output, shape index: {}]  }
   0x1   :  { %v38_v0 = vld [vmem:[%s351_s1 + $0x80] sm:$0xff]  ;;  %v39_v1 = vld [vmem:[%s351_s1 + $0x88] sm:$0xff]  ;;  %v40_v5 = vld [vmem:[%s351_s1 + $0x90] sm:$0xff] }
   0x2   :  { %v22_v2 = vld [vmem:[%s351_s1] sm:$0xff]  ;;  %v187_v3 = vpack.c.bf16 %v39_v1, %v38_v0  ;;  %v23_v4 = vld [vmem:[%s351_s1 + $0x8] sm:$0xff]  ;;  %v41_v6 = vld [vmem:[%s351_s1 + $0x98] sm:$0xff] }
   0x3   :  { %v189_v7 = vpack.c.bf16 %v23_v4, %v22_v2  ;;  %v191_v8 = vpack.c.bf16 %v41_v6, %v40_v5  ;;  %v24_v9 = vld [vmem:[%s351_s1 + $0x10] sm:$0xff]  ;;  %v25_v10 = vld [vmem:[%s351_s1 + $0x18] sm:$0xff]  ;;  %v42_v11 = vld [vmem:[%s351_s1 + $0xa0] sm:$0xff] }
   0x4   :  { %188 = vmatprep.subr.bf16.mxu0 %v187_v3  ;;  %v43_v12 = vld [vmem:[%s351_s1 + $0xa8] sm:$0xff]  ;;  %v193_v13 = vpack.c.bf16 %v25_v10, %v24_v9  ;;  %v26_v15 = vld [vmem:[%s351_s1 + $0x20] sm:$0xff]  ;;  %v44_v17 = vld [vmem:[%s351_s1 + $0xb0] sm:$0xff] }
   0x5   :  { %190 = vmatpush3.bf16.msra.mxu0 %v189_v7  ;;  %v195_v14 = vpack.c.bf16 %v43_v12, %v42_v11  ;;  %v27_v16 = vld [vmem:[%s351_s1 + $0x28] sm:$0xff]  ;;  %v45_v18 = vld [vmem:[%s351_s1 + $0xb8] sm:$0xff]  ;;  %v28_v21 = vld [vmem:[%s351_s1 + $0x30] sm:$0xff] }
   0x6   :  { %192 = vmatprep.subr.bf16.mxu0 %v191_v8  ;;  %v197_v19 = vpack.c.bf16 %v27_v16, %v26_v15  ;;  %v199_v20 = vpack.c.bf16 %v45_v18, %v44_v17  ;;  %v29_v22 = vld [vmem:[%s351_s1 + $0x38] sm:$0xff]  ;;  %v46_v23 = vld [vmem:[%s351_s1 + $0xc0] sm:$0xff]  ;;  %v47_v24 = vld [vmem:[%s351_s1 + $0xc8] sm:$0xff] }
   0x7   :  { %v21_v25 = vld [vmem:[%s352_s0 + $0x8] sm:$0xff]  ;;  %v201_v26 = vpack.c.bf16 %v29_v22, %v28_v21  ;;  %v203_v27 = vpack.c.bf16 %v47_v24, %v46_v23  ;;  %v30_v28 = vld [vmem:[%s351_s1 + $0x40] sm:$0xff]  ;;  %v48_v30 = vld [vmem:[%s351_s1 + $0xd0] sm:$0xff] }
   0x8   :  { %118 = vmatprep.mubr.f32.mxu0 %v21_v25  ;;  %v31_v29 = vld [vmem:[%s351_s1 + $0x48] sm:$0xff]  ;;  %v49_v31 = vld [vmem:[%s351_s1 + $0xd8] sm:$0xff]  ;;  %v32_v34 = vld [vmem:[%s351_s1 + $0x50] sm:$0xff] }
   0x9   :  { %194 = vmatpush3.bf16.msra.mxu0 %v193_v13  ;;  %v205_v32 = vpack.c.bf16 %v31_v29, %v30_v28  ;;  %v207_v33 = vpack.c.bf16 %v49_v31, %v48_v30  ;;  %v33_v35 = vld [vmem:[%s351_s1 + $0x58] sm:$0xff]  ;;  %v50_v36 = vld [vmem:[%s351_s1 + $0xe0] sm:$0xff]  ;;  %v51_v37 = vld [vmem:[%s351_s1 + $0xe8] sm:$0xff] }
   0xa   :  { %196 = vmatprep.subr.bf16.mxu0 %v195_v14  ;;  %v209_v38 = vpack.c.bf16 %v33_v35, %v32_v34  ;;  %v211_v39 = vpack.c.bf16 %v51_v37, %v50_v36  ;;  %v34_v40 = vld [vmem:[%s351_s1 + $0x60] sm:$0xff]  ;;  %v35_v41 = vld [vmem:[%s351_s1 + $0x68] sm:$0xff]  ;;  %v52_v42 = vld [vmem:[%s351_s1 + $0xf0] sm:$0xff] }
   0xb   :  { %v53_v43 = vld [vmem:[%s351_s1 + $0xf8] sm:$0xff]  ;;  %v213_v44 = vpack.c.bf16 %v35_v41, %v34_v40  ;;  %v36_v46 = vld [vmem:[%s351_s1 + $0x70] sm:$0xff]  ;;  %v20_v49 = vld [vmem:[%s352_s0] sm:$0xff] }
   0xc   :  { %v215_v45 = vpack.c.bf16 %v53_v43, %v52_v42  ;;  %v37_v47 = vld [vmem:[%s351_s1 + $0x78] sm:$0xff]  ;;  %v151_v52 = vld [vmem:[%s353_s2] ss:$0 sm:$0xff] }
   0xd   :  { %198 = vmatpush3.bf16.msra.mxu0 %v197_v19  ;;  %v217_v48 = vpack.c.bf16 %v37_v47, %v36_v46 }
   0xe   :  { %200 = vmatprep.subr.bf16.mxu0 %v199_v20 }
  0x11   :  { %202 = vmatpush3.bf16.msra.mxu0 %v201_v26 }
  0x12   :  { %204 = vmatprep.subr.bf16.mxu0 %v203_v27 }
  0x15   :  { %206 = vmatpush3.bf16.msra.mxu0 %v205_v32 }
  0x16   :  { %208 = vmatprep.subr.bf16.mxu0 %v207_v33 }
  0x19   :  { %210 = vmatpush3.bf16.msra.mxu0 %v209_v38 }
  0x1a   :  { %212 = vmatprep.subr.bf16.mxu0 %v211_v39 }
  0x1d   :  { %214 = vmatpush3.bf16.msra.mxu0 %v213_v44 }
  0x1e   :  { %216 = vmatprep.subr.bf16.mxu0 %v215_v45 }
  0x21   :  { %218 = vmatpush3.bf16.msra.mxu0 %v217_v48 }
  0x24   :  { %119 = vmatmul.mubr.f32.vlgmr.msra.gmra.mrb[0].mxu0 %v20_v49 }
  0xf7   :  { %v184_v50 = vpop.f32.mrb[0].mxu0 }
  0xf8   :  { %v185_v51 = vpop.f32.mrb[1].mxu0 }
  0xf9   :  { %v186_v53 = vadd.f32 %v185_v51, %v184_v50 }
  0xfb   :  { %v137_v54 = vadd.f32 %v186_v53, %v151_v52 }
  0xfd   :  { %v139_v55 = vmin.f32 %v137_v54, 5.0  ;;  %vm138_vm0 = vcmp.gt.f32.partialorder %v137_v54, 5.0 }
  0xff   :  { %v140_v56 = vmul.f32 1.442695, %v139_v55 }
 0x101   :  { %219 = vpow2.f32 %v140_v56 }
 0x10b   :  { %v220_v57 = vpop.eup %219 }
 0x10c   :  { %v142_v58 = vadd.f32 1.0, %v220_v57 }
 0x10e   :  { %221 = vlog2.f32 %v142_v58 }
 0x118   :  { %v222_v59 = vpop.eup %221 }
 0x119   :  { %v144_v60 = vmul.f32 0.6931472, %v222_v59 }
 0x11b   :  { %v145_v61 = vsel %vm138_vm0, %v137_v54, %v144_v60 }
 0x11c   :  { %146 = vst [vmem:[%s354_s3] sm:$0xff] %v145_v61 }

// kernel: slosh_forward.15
= control target key start
LH: loop header
LB: loop body
LE: loop exit
PB: predicated region body
PF: predicated region fallthrough
CT: control target
= control target key end

     0   :  { %v138_v50 = vlaneseq  ;;  %s356_s1 = inlined_call_operand.vmem [shape: f32[256,128], index: 1, kind: input, shape index: {}]   ;;  %s357_s0 = inlined_call_operand.vmem [shape: f32[8,256], index: 0, kind: input, shape index: {}]   ;;  %s358_s2 = inlined_call_operand.vmem [shape: f32[1,128], index: 2, kind: input, shape index: {}]   ;;  %s359_s3 = inlined_call_operand.vmem [shape: f32[8,128], index: 3, kind: output, shape index: {}]  }
   0x1   :  { %v38_v0 = vld [vmem:[%s356_s1 + $0x80] sm:$0xff]  ;;  %v39_v1 = vld [vmem:[%s356_s1 + $0x88] sm:$0xff]  ;;  %v40_v5 = vld [vmem:[%s356_s1 + $0x90] sm:$0xff] }
   0x2   :  { %v22_v2 = vld [vmem:[%s356_s1] sm:$0xff]  ;;  %v192_v3 = vpack.c.bf16 %v39_v1, %v38_v0  ;;  %v23_v4 = vld [vmem:[%s356_s1 + $0x8] sm:$0xff]  ;;  %v41_v6 = vld [vmem:[%s356_s1 + $0x98] sm:$0xff]  ;;  %v139_v51 = vand.u32 127, %v138_v50 }
   0x3   :  { %v194_v7 = vpack.c.bf16 %v23_v4, %v22_v2  ;;  %v196_v8 = vpack.c.bf16 %v41_v6, %v40_v5  ;;  %v24_v9 = vld [vmem:[%s356_s1 + $0x10] sm:$0xff]  ;;  %v25_v10 = vld [vmem:[%s356_s1 + $0x18] sm:$0xff]  ;;  %v42_v11 = vld [vmem:[%s356_s1 + $0xa0] sm:$0xff] }
   0x4   :  { %193 = vmatprep.subr.bf16.mxu0 %v192_v3  ;;  %v43_v12 = vld [vmem:[%s356_s1 + $0xa8] sm:$0xff]  ;;  %v198_v13 = vpack.c.bf16 %v25_v10, %v24_v9  ;;  %v26_v15 = vld [vmem:[%s356_s1 + $0x20] sm:$0xff]  ;;  %v44_v17 = vld [vmem:[%s356_s1 + $0xb0] sm:$0xff]  ;;  %vm140_vm0 = vcmp.lt.s32.totalorder %v139_v51, 4 }
   0x5   :  { %195 = vmatpush3.bf16.msra.mxu0 %v194_v7  ;;  %v200_v14 = vpack.c.bf16 %v43_v12, %v42_v11  ;;  %v27_v16 = vld [vmem:[%s356_s1 + $0x28] sm:$0xff]  ;;  %v45_v18 = vld [vmem:[%s356_s1 + $0xb8] sm:$0xff]  ;;  %v28_v21 = vld [vmem:[%s356_s1 + $0x30] sm:$0xff] }
   0x6   :  { %197 = vmatprep.subr.bf16.mxu0 %v196_v8  ;;  %v202_v19 = vpack.c.bf16 %v27_v16, %v26_v15  ;;  %v204_v20 = vpack.c.bf16 %v45_v18, %v44_v17  ;;  %v29_v22 = vld [vmem:[%s356_s1 + $0x38] sm:$0xff]  ;;  %v46_v23 = vld [vmem:[%s356_s1 + $0xc0] sm:$0xff]  ;;  %v47_v24 = vld [vmem:[%s356_s1 + $0xc8] sm:$0xff] }
   0x7   :  { %v21_v25 = vld [vmem:[%s357_s0 + $0x8] sm:$0xff]  ;;  %v206_v26 = vpack.c.bf16 %v29_v22, %v28_v21  ;;  %v208_v27 = vpack.c.bf16 %v47_v24, %v46_v23  ;;  %v30_v28 = vld [vmem:[%s356_s1 + $0x40] sm:$0xff]  ;;  %v48_v30 = vld [vmem:[%s356_s1 + $0xd0] sm:$0xff] }
   0x8   :  { %118 = vmatprep.mubr.f32.mxu0 %v21_v25  ;;  %v31_v29 = vld [vmem:[%s356_s1 + $0x48] sm:$0xff]  ;;  %v49_v31 = vld [vmem:[%s356_s1 + $0xd8] sm:$0xff]  ;;  %v32_v34 = vld [vmem:[%s356_s1 + $0x50] sm:$0xff] }
   0x9   :  { %199 = vmatpush3.bf16.msra.mxu0 %v198_v13  ;;  %v210_v32 = vpack.c.bf16 %v31_v29, %v30_v28  ;;  %v212_v33 = vpack.c.bf16 %v49_v31, %v48_v30  ;;  %v33_v35 = vld [vmem:[%s356_s1 + $0x58] sm:$0xff]  ;;  %v50_v36 = vld [vmem:[%s356_s1 + $0xe0] sm:$0xff]  ;;  %v51_v37 = vld [vmem:[%s356_s1 + $0xe8] sm:$0xff] }
   0xa   :  { %201 = vmatprep.subr.bf16.mxu0 %v200_v14  ;;  %v214_v38 = vpack.c.bf16 %v33_v35, %v32_v34  ;;  %v216_v39 = vpack.c.bf16 %v51_v37, %v50_v36  ;;  %v34_v40 = vld [vmem:[%s356_s1 + $0x60] sm:$0xff]  ;;  %v35_v41 = vld [vmem:[%s356_s1 + $0x68] sm:$0xff]  ;;  %v52_v42 = vld [vmem:[%s356_s1 + $0xf0] sm:$0xff] }
   0xb   :  { %v53_v43 = vld [vmem:[%s356_s1 + $0xf8] sm:$0xff]  ;;  %v218_v44 = vpack.c.bf16 %v35_v41, %v34_v40  ;;  %v36_v46 = vld [vmem:[%s356_s1 + $0x70] sm:$0xff]  ;;  %v20_v49 = vld [vmem:[%s357_s0] sm:$0xff] }
   0xc   :  { %v220_v45 = vpack.c.bf16 %v53_v43, %v52_v42  ;;  %v37_v47 = vld [vmem:[%s356_s1 + $0x78] sm:$0xff]  ;;  %v156_v54 = vld [vmem:[%s358_s2] ss:$0 sm:$0xff] }
   0xd   :  { %203 = vmatpush3.bf16.msra.mxu0 %v202_v19  ;;  %v222_v48 = vpack.c.bf16 %v37_v47, %v36_v46 }
   0xe   :  { %205 = vmatprep.subr.bf16.mxu0 %v204_v20 }
  0x11   :  { %207 = vmatpush3.bf16.msra.mxu0 %v206_v26 }
  0x12   :  { %209 = vmatprep.subr.bf16.mxu0 %v208_v27 }
  0x15   :  { %211 = vmatpush3.bf16.msra.mxu0 %v210_v32 }
  0x16   :  { %213 = vmatprep.subr.bf16.mxu0 %v212_v33 }
  0x19   :  { %215 = vmatpush3.bf16.msra.mxu0 %v214_v38 }
  0x1a   :  { %217 = vmatprep.subr.bf16.mxu0 %v216_v39 }
  0x1d   :  { %219 = vmatpush3.bf16.msra.mxu0 %v218_v44 }
  0x1e   :  { %221 = vmatprep.subr.bf16.mxu0 %v220_v45 }
  0x21   :  { %223 = vmatpush3.bf16.msra.mxu0 %v222_v48 }
  0x24   :  { %119 = vmatmul.mubr.f32.vlgmr.msra.gmra.mrb[0].mxu0 %v20_v49 }
  0xf7   :  { %v189_v52 = vpop.f32.mrb[0].mxu0 }
  0xf8   :  { %v190_v53 = vpop.f32.mrb[1].mxu0 }
  0xf9   :  { %v191_v55 = vadd.f32 %v190_v53, %v189_v52 }
  0xfb   :  { %v137_v56 = vadd.f32 %v191_v55, %v156_v54 }
  0xfd   :  { %v141_v57 = vsel %vm140_vm0, %v137_v56, -1e+30 }
  0xfe   :  { %142 = vmax.xlane.f32.xlu0 %v141_v57 }
 0x18b   :  { %v143_v58 = vpop.xlane.xlu0 %142 }
 0x18c   :  { %v144_v59 = vsub.f32 %v141_v57, %v143_v58 }
 0x18e   :  { %v145_v60 = vmul.f32 1.442695, %v144_v59 }
 0x190   :  { %224 = vpow2.f32 %v145_v60 }
 0x19a   :  { %v225_v61 = vpop.eup %224 }
 0x19b   :  { %147 = vadd.xlane.f32.xlu0 %v225_v61 }
 0x228   :  { %v148_v62 = vpop.xlane.xlu0 %147 }
 0x229   :  { %226 = vrcp.f32 %v148_v62 }
 0x233   :  { %v227_v63 = vpop.eup %226 }
 0x234   :  { %v150_v0 = vmul.f32 %v227_v63, %v225_v61 }
 0x236   :  { %151 = vst [vmem:[%s359_s3] sm:$0xff] %v150_v0 }

</bundles_post_ra>
